<compile_context>
chip_gen: v7x
topology: tpu7x:2x2x1
jax: 0.10.0
libtpu: 0.0.40
codegen_flags: <defaults>
</compile_context>

<pallas_src>
import functools

import jax
import jax.numpy as jnp
from jax.experimental import pallas as pl
from jax.experimental.pallas import tpu as pltpu


# ----------------------------------------------------------------------------
# The single fused kernel: a chain of lane-dense GEMMs, fully VMEM-resident.
# ----------------------------------------------------------------------------
def _vae_kernel(*refs, n_conv, latent, use_ln, ln_eps, final_act):
    n_in = 10 + 4 * n_conv
    in_refs = refs[:n_in]
    recon_ref, mlz_ref = refs[n_in], refs[n_in + 1]

    x_ref, eps_ref = in_refs[0], in_refs[1]
    pos = 2
    enc = [(in_refs[pos + 2 * j], in_refs[pos + 2 * j + 1])
           for j in range(n_conv)]
    pos += 2 * n_conv
    (we_ref, auxe_ref, wml_ref, bml_ref,
     wdfc_ref, auxd_ref, wu_ref, bu_ref) = in_refs[pos:pos + 8]
    pos += 8
    dec = [(in_refs[pos + 2 * j], in_refs[pos + 2 * j + 1])
           for j in range(n_conv)]

    f32 = jnp.float32

    def mm(h, w_ref):
        w = w_ref[...]                       # bf16 weight, resident in VMEM
        return jnp.dot(h.astype(w.dtype), w, preferred_element_type=f32)

    # ---- encoder convs: Conv -> ReLU  (post-ReLU eval-BN folded downstream)
    h = x_ref[...].astype(f32)
    for w_ref, c_ref in enc:
        h = jnp.maximum(mm(h, w_ref) + c_ref[...], 0.0)

    # ---- FC block: Linear -> [LayerNorm] -> ReLU ; Dropout=id; BN folded on
    def fc_block(t, w_ref, aux_ref):
        a = aux_ref[...]
        t = mm(t, w_ref) + a[0:1, :]
        if use_ln:
            m = jnp.mean(t, axis=-1, keepdims=True)
            v = jnp.mean(jnp.square(t - m), axis=-1, keepdims=True)
            t = (t - m) * jax.lax.rsqrt(v + ln_eps)
            t = t * a[1:2, :] + a[2:3, :]
        return jnp.maximum(t, 0.0)

    he = fc_block(h, we_ref, auxe_ref)
    ml = mm(he, wml_ref) + bml_ref[...]      # packed [mu | logvar]
    mu = ml[:, :latent]
    logvar = ml[:, latent:]
    z = mu + eps_ref[...].astype(f32) * jnp.exp(0.5 * logvar)
    mlz_ref[:, :2 * latent] = ml             # packed output: [mu|logvar|z]
    mlz_ref[:, 2 * latent:] = z

    hd = fc_block(z, wdfc_ref, auxd_ref)
    h = mm(hd, wu_ref) + bu_ref[...]         # decoder_unflatten_fc

    # ---- decoder conv-transposes (dense): ReLU on all but the last layer
    for j, (w_ref, c_ref) in enumerate(dec):
        h = mm(h, w_ref) + c_ref[...]
        if j < n_conv - 1:
            h = jnp.maximum(h, 0.0)
    if final_act == 'sigmoid':
        h = jax.nn.sigmoid(h)
    elif final_act == 'tanh':
        h = jnp.tanh(h)
    recon_ref[...] = h.astype(recon_ref.dtype)


# ----------------------------------------------------------------------------
# One-time lowering of convolutions to exact dense NCHW-flat matrices.
# ----------------------------------------------------------------------------
def _conv_dense(w, stride, padding, hin):
    """Exact dense matrix of Conv2d: NCHW-flat input -> NCHW-flat output."""
    cout, cin, k, _ = w.shape
    n_in = cin * hin * hin
    eye = jnp.eye(n_in, dtype=jnp.float32).reshape(n_in, cin, hin, hin)
    out = jax.lax.conv_general_dilated(
        eye, w.astype(jnp.float32), window_strides=(stride, stride),
        padding=[(padding, padding), (padding, padding)],
        dimension_numbers=('NCHW', 'OIHW', 'NCHW'))
    return out.reshape(n_in, -1), out.shape[2]


def _convtranspose_dense(w_t, stride, padding, output_padding, hin):
    """Exact dense matrix of ConvTranspose2d (incl. output_padding).

    ConvTranspose2d(x; W, s, p, op) == stride-1 cross-correlation of the
    s-dilated input, padded by (k-1-p) low / (k-1-p+op) high, with the
    spatially-flipped, in/out-channel-swapped kernel.
    """
    cin, cout, k, _ = w_t.shape
    w_conv = jnp.transpose(w_t[:, :, ::-1, ::-1], (1, 0, 2, 3)).astype(jnp.float32)
    n_in = cin * hin * hin
    eye = jnp.eye(n_in, dtype=jnp.float32).reshape(n_in, cin, hin, hin)
    lo = k - 1 - padding
    hi = k - 1 - padding + output_padding
    out = jax.lax.conv_general_dilated(
        eye, w_conv, window_strides=(1, 1),
        padding=[(lo, hi), (lo, hi)],
        lhs_dilation=(stride, stride),
        dimension_numbers=('NCHW', 'OIHW', 'NCHW'))
    return out.reshape(n_in, -1), out.shape[2]


def bn_scale_shift(gamma, beta, mean, var, eps=1e-5):
    scale = gamma * jax.lax.rsqrt(var + eps)
    return scale, beta - mean * scale


# ----------------------------------------------------------------------------
# Model config / params
# ----------------------------------------------------------------------------
CFG = dict(input_channels=4, latent_dim=16, image_size=16, num_conv_layers=2,
           decoder_type='convtranspose', kernel_sizes=[3, 3], strides=[2, 2],
           paddings=[1, 1], conv_channels=[8, 16], intermediate_fc_dim=32,
           dropout_rate=0.1, use_layernorm_fc=True, final_activation='sigmoid')


def init_params(key, cfg):
    f32 = jnp.float32
    keys = list(jax.random.split(key, 100))
    kidx = [0]

    def nk():
        k = keys[kidx[0]]
        kidx[0] += 1
        return k

    def uni(shape, fan_in):
        lim = float(fan_in) ** -0.5
        return jax.random.uniform(nk(), shape, f32, -lim, lim)

    def bn_init(nch):
        return dict(gamma=jnp.ones((nch,), f32), beta=jnp.zeros((nch,), f32),
                    mean=jnp.zeros((nch,), f32), var=jnp.ones((nch,), f32))

    n = cfg['num_conv_layers']
    params = {}

    enc = []
    ch = cfg['input_channels']
    dims = [cfg['image_size']]
    for i in range(n):
        co, k = cfg['conv_channels'][i], cfg['kernel_sizes'][i]
        s, p = cfg['strides'][i], cfg['paddings'][i]
        fan_in = ch * k * k
        enc.append(dict(w=uni((co, ch, k, k), fan_in), b=uni((co,), fan_in),
                        bn=bn_init(co)))
        dims.append((dims[-1] + 2 * p - k) // s + 1)
        ch = co
    params['enc_conv'] = enc
    final_ch, final_dim = ch, dims[-1]
    flat = final_ch * final_dim * final_dim

    ifc = cfg['intermediate_fc_dim']
    fc_in = flat
    if ifc > 0:
        params['enc_fc'] = dict(w=uni((flat, ifc), flat), b=uni((ifc,), flat),
                                ln_g=jnp.ones((ifc,), f32),
                                ln_b=jnp.zeros((ifc,), f32), bn=bn_init(ifc))
        fc_in = ifc
    L = cfg['latent_dim']
    params['fc_mu'] = dict(w=uni((fc_in, L), fc_in), b=uni((L,), fc_in))
    params['fc_logvar'] = dict(w=uni((fc_in, L), fc_in), b=uni((L,), fc_in))

    if ifc > 0:
        params['dec_fc'] = dict(w=uni((L, ifc), L), b=uni((ifc,), L),
                                ln_g=jnp.ones((ifc,), f32),
                                ln_b=jnp.zeros((ifc,), f32), bn=bn_init(ifc))
        params['dec_unflatten_fc'] = dict(w=uni((ifc, flat), ifc),
                                          b=uni((flat,), ifc))
    else:
        params['dec_unflatten_fc'] = dict(w=uni((L, flat), L),
                                          b=uni((flat,), L))

    dec = []
    rev_ch = cfg['conv_channels'][-2::-1] + [cfg['input_channels']]
    rev_k = cfg['kernel_sizes'][::-1]
    rev_s = cfg['strides'][::-1]
    rev_p = cfg['paddings'][::-1]
    ch = final_ch
    for i in range(n):
        in_dim, out_dim = dims[n - i], dims[n - 1 - i]
        k, s, p = rev_k[i], rev_s[i], rev_p[i]
        op = out_dim - ((in_dim - 1) * s - 2 * p + k)
        fan_in = ch * k * k
        dec.append(dict(w=uni((ch, rev_ch[i], k, k), fan_in),
                        b=uni((rev_ch[i],), fan_in), bn=bn_init(rev_ch[i]),
                        k=k, s=s, p=p, op=op, hin=in_dim, hout=out_dim))
        ch = rev_ch[i]
    params['dec_conv'] = dec
    return params


def prepare_params(params, cfg, compute_dtype=jnp.bfloat16):
    """One-time lowering / folding pass (never re-run per forward):
       * every Conv2d / ConvTranspose2d -> exact dense NCHW-flat GEMM matrix,
       * every eval BatchNorm (sits AFTER ReLU) folded into the NEXT linear
         operator's weight + bias,
       * fc_mu / fc_logvar concatenated into one [fc_in, 2*latent] matrix,
       * matmul weights stored bf16 (epilogue + accumulation stay f32)."""
    assert cfg['decoder_type'] == 'convtranspose'  # TODO(synk): 'upsample' path
    assert cfg['intermediate_fc_dim'] > 0          # TODO(synk): ifc == 0 path
    f32 = jnp.float32
    n = cfg['num_conv_layers']
    use_ln = cfg['use_layernorm_fc']

    def fold(W, b, sc_in, sh_in):
        # y = (x*sc_in + sh_in) @ W + b  ->  x @ W' + b'   (exact)
        return sc_in[:, None] * W, sh_in @ W + b

    # encoder convs
    enc_w, enc_c = [], []
    carry = None
    hin = cfg['image_size']
    for i, layer in enumerate(params['enc_conv']):
        Wd, hout = _conv_dense(layer['w'], cfg['strides'][i],
                               cfg['paddings'][i], hin)
        hw = hout * hout
        bflat = jnp.repeat(layer['b'].astype(f32), hw)
        if carry is not None:
            Wd, bflat = fold(Wd, bflat, *carry)
        sc, sh = bn_scale_shift(**layer['bn'])
        carry = (jnp.repeat(sc, hw), jnp.repeat(sh, hw))
        enc_w.append(Wd)
        enc_c.append(bflat.reshape(1, -1))
        hin = hout

    # encoder_fc (its BatchNorm1d folds into fc_mu / fc_logvar)
    ef = params['enc_fc']
    We, be = fold(ef['w'].astype(f32), ef['b'].astype(f32), *carry)
    auxe = (jnp.stack([be, ef['ln_g'], ef['ln_b']]) if use_ln
            else be.reshape(1, -1)).astype(f32)
    sc_e, sh_e = bn_scale_shift(**ef['bn'])
    wmu, bmu = fold(params['fc_mu']['w'].astype(f32),
                    params['fc_mu']['b'].astype(f32), sc_e, sh_e)
    wlv, blv = fold(params['fc_logvar']['w'].astype(f32),
                    params['fc_logvar']['b'].astype(f32), sc_e, sh_e)
    Wml = jnp.concatenate([wmu, wlv], axis=1)
    bml = jnp.concatenate([bmu, blv]).reshape(1, -1)

    # decoder_fc (its BatchNorm1d folds into decoder_unflatten_fc)
    df = params['dec_fc']
    Wdfc, bdfc = df['w'].astype(f32), df['b'].astype(f32)
    auxd = (jnp.stack([bdfc, df['ln_g'], df['ln_b']]) if use_ln
            else bdfc.reshape(1, -1)).astype(f32)
    sc_d, sh_d = bn_scale_shift(**df['bn'])
    Wu, bu = fold(params['dec_unflatten_fc']['w'].astype(f32),
                  params['dec_unflatten_fc']['b'].astype(f32), sc_d, sh_d)

    # decoder conv-transposes
    dec_w, dec_c = [], []
    carry = None
    for i, layer in enumerate(params['dec_conv']):
        Wd, hout = _convtranspose_dense(layer['w'], layer['s'], layer['p'],
                                        layer['op'], layer['hin'])
        assert hout == layer['hout'], (hout, layer['hout'])
        hw = hout * hout
        bflat = jnp.repeat(layer['b'].astype(f32), hw)
        if carry is not None:
            Wd, bflat = fold(Wd, bflat, *carry)
        if i < n - 1:                      # last decoder layer has no BN/ReLU
            sc, sh = bn_scale_shift(**layer['bn'])
            carry = (jnp.repeat(sc, hw), jnp.repeat(sh, hw))
        dec_w.append(Wd)
        dec_c.append(bflat.reshape(1, -1))

    cd = compute_dtype
    return dict(
        enc_w=[w.astype(cd) for w in enc_w], enc_c=enc_c,
        we=We.astype(cd), auxe=auxe,
        wml=Wml.astype(cd), bml=bml,
        wdfc=Wdfc.astype(cd), auxd=auxd,
        wu=Wu.astype(cd), bu=bu.reshape(1, -1),
        dec_w=[w.astype(cd) for w in dec_w], dec_c=dec_c,
    )


# ----------------------------------------------------------------------------
# Forward pass: one pallas_call + bitcast-level reshapes only.
# ----------------------------------------------------------------------------
def vae_forward(prep, cfg, x_nchw, eps):
    B, C, H, W = x_nchw.shape
    L = cfg['latent_dim']
    n = cfg['num_conv_layers']
    fa = cfg['final_activation']
    final_act = fa if fa in ('sigmoid', 'tanh') else 'none'

    x_flat = x_nchw.reshape(B, C * H * W).astype(jnp.float32)  # NCHW flatten
    eps = eps.astype(jnp.float32)

    # One batch block per grid step; "parallel" lets multi-TensorCore chips
    # (v7x) shard batch blocks across cores. At B=2 this is a single step.
    bb = B if B <= 128 else 128
    assert B % bb == 0, "batch must be a multiple of the batch block"
    grid = (B // bb,)

    ins, in_specs = [], []

    def batched(arr):
        ins.append(arr)
        in_specs.append(pl.BlockSpec((bb, arr.shape[1]), lambda b: (b, 0)))

    def resident(arr):           # whole array, VMEM-resident across all steps
        ins.append(arr)
        in_specs.append(pl.BlockSpec(arr.shape, lambda b: (0, 0)))

    batched(x_flat)
    batched(eps)
    for w, c in zip(prep['enc_w'], prep['enc_c']):
        resident(w)
        resident(c)
    for name in ('we', 'auxe', 'wml', 'bml', 'wdfc', 'auxd', 'wu', 'bu'):
        resident(prep[name])
    for w, c in zip(prep['dec_w'], prep['dec_c']):
        resident(w)
        resident(c)

    out_flat = prep['dec_w'][-1].shape[1]
    assert out_flat == C * H * W

    kern = functools.partial(_vae_kernel, n_conv=n, latent=L,
                             use_ln=cfg['use_layernorm_fc'], ln_eps=1e-5,
                             final_act=final_act)
    recon_flat, mlz = pl.pallas_call(
        kern,
        out_shape=(jax.ShapeDtypeStruct((B, out_flat), jnp.float32),
                   jax.ShapeDtypeStruct((B, 3 * L), jnp.float32)),
        grid_spec=pltpu.PrefetchScalarGridSpec(
            num_scalar_prefetch=0,
            grid=grid,
            in_specs=in_specs,
            out_specs=(pl.BlockSpec((bb, out_flat), lambda b: (b, 0)),
                       pl.BlockSpec((bb, 3 * L), lambda b: (b, 0)))),
        compiler_params=pltpu.CompilerParams(
            dimension_semantics=("parallel",),
            vmem_limit_bytes=32 * 1024 * 1024),
    )(*ins)

    recon = recon_flat.reshape(B, C, H, W)          # NCHW unflatten (bitcast)
    mu, logvar, z = mlz[:, :L], mlz[:, L:2 * L], mlz[:, 2 * L:]
    # TODO(synk): bilinear-interpolate fallback on decoder/input shape mismatch
    # is not needed here (output_padding makes the decoder output size exact).
    return recon, mu, logvar, z


# ----------------------------------------------------------------------------
if __name__ == "__main__":
    cfg = CFG
    key = jax.random.PRNGKey(0)
    kx, keps, kparams = jax.random.split(key, 3)

    x = jax.random.normal(
        kx, (2, cfg['input_channels'], cfg['image_size'], cfg['image_size']),
        jnp.float32)
    eps = jax.random.normal(keps, (2, cfg['latent_dim']), jnp.float32)

    params = init_params(kparams, cfg)
    prep = prepare_params(params, cfg)   # one-time dense lowering / BN folding

    fwd = jax.jit(lambda xin, e: vae_forward(prep, cfg, xin, e))
    recon, mu, logvar, z = fwd(x, eps)
    jax.block_until_ready((recon, mu, logvar, z))

    assert recon.shape == x.shape, (recon.shape, x.shape)
    assert mu.shape == (2, cfg['latent_dim'])
    assert logvar.shape == (2, cfg['latent_dim'])
    assert z.shape == (2, cfg['latent_dim'])
    assert bool(jnp.all(jnp.isfinite(recon)))
    assert bool(jnp.all(jnp.isfinite(z)))
    print("KERNEL_OK")
</pallas_src>

<mosaic_0001>
module attributes {stable_mosaic.version = 11 : i64} {
  func.func @_vae_kernel(%arg0: i32, %arg1: memref<2x1024xf32, #tpu.memory_space<vmem>>, %arg2: memref<2x16xf32, #tpu.memory_space<vmem>>, %arg3: memref<1024x512xbf16, #tpu.memory_space<vmem>>, %arg4: memref<1x512xf32, #tpu.memory_space<vmem>>, %arg5: memref<512x256xbf16, #tpu.memory_space<vmem>>, %arg6: memref<1x256xf32, #tpu.memory_space<vmem>>, %arg7: memref<256x32xbf16, #tpu.memory_space<vmem>>, %arg8: memref<3x32xf32, #tpu.memory_space<vmem>>, %arg9: memref<32x32xbf16, #tpu.memory_space<vmem>>, %arg10: memref<1x32xf32, #tpu.memory_space<vmem>>, %arg11: memref<16x32xbf16, #tpu.memory_space<vmem>>, %arg12: memref<3x32xf32, #tpu.memory_space<vmem>>, %arg13: memref<32x256xbf16, #tpu.memory_space<vmem>>, %arg14: memref<1x256xf32, #tpu.memory_space<vmem>>, %arg15: memref<256x512xbf16, #tpu.memory_space<vmem>>, %arg16: memref<1x512xf32, #tpu.memory_space<vmem>>, %arg17: memref<512x1024xbf16, #tpu.memory_space<vmem>>, %arg18: memref<1x1024xf32, #tpu.memory_space<vmem>>, %arg19: memref<2x1024xf32, #tpu.memory_space<vmem>>, %arg20: memref<2x48xf32, #tpu.memory_space<vmem>>) attributes {dimension_semantics = [#tpu.dimension_semantics<parallel>], iteration_bounds = array<i64: 1>, scalar_prefetch = 0 : i64, scratch_operands = 0 : i64, tpu.core_type = #tpu.core_type<tc>, window_params = [{transform_indices = @transform_0, window_bounds = array<i64: 2, 1024>}, {transform_indices = @transform_1, window_bounds = array<i64: 2, 16>}, {pipeline_mode = #tpu.pipeline_mode<synchronous>, transform_indices = @transform_2, window_bounds = array<i64: 1024, 512>}, {pipeline_mode = #tpu.pipeline_mode<synchronous>, transform_indices = @transform_3, window_bounds = array<i64: 1, 512>}, {pipeline_mode = #tpu.pipeline_mode<synchronous>, transform_indices = @transform_4, window_bounds = array<i64: 512, 256>}, {pipeline_mode = #tpu.pipeline_mode<synchronous>, transform_indices = @transform_5, window_bounds = array<i64: 1, 256>}, {pipeline_mode = #tpu.pipeline_mode<synchronous>, transform_indices = @transform_6, window_bounds = array<i64: 256, 32>}, {pipeline_mode = #tpu.pipeline_mode<synchronous>, transform_indices = @transform_7, window_bounds = array<i64: 3, 32>}, {pipeline_mode = #tpu.pipeline_mode<synchronous>, transform_indices = @transform_8, window_bounds = array<i64: 32, 32>}, {pipeline_mode = #tpu.pipeline_mode<synchronous>, transform_indices = @transform_9, window_bounds = array<i64: 1, 32>}, {pipeline_mode = #tpu.pipeline_mode<synchronous>, transform_indices = @transform_10, window_bounds = array<i64: 16, 32>}, {pipeline_mode = #tpu.pipeline_mode<synchronous>, transform_indices = @transform_11, window_bounds = array<i64: 3, 32>}, {pipeline_mode = #tpu.pipeline_mode<synchronous>, transform_indices = @transform_12, window_bounds = array<i64: 32, 256>}, {pipeline_mode = #tpu.pipeline_mode<synchronous>, transform_indices = @transform_13, window_bounds = array<i64: 1, 256>}, {pipeline_mode = #tpu.pipeline_mode<synchronous>, transform_indices = @transform_14, window_bounds = array<i64: 256, 512>}, {pipeline_mode = #tpu.pipeline_mode<synchronous>, transform_indices = @transform_15, window_bounds = array<i64: 1, 512>}, {pipeline_mode = #tpu.pipeline_mode<synchronous>, transform_indices = @transform_16, window_bounds = array<i64: 512, 1024>}, {pipeline_mode = #tpu.pipeline_mode<synchronous>, transform_indices = @transform_17, window_bounds = array<i64: 1, 1024>}, {transform_indices = @transform_18, window_bounds = array<i64: 2, 1024>}, {transform_indices = @transform_19, window_bounds = array<i64: 2, 48>}]} {
    %c0 = arith.constant 0 : index
    %c0_0 = arith.constant 0 : index
    %0 = vector.load %arg1[%c0, %c0_0] : memref<2x1024xf32, #tpu.memory_space<vmem>>, vector<2x1024xf32>
    %c0_1 = arith.constant 0 : index
    %c0_2 = arith.constant 0 : index
    %1 = vector.load %arg3[%c0_1, %c0_2] : memref<1024x512xbf16, #tpu.memory_space<vmem>>, vector<1024x512xbf16>
    %2 = arith.truncf %0 : vector<2x1024xf32> to vector<2x1024xbf16>
    %cst = arith.constant dense<0.000000e+00> : vector<2x512xf32>
    %3 = tpu.matmul %2, %1, %cst {dimension_numbers = #tpu.dot_dimension_numbers<[1], [0], [0], [1], [0, 0, 1, 1], [], []>} : vector<2x1024xbf16>, vector<1024x512xbf16>, vector<2x512xf32> -> vector<2x512xf32>
    %c0_3 = arith.constant 0 : index
    %c0_4 = arith.constant 0 : index
    %4 = vector.load %arg4[%c0_3, %c0_4] : memref<1x512xf32, #tpu.memory_space<vmem>>, vector<1x512xf32>
    %5 = vector.broadcast %4 : vector<1x512xf32> to vector<2x512xf32>
    %6 = arith.addf %3, %5 : vector<2x512xf32>
    %cst_5 = arith.constant 0.000000e+00 : f32
    %7 = vector.broadcast %cst_5 : f32 to vector<2x512xf32>
    %8 = arith.maximumf %6, %7 : vector<2x512xf32>
    %c0_6 = arith.constant 0 : index
    %c0_7 = arith.constant 0 : index
    %9 = vector.load %arg5[%c0_6, %c0_7] : memref<512x256xbf16, #tpu.memory_space<vmem>>, vector<512x256xbf16>
    %10 = arith.truncf %8 : vector<2x512xf32> to vector<2x512xbf16>
    %cst_8 = arith.constant dense<0.000000e+00> : vector<2x256xf32>
    %11 = tpu.matmul %10, %9, %cst_8 {dimension_numbers = #tpu.dot_dimension_numbers<[1], [0], [0], [1], [0, 0, 1, 1], [], []>} : vector<2x512xbf16>, vector<512x256xbf16>, vector<2x256xf32> -> vector<2x256xf32>
    %c0_9 = arith.constant 0 : index
    %c0_10 = arith.constant 0 : index
    %12 = vector.load %arg6[%c0_9, %c0_10] : memref<1x256xf32, #tpu.memory_space<vmem>>, vector<1x256xf32>
    %13 = vector.broadcast %12 : vector<1x256xf32> to vector<2x256xf32>
    %14 = arith.addf %11, %13 : vector<2x256xf32>
    %cst_11 = arith.constant 0.000000e+00 : f32
    %15 = vector.broadcast %cst_11 : f32 to vector<2x256xf32>
    %16 = arith.maximumf %14, %15 : vector<2x256xf32>
    %c0_12 = arith.constant 0 : index
    %c0_13 = arith.constant 0 : index
    %17 = vector.load %arg8[%c0_12, %c0_13] : memref<3x32xf32, #tpu.memory_space<vmem>>, vector<3x32xf32>
    %c0_14 = arith.constant 0 : index
    %c0_15 = arith.constant 0 : index
    %18 = vector.load %arg7[%c0_14, %c0_15] : memref<256x32xbf16, #tpu.memory_space<vmem>>, vector<256x32xbf16>
    %19 = arith.truncf %16 : vector<2x256xf32> to vector<2x256xbf16>
    %cst_16 = arith.constant dense<0.000000e+00> : vector<2x32xf32>
    %20 = tpu.matmul %19, %18, %cst_16 {dimension_numbers = #tpu.dot_dimension_numbers<[1], [0], [0], [1], [0, 0, 1, 1], [], []>} : vector<2x256xbf16>, vector<256x32xbf16>, vector<2x32xf32> -> vector<2x32xf32>
    %21 = vector.extract_strided_slice %17 {offsets = [0, 0], sizes = [1, 32], strides = [1, 1]} : vector<3x32xf32> to vector<1x32xf32>
    %22 = vector.broadcast %21 : vector<1x32xf32> to vector<2x32xf32>
    %23 = arith.addf %20, %22 : vector<2x32xf32>
    %cst_17 = arith.constant dense<0.000000e+00> : vector<2xf32>
    %24 = vector.multi_reduction <add>, %23, %cst_17 [1] : vector<2x32xf32> to vector<2xf32>
    %25 = vector.shape_cast %24 : vector<2xf32> to vector<2x1xf32>
    %cst_18 = arith.constant 3.200000e+01 : f32
    %26 = vector.broadcast %cst_18 : f32 to vector<2x1xf32>
    %27 = arith.divf %25, %26 : vector<2x1xf32>
    %28 = vector.broadcast %27 : vector<2x1xf32> to vector<2x32xf32>
    %29 = arith.subf %23, %28 : vector<2x32xf32>
    %30 = arith.mulf %29, %29 : vector<2x32xf32>
    %cst_19 = arith.constant dense<0.000000e+00> : vector<2xf32>
    %31 = vector.multi_reduction <add>, %30, %cst_19 [1] : vector<2x32xf32> to vector<2xf32>
    %32 = vector.shape_cast %31 : vector<2xf32> to vector<2x1xf32>
    %cst_20 = arith.constant 3.200000e+01 : f32
    %33 = vector.broadcast %cst_20 : f32 to vector<2x1xf32>
    %34 = arith.divf %32, %33 : vector<2x1xf32>
    %35 = vector.broadcast %27 : vector<2x1xf32> to vector<2x32xf32>
    %36 = arith.subf %23, %35 : vector<2x32xf32>
    %cst_21 = arith.constant 9.99999974E-6 : f32
    %37 = vector.broadcast %cst_21 : f32 to vector<2x1xf32>
    %38 = arith.addf %34, %37 : vector<2x1xf32>
    %39 = math.rsqrt %38 : vector<2x1xf32>
    %40 = vector.broadcast %39 : vector<2x1xf32> to vector<2x32xf32>
    %41 = arith.mulf %36, %40 : vector<2x32xf32>
    %42 = vector.extract_strided_slice %17 {offsets = [1, 0], sizes = [1, 32], strides = [1, 1]} : vector<3x32xf32> to vector<1x32xf32>
    %43 = vector.broadcast %42 : vector<1x32xf32> to vector<2x32xf32>
    %44 = arith.mulf %41, %43 : vector<2x32xf32>
    %45 = vector.extract_strided_slice %17 {offsets = [2, 0], sizes = [1, 32], strides = [1, 1]} : vector<3x32xf32> to vector<1x32xf32>
    %46 = vector.broadcast %45 : vector<1x32xf32> to vector<2x32xf32>
    %47 = arith.addf %44, %46 : vector<2x32xf32>
    %cst_22 = arith.constant 0.000000e+00 : f32
    %48 = vector.broadcast %cst_22 : f32 to vector<2x32xf32>
    %49 = arith.maximumf %47, %48 : vector<2x32xf32>
    %c0_23 = arith.constant 0 : index
    %c0_24 = arith.constant 0 : index
    %50 = vector.load %arg9[%c0_23, %c0_24] : memref<32x32xbf16, #tpu.memory_space<vmem>>, vector<32x32xbf16>
    %51 = arith.truncf %49 : vector<2x32xf32> to vector<2x32xbf16>
    %cst_25 = arith.constant dense<0.000000e+00> : vector<2x32xf32>
    %52 = tpu.matmul %51, %50, %cst_25 {dimension_numbers = #tpu.dot_dimension_numbers<[1], [0], [0], [1], [0, 0, 1, 1], [], []>} : vector<2x32xbf16>, vector<32x32xbf16>, vector<2x32xf32> -> vector<2x32xf32>
    %c0_26 = arith.constant 0 : index
    %c0_27 = arith.constant 0 : index
    %53 = vector.load %arg10[%c0_26, %c0_27] : memref<1x32xf32, #tpu.memory_space<vmem>>, vector<1x32xf32>
    %54 = vector.broadcast %53 : vector<1x32xf32> to vector<2x32xf32>
    %55 = arith.addf %52, %54 : vector<2x32xf32>
    %56 = vector.extract_strided_slice %55 {offsets = [0, 0], sizes = [2, 16], strides = [1, 1]} : vector<2x32xf32> to vector<2x16xf32>
    %57 = vector.extract_strided_slice %55 {offsets = [0, 16], sizes = [2, 16], strides = [1, 1]} : vector<2x32xf32> to vector<2x16xf32>
    %c0_28 = arith.constant 0 : index
    %c0_29 = arith.constant 0 : index
    %58 = vector.load %arg2[%c0_28, %c0_29] : memref<2x16xf32, #tpu.memory_space<vmem>>, vector<2x16xf32>
    %cst_30 = arith.constant 5.000000e-01 : f32
    %59 = vector.broadcast %cst_30 : f32 to vector<2x16xf32>
    %60 = arith.mulf %59, %57 : vector<2x16xf32>
    %61 = math.exp %60 : vector<2x16xf32>
    %62 = arith.mulf %58, %61 : vector<2x16xf32>
    %63 = arith.addf %56, %62 : vector<2x16xf32>
    %c0_31 = arith.constant 0 : index
    %c0_32 = arith.constant 0 : index
    %64 = vector.load %arg20[%c0_31, %c0_32] : memref<2x48xf32, #tpu.memory_space<vmem>>, vector<2x32xf32>
    tpu.vector_store %arg20[%c0_31, %c0_32], %55 {strides = array<i32>} : memref<2x48xf32, #tpu.memory_space<vmem>>, vector<2x32xf32>,
    %c0_33 = arith.constant 0 : index
    %c32 = arith.constant 32 : index
    %65 = vector.load %arg20[%c0_33, %c32] : memref<2x48xf32, #tpu.memory_space<vmem>>, vector<2x16xf32>
    tpu.vector_store %arg20[%c0_33, %c32], %63 {strides = array<i32>} : memref<2x48xf32, #tpu.memory_space<vmem>>, vector<2x16xf32>,
    %c0_34 = arith.constant 0 : index
    %c0_35 = arith.constant 0 : index
    %66 = vector.load %arg12[%c0_34, %c0_35] : memref<3x32xf32, #tpu.memory_space<vmem>>, vector<3x32xf32>
    %c0_36 = arith.constant 0 : index
    %c0_37 = arith.constant 0 : index
    %67 = vector.load %arg11[%c0_36, %c0_37] : memref<16x32xbf16, #tpu.memory_space<vmem>>, vector<16x32xbf16>
    %68 = arith.truncf %63 : vector<2x16xf32> to vector<2x16xbf16>
    %cst_38 = arith.constant dense<0.000000e+00> : vector<2x32xf32>
    %69 = tpu.matmul %68, %67, %cst_38 {dimension_numbers = #tpu.dot_dimension_numbers<[1], [0], [0], [1], [0, 0, 1, 1], [], []>} : vector<2x16xbf16>, vector<16x32xbf16>, vector<2x32xf32> -> vector<2x32xf32>
    %70 = vector.extract_strided_slice %66 {offsets = [0, 0], sizes = [1, 32], strides = [1, 1]} : vector<3x32xf32> to vector<1x32xf32>
    %71 = vector.broadcast %70 : vector<1x32xf32> to vector<2x32xf32>
    %72 = arith.addf %69, %71 : vector<2x32xf32>
    %cst_39 = arith.constant dense<0.000000e+00> : vector<2xf32>
    %73 = vector.multi_reduction <add>, %72, %cst_39 [1] : vector<2x32xf32> to vector<2xf32>
    %74 = vector.shape_cast %73 : vector<2xf32> to vector<2x1xf32>
    %cst_40 = arith.constant 3.200000e+01 : f32
    %75 = vector.broadcast %cst_40 : f32 to vector<2x1xf32>
    %76 = arith.divf %74, %75 : vector<2x1xf32>
    %77 = vector.broadcast %76 : vector<2x1xf32> to vector<2x32xf32>
    %78 = arith.subf %72, %77 : vector<2x32xf32>
    %79 = arith.mulf %78, %78 : vector<2x32xf32>
    %cst_41 = arith.constant dense<0.000000e+00> : vector<2xf32>
    %80 = vector.multi_reduction <add>, %79, %cst_41 [1] : vector<2x32xf32> to vector<2xf32>
    %81 = vector.shape_cast %80 : vector<2xf32> to vector<2x1xf32>
    %cst_42 = arith.constant 3.200000e+01 : f32
    %82 = vector.broadcast %cst_42 : f32 to vector<2x1xf32>
    %83 = arith.divf %81, %82 : vector<2x1xf32>
    %84 = vector.broadcast %76 : vector<2x1xf32> to vector<2x32xf32>
    %85 = arith.subf %72, %84 : vector<2x32xf32>
    %cst_43 = arith.constant 9.99999974E-6 : f32
    %86 = vector.broadcast %cst_43 : f32 to vector<2x1xf32>
    %87 = arith.addf %83, %86 : vector<2x1xf32>
    %88 = math.rsqrt %87 : vector<2x1xf32>
    %89 = vector.broadcast %88 : vector<2x1xf32> to vector<2x32xf32>
    %90 = arith.mulf %85, %89 : vector<2x32xf32>
    %91 = vector.extract_strided_slice %66 {offsets = [1, 0], sizes = [1, 32], strides = [1, 1]} : vector<3x32xf32> to vector<1x32xf32>
    %92 = vector.broadcast %91 : vector<1x32xf32> to vector<2x32xf32>
    %93 = arith.mulf %90, %92 : vector<2x32xf32>
    %94 = vector.extract_strided_slice %66 {offsets = [2, 0], sizes = [1, 32], strides = [1, 1]} : vector<3x32xf32> to vector<1x32xf32>
    %95 = vector.broadcast %94 : vector<1x32xf32> to vector<2x32xf32>
    %96 = arith.addf %93, %95 : vector<2x32xf32>
    %cst_44 = arith.constant 0.000000e+00 : f32
    %97 = vector.broadcast %cst_44 : f32 to vector<2x32xf32>
    %98 = arith.maximumf %96, %97 : vector<2x32xf32>
    %c0_45 = arith.constant 0 : index
    %c0_46 = arith.constant 0 : index
    %99 = vector.load %arg13[%c0_45, %c0_46] : memref<32x256xbf16, #tpu.memory_space<vmem>>, vector<32x256xbf16>
    %100 = arith.truncf %98 : vector<2x32xf32> to vector<2x32xbf16>
    %cst_47 = arith.constant dense<0.000000e+00> : vector<2x256xf32>
    %101 = tpu.matmul %100, %99, %cst_47 {dimension_numbers = #tpu.dot_dimension_numbers<[1], [0], [0], [1], [0, 0, 1, 1], [], []>} : vector<2x32xbf16>, vector<32x256xbf16>, vector<2x256xf32> -> vector<2x256xf32>
    %c0_48 = arith.constant 0 : index
    %c0_49 = arith.constant 0 : index
    %102 = vector.load %arg14[%c0_48, %c0_49] : memref<1x256xf32, #tpu.memory_space<vmem>>, vector<1x256xf32>
    %103 = vector.broadcast %102 : vector<1x256xf32> to vector<2x256xf32>
    %104 = arith.addf %101, %103 : vector<2x256xf32>
    %c0_50 = arith.constant 0 : index
    %c0_51 = arith.constant 0 : index
    %105 = vector.load %arg15[%c0_50, %c0_51] : memref<256x512xbf16, #tpu.memory_space<vmem>>, vector<256x512xbf16>
    %106 = arith.truncf %104 : vector<2x256xf32> to vector<2x256xbf16>
    %cst_52 = arith.constant dense<0.000000e+00> : vector<2x512xf32>
    %107 = tpu.matmul %106, %105, %cst_52 {dimension_numbers = #tpu.dot_dimension_numbers<[1], [0], [0], [1], [0, 0, 1, 1], [], []>} : vector<2x256xbf16>, vector<256x512xbf16>, vector<2x512xf32> -> vector<2x512xf32>
    %c0_53 = arith.constant 0 : index
    %c0_54 = arith.constant 0 : index
    %108 = vector.load %arg16[%c0_53, %c0_54] : memref<1x512xf32, #tpu.memory_space<vmem>>, vector<1x512xf32>
    %109 = vector.broadcast %108 : vector<1x512xf32> to vector<2x512xf32>
    %110 = arith.addf %107, %109 : vector<2x512xf32>
    %cst_55 = arith.constant 0.000000e+00 : f32
    %111 = vector.broadcast %cst_55 : f32 to vector<2x512xf32>
    %112 = arith.maximumf %110, %111 : vector<2x512xf32>
    %c0_56 = arith.constant 0 : index
    %c0_57 = arith.constant 0 : index
    %113 = vector.load %arg17[%c0_56, %c0_57] : memref<512x1024xbf16, #tpu.memory_space<vmem>>, vector<512x1024xbf16>
    %114 = arith.truncf %112 : vector<2x512xf32> to vector<2x512xbf16>
    %cst_58 = arith.constant dense<0.000000e+00> : vector<2x1024xf32>
    %115 = tpu.matmul %114, %113, %cst_58 {dimension_numbers = #tpu.dot_dimension_numbers<[1], [0], [0], [1], [0, 0, 1, 1], [], []>} : vector<2x512xbf16>, vector<512x1024xbf16>, vector<2x1024xf32> -> vector<2x1024xf32>
    %c0_59 = arith.constant 0 : index
    %c0_60 = arith.constant 0 : index
    %116 = vector.load %arg18[%c0_59, %c0_60] : memref<1x1024xf32, #tpu.memory_space<vmem>>, vector<1x1024xf32>
    %117 = vector.broadcast %116 : vector<1x1024xf32> to vector<2x1024xf32>
    %118 = arith.addf %115, %117 : vector<2x1024xf32>
    %119 = arith.negf %118 : vector<2x1024xf32>
    %120 = math.exp %119 : vector<2x1024xf32>
    %cst_61 = arith.constant 1.000000e+00 : f32
    %121 = vector.broadcast %cst_61 : f32 to vector<2x1024xf32>
    %122 = arith.addf %121, %120 : vector<2x1024xf32>
    %123 = arith.divf %121, %122 : vector<2x1024xf32>
    %c0_62 = arith.constant 0 : index
    %c0_63 = arith.constant 0 : index
    %124 = vector.load %arg19[%c0_62, %c0_63] : memref<2x1024xf32, #tpu.memory_space<vmem>>, vector<2x1024xf32>
    tpu.vector_store %arg19[%c0_62, %c0_63], %123 {strides = array<i32>} : memref<2x1024xf32, #tpu.memory_space<vmem>>, vector<2x1024xf32>,
    return
  }
  func.func @transform_0(%arg0: i32) -> (i32, i32) {
    %c0_i32 = arith.constant 0 : i32
    %c0_i32_0 = arith.constant 0 : i32
    return %arg0, %c0_i32 : i32, i32
  }
  func.func @transform_1(%arg0: i32) -> (i32, i32) {
    %c0_i32 = arith.constant 0 : i32
    %c0_i32_0 = arith.constant 0 : i32
    return %arg0, %c0_i32 : i32, i32
  }
  func.func @transform_2(%arg0: i32) -> (i32, i32) {
    %c0_i32 = arith.constant 0 : i32
    %c0_i32_0 = arith.constant 0 : i32
    %c0_i32_1 = arith.constant 0 : i32
    return %c0_i32, %c0_i32_0 : i32, i32
  }
  func.func @transform_3(%arg0: i32) -> (i32, i32) {
    %c0_i32 = arith.constant 0 : i32
    %c0_i32_0 = arith.constant 0 : i32
    %c0_i32_1 = arith.constant 0 : i32
    return %c0_i32, %c0_i32_0 : i32, i32
  }
  func.func @transform_4(%arg0: i32) -> (i32, i32) {
    %c0_i32 = arith.constant 0 : i32
    %c0_i32_0 = arith.constant 0 : i32
    %c0_i32_1 = arith.constant 0 : i32
    return %c0_i32, %c0_i32_0 : i32, i32
  }
  func.func @transform_5(%arg0: i32) -> (i32, i32) {
    %c0_i32 = arith.constant 0 : i32
    %c0_i32_0 = arith.constant 0 : i32
    %c0_i32_1 = arith.constant 0 : i32
    return %c0_i32, %c0_i32_0 : i32, i32
  }
  func.func @transform_6(%arg0: i32) -> (i32, i32) {
    %c0_i32 = arith.constant 0 : i32
    %c0_i32_0 = arith.constant 0 : i32
    %c0_i32_1 = arith.constant 0 : i32
    return %c0_i32, %c0_i32_0 : i32, i32
  }
  func.func @transform_7(%arg0: i32) -> (i32, i32) {
    %c0_i32 = arith.constant 0 : i32
    %c0_i32_0 = arith.constant 0 : i32
    %c0_i32_1 = arith.constant 0 : i32
    return %c0_i32, %c0_i32_0 : i32, i32
  }
  func.func @transform_8(%arg0: i32) -> (i32, i32) {
    %c0_i32 = arith.constant 0 : i32
    %c0_i32_0 = arith.constant 0 : i32
    %c0_i32_1 = arith.constant 0 : i32
    return %c0_i32, %c0_i32_0 : i32, i32
  }
  func.func @transform_9(%arg0: i32) -> (i32, i32) {
    %c0_i32 = arith.constant 0 : i32
    %c0_i32_0 = arith.constant 0 : i32
    %c0_i32_1 = arith.constant 0 : i32
    return %c0_i32, %c0_i32_0 : i32, i32
  }
  func.func @transform_10(%arg0: i32) -> (i32, i32) {
    %c0_i32 = arith.constant 0 : i32
    %c0_i32_0 = arith.constant 0 : i32
    %c0_i32_1 = arith.constant 0 : i32
    return %c0_i32, %c0_i32_0 : i32, i32
  }
  func.func @transform_11(%arg0: i32) -> (i32, i32) {
    %c0_i32 = arith.constant 0 : i32
    %c0_i32_0 = arith.constant 0 : i32
    %c0_i32_1 = arith.constant 0 : i32
    return %c0_i32, %c0_i32_0 : i32, i32
  }
  func.func @transform_12(%arg0: i32) -> (i32, i32) {
    %c0_i32 = arith.constant 0 : i32
    %c0_i32_0 = arith.constant 0 : i32
    %c0_i32_1 = arith.constant 0 : i32
    return %c0_i32, %c0_i32_0 : i32, i32
  }
  func.func @transform_13(%arg0: i32) -> (i32, i32) {
    %c0_i32 = arith.constant 0 : i32
    %c0_i32_0 = arith.constant 0 : i32
    %c0_i32_1 = arith.constant 0 : i32
    return %c0_i32, %c0_i32_0 : i32, i32
  }
  func.func @transform_14(%arg0: i32) -> (i32, i32) {
    %c0_i32 = arith.constant 0 : i32
    %c0_i32_0 = arith.constant 0 : i32
    %c0_i32_1 = arith.constant 0 : i32
    return %c0_i32, %c0_i32_0 : i32, i32
  }
  func.func @transform_15(%arg0: i32) -> (i32, i32) {
    %c0_i32 = arith.constant 0 : i32
    %c0_i32_0 = arith.constant 0 : i32
    %c0_i32_1 = arith.constant 0 : i32
    return %c0_i32, %c0_i32_0 : i32, i32
  }
  func.func @transform_16(%arg0: i32) -> (i32, i32) {
    %c0_i32 = arith.constant 0 : i32
    %c0_i32_0 = arith.constant 0 : i32
    %c0_i32_1 = arith.constant 0 : i32
    return %c0_i32, %c0_i32_0 : i32, i32
  }
  func.func @transform_17(%arg0: i32) -> (i32, i32) {
    %c0_i32 = arith.constant 0 : i32
    %c0_i32_0 = arith.constant 0 : i32
    %c0_i32_1 = arith.constant 0 : i32
    return %c0_i32, %c0_i32_0 : i32, i32
  }
  func.func @transform_18(%arg0: i32) -> (i32, i32) {
    %c0_i32 = arith.constant 0 : i32
    %c0_i32_0 = arith.constant 0 : i32
    return %arg0, %c0_i32 : i32, i32
  }
  func.func @transform_19(%arg0: i32) -> (i32, i32) {
    %c0_i32 = arith.constant 0 : i32
    %c0_i32_0 = arith.constant 0 : i32
    return %arg0, %c0_i32 : i32, i32
  }
}

</mosaic_0001>

<bundles_post_ra>
// kernel: _lambda_.1
= control target key start
LH: loop header
LB: loop body
LE: loop exit
PB: predicated region body
PF: predicated region fallthrough
CT: control target
= control target key end

     0   :  { %v6866_v36 = vmov 1983009808   ;;  %v326_v38 = vlaneseq  ;;  %vm2665_vm0 = vcmask 254976   ;;  %vm6868_vm1 = vmmov 0   ;;  %s9154_s2 = inlined_call_operand.vmem [shape: bf16[1024,512], index: 2, kind: input, shape index: {}]   ;;  %s9155_s0 = inlined_call_operand.vmem [shape: f32[2,1024], index: 0, kind: input, shape index: {}]   ;;  %s9156_s4 = inlined_call_operand.vmem [shape: bf16[512,256], index: 4, kind: input, shape index: {}]   ;;  %s9157_s6 = inlined_call_operand.vmem [shape: bf16[256,32], index: 6, kind: input, shape index: {}]   ;;  %s9158_s3 = inlined_call_operand.vmem [shape: f32[1,512], index: 3, kind: input, shape index: {}]   ;;  %s9159_s5 = inlined_call_operand.vmem [shape: f32[1,256], index: 5, kind: input, shape index: {}]   ;;  %s9160_s7 = inlined_call_operand.vmem [shape: f32[3,32], index: 7, kind: input, shape index: {}]   ;;  %s9161_s8 = inlined_call_operand.vmem [shape: bf16[32,32], index: 8, kind: input, shape index: {}]   ;;  %s9162_s10 = inlined_call_operand.vmem [shape: bf16[16,32], index: 10, kind: input, shape index: {}]   ;;  %s9163_s9 = inlined_call_operand.vmem [shape: f32[1,32], index: 9, kind: input, shape index: {}]   ;;  %s9164_s19 = inlined_call_operand.vmem [shape: f32[2,48], index: 19, kind: output, shape index: {1}]   ;;  %s9165_s1 = inlined_call_operand.vmem [shape: f32[2,16], index: 1, kind: input, shape index: {}]   ;;  %s9166_s11 = inlined_call_operand.vmem [shape: f32[3,32], index: 11, kind: input, shape index: {}]   ;;  %s9167_s12 = inlined_call_operand.vmem [shape: bf16[32,256], index: 12, kind: input, shape index: {}]   ;;  %s9168_s14 = inlined_call_operand.vmem [shape: bf16[256,512], index: 14, kind: input, shape index: {}]   ;;  %s9169_s16 = inlined_call_operand.vmem [shape: bf16[512,1024], index: 16, kind: input, shape index: {}]   ;;  %s9170_s13 = inlined_call_operand.vmem [shape: f32[1,256], index: 13, kind: input, shape index: {}]   ;;  %s9171_s15 = inlined_call_operand.vmem [shape: f32[1,512], index: 15, kind: input, shape index: {}]   ;;  %s9172_s17 = inlined_call_operand.vmem [shape: f32[1,1024], index: 17, kind: input, shape index: {}]   ;;  %s9173_s18 = inlined_call_operand.vmem [shape: f32[2,1024], index: 18, kind: output, shape index: {0}]  }
   0x1   :  { %9178 = sst [smem:[#allocation2_spill]] %s9154_s2  ;;  %v324_v37 = vunpack.c.l.s4 %v6866_v36  ;;  %vm2715_vm2 = vcmask 261120   ;;  %vm2790_vm3 = vcmask 130048   ;;  %vm2774_vm4 = vcmask 386304  }
   0x2   :  { %9179 = sst [smem:[#allocation3_spill]] %s9155_s0  ;;  %s9182_s20 = sld [smem:[#allocation2_spill]]  ;;  %v7089_v43 = vshrl.u32 %v326_v38, 7 }
   0x3   :  { %9180 = sst [smem:[#allocation4_spill]] %s9156_s4  ;;  %v325_v42 = vunpack.c.0.s8 %v324_v37  ;;  %s9183_s26 = sld [smem:[#allocation3_spill]] }
   0x4   :  { %9181 = sst [smem:[#allocation5_spill]] %s9157_s6  ;;  %s9184_s29 = sld [smem:[#allocation4_spill]] }
   0x5   :  { %v7107_v49 = vsub.s32 %v325_v42, %v7089_v43  ;;  %s9185_s28 = sld [smem:[#allocation5_spill]] }
   0x8   :  { %v6225_v0 = vld [vmem:[%s9182_s20 + $0x4] ss:$16 sps:$4 sm:$0xff]   ;;  %v6227_v1 = vld [vmem:[%s9182_s20 + $0xc] ss:$16 sps:$4 sm:$0xff]   ;;  %v6229_v2 = vld [vmem:[%s9182_s20] ss:$16 sps:$4 sm:$0xff]  }
   0x9   :  { %1674 = vmatprep.subr.bf16.mxu0 %v6225_v0  ;;  %v6230_v3 = vld [vmem:[%s9182_s20 + $0x8] ss:$16 sps:$4 sm:$0xff]   ;;  %1838 = vmatprep.subr.bf16.mxu1 %v6227_v1  ;;  %v6231_v4 = vld [vmem:[%s9182_s20 + $0x24] ss:$16 sps:$4 sm:$0xff]   ;;  %v6233_v5 = vld [vmem:[%s9182_s20 + $0x2c] ss:$16 sps:$4 sm:$0xff]  }
   0xa   :  { %1675 = vmatpush1.bf16.msra.mxu0 %v6229_v2  ;;  %1839 = vmatpush1.bf16.msra.mxu1 %v6230_v3  ;;  %v6235_v6 = vld [vmem:[%s9182_s20 + $0x20] ss:$16 sps:$4 sm:$0xff]   ;;  %v6236_v7 = vld [vmem:[%s9182_s20 + $0x28] ss:$16 sps:$4 sm:$0xff]   ;;  %v6237_v8 = vld [vmem:[%s9182_s20 + $0x44] ss:$16 sps:$4 sm:$0xff]  }
   0xb   :  { %1676 = vmatprep.subr.bf16.mxu0 %v6231_v4  ;;  %1840 = vmatprep.subr.bf16.mxu1 %v6233_v5  ;;  %v6239_v9 = vld [vmem:[%s9182_s20 + $0x4c] ss:$16 sps:$4 sm:$0xff]   ;;  %v6241_v10 = vld [vmem:[%s9182_s20 + $0x40] ss:$16 sps:$4 sm:$0xff]   ;;  %v6242_v11 = vld [vmem:[%s9182_s20 + $0x48] ss:$16 sps:$4 sm:$0xff]  }
   0xc   :  { %v6243_v12 = vld [vmem:[%s9182_s20 + $0x64] ss:$16 sps:$4 sm:$0xff]   ;;  %v6245_v13 = vld [vmem:[%s9182_s20 + $0x6c] ss:$16 sps:$4 sm:$0xff]   ;;  %v6247_v14 = vld [vmem:[%s9182_s20 + $0x60] ss:$16 sps:$4 sm:$0xff]  }
   0xd   :  { %v6248_v15 = vld [vmem:[%s9182_s20 + $0x68] ss:$16 sps:$4 sm:$0xff]   ;;  %v6249_v16 = vld [vmem:[%s9182_s20 + $0x84] ss:$16 sps:$4 sm:$0xff]   ;;  %v6251_v17 = vld [vmem:[%s9182_s20 + $0x8c] ss:$16 sps:$4 sm:$0xff]  }
   0xe   :  { %1677 = vmatpush1.bf16.msra.mxu0 %v6235_v6  ;;  %1841 = vmatpush1.bf16.msra.mxu1 %v6236_v7  ;;  %v6253_v18 = vld [vmem:[%s9182_s20 + $0x80] ss:$16 sps:$4 sm:$0xff]   ;;  %v6254_v19 = vld [vmem:[%s9182_s20 + $0x88] ss:$16 sps:$4 sm:$0xff]   ;;  %v6255_v20 = vld [vmem:[%s9182_s20 + $0xa4] ss:$16 sps:$4 sm:$0xff]  }
   0xf   :  { %1678 = vmatprep.subr.bf16.mxu0 %v6237_v8  ;;  %1842 = vmatprep.subr.bf16.mxu1 %v6239_v9  ;;  %v6257_v21 = vld [vmem:[%s9182_s20 + $0xac] ss:$16 sps:$4 sm:$0xff]   ;;  %v6259_v22 = vld [vmem:[%s9182_s20 + $0xa0] ss:$16 sps:$4 sm:$0xff]   ;;  %v6260_v23 = vld [vmem:[%s9182_s20 + $0xa8] ss:$16 sps:$4 sm:$0xff]  }
  0x10   :  { %v6261_v24 = vld [vmem:[%s9182_s20 + $0xc4] ss:$16 sps:$4 sm:$0xff]   ;;  %v6263_v25 = vld [vmem:[%s9182_s20 + $0xcc] ss:$16 sps:$4 sm:$0xff]   ;;  %v6265_v26 = vld [vmem:[%s9182_s20 + $0xc0] ss:$16 sps:$4 sm:$0xff]  }
  0x11   :  { %v6266_v27 = vld [vmem:[%s9182_s20 + $0xc8] ss:$16 sps:$4 sm:$0xff]   ;;  %v6267_v28 = vld [vmem:[%s9182_s20 + $0xe4] ss:$16 sps:$4 sm:$0xff]   ;;  %v6269_v29 = vld [vmem:[%s9182_s20 + $0xec] ss:$16 sps:$4 sm:$0xff]  }
  0x12   :  { %1679 = vmatpush1.bf16.msra.mxu0 %v6241_v10  ;;  %1843 = vmatpush1.bf16.msra.mxu1 %v6242_v11  ;;  %v6271_v30 = vld [vmem:[%s9182_s20 + $0xe0] ss:$16 sps:$4 sm:$0xff]   ;;  %v6272_v31 = vld [vmem:[%s9182_s20 + $0xe8] ss:$16 sps:$4 sm:$0xff]   ;;  %v6273_v32 = vld [vmem:[%s9182_s20 + $0x104] ss:$16 sps:$4 sm:$0xff]  }
  0x13   :  { %1680 = vmatprep.subr.bf16.mxu0 %v6243_v12  ;;  %1844 = vmatprep.subr.bf16.mxu1 %v6245_v13  ;;  %v6275_v33 = vld [vmem:[%s9182_s20 + $0x10c] ss:$16 sps:$4 sm:$0xff]   ;;  %v6277_v34 = vld [vmem:[%s9182_s20 + $0x100] ss:$16 sps:$4 sm:$0xff]   ;;  %v6278_v35 = vld [vmem:[%s9182_s20 + $0x108] ss:$16 sps:$4 sm:$0xff]  }
  0x14   :  { %v6279_v39 = vld [vmem:[%s9182_s20 + $0x124] ss:$16 sps:$4 sm:$0xff]   ;;  %v6281_v40 = vld [vmem:[%s9182_s20 + $0x12c] ss:$16 sps:$4 sm:$0xff]   ;;  %v6283_v41 = vld [vmem:[%s9182_s20 + $0x120] ss:$16 sps:$4 sm:$0xff]  }
  0x15   :  { %v6284_v44 = vld [vmem:[%s9182_s20 + $0x128] ss:$16 sps:$4 sm:$0xff]   ;;  %v6285_v45 = vld [vmem:[%s9182_s20 + $0x144] ss:$16 sps:$4 sm:$0xff]   ;;  %v6287_v46 = vld [vmem:[%s9182_s20 + $0x14c] ss:$16 sps:$4 sm:$0xff]  }
  0x16   :  { %1681 = vmatpush1.bf16.msra.mxu0 %v6247_v14  ;;  %1845 = vmatpush1.bf16.msra.mxu1 %v6248_v15  ;;  %v6289_v47 = vld [vmem:[%s9182_s20 + $0x140] ss:$16 sps:$4 sm:$0xff]   ;;  %v6290_v48 = vld [vmem:[%s9182_s20 + $0x148] ss:$16 sps:$4 sm:$0xff]   ;;  %v6291_v50 = vld [vmem:[%s9182_s20 + $0x164] ss:$16 sps:$4 sm:$0xff]  }
  0x17   :  { %1682 = vmatprep.subr.bf16.mxu0 %v6249_v16  ;;  %1846 = vmatprep.subr.bf16.mxu1 %v6251_v17  ;;  %v6293_v51 = vld [vmem:[%s9182_s20 + $0x16c] ss:$16 sps:$4 sm:$0xff]   ;;  %v62_v52 = vld [vmem:[%s9183_s26] sm:$0xff]  ;;  %v6296_v55 = vld [vmem:[%s9182_s20 + $0x168] ss:$16 sps:$4 sm:$0xff]  }
  0x18   :  { %v329_v53 = vrot.slane %v62_v52, %v7107_v49  ;;  %v6295_v54 = vld [vmem:[%s9182_s20 + $0x160] ss:$16 sps:$4 sm:$0xff]   ;;  %v6297_v56 = vld [vmem:[%s9182_s20 + $0x184] ss:$16 sps:$4 sm:$0xff]   ;;  %v6299_v57 = vld [vmem:[%s9182_s20 + $0x18c] ss:$16 sps:$4 sm:$0xff]   ;;  %v322_v4 = vcombine.high %v62_v52, %v62_v52 }
  0x19   :  { %v6301_v60 = vld [vmem:[%s9182_s20 + $0x180] ss:$16 sps:$4 sm:$0xff]   ;;  %v6302_v61 = vld [vmem:[%s9182_s20 + $0x188] ss:$16 sps:$4 sm:$0xff]   ;;  %v6303_v62 = vld [vmem:[%s9182_s20 + $0x1a4] ss:$16 sps:$4 sm:$0xff]  }
  0x1a   :  { %1683 = vmatpush1.bf16.msra.mxu0 %v6253_v18  ;;  %1847 = vmatpush1.bf16.msra.mxu1 %v6254_v19  ;;  %v337_v58 = vcombine.high %v329_v53, %v329_v53  ;;  %v6305_v63 = vld [vmem:[%s9182_s20 + $0x1ac] ss:$16 sps:$4 sm:$0xff]   ;;  %v6307_v0 = vld [vmem:[%s9182_s20 + $0x1a0] ss:$16 sps:$4 sm:$0xff]   ;;  %v6308_v1 = vld [vmem:[%s9182_s20 + $0x1a8] ss:$16 sps:$4 sm:$0xff]   ;;  %v7168_v9 = vrot.slane %v322_v4, %v7107_v49  ;;  %v364_v15 = vpack.c.bf16 %v329_v53, %v329_v53 }
  0x1b   :  { %1684 = vmatprep.subr.bf16.mxu0 %v6255_v20  ;;  %1848 = vmatprep.subr.bf16.mxu1 %v6257_v21  ;;  %v6309_v2 = vld [vmem:[%s9182_s20 + $0x1c4] ss:$16 sps:$4 sm:$0xff]   ;;  %v6311_v3 = vld [vmem:[%s9182_s20 + $0x1cc] ss:$16 sps:$4 sm:$0xff]   ;;  %v6313_v5 = vld [vmem:[%s9182_s20 + $0x1c0] ss:$16 sps:$4 sm:$0xff]  }
  0x1c   :  { %v365_v59 = vpack.c.bf16 %v337_v58, %v337_v58  ;;  %v6314_v6 = vld [vmem:[%s9182_s20 + $0x1c8] ss:$16 sps:$4 sm:$0xff]   ;;  %v6315_v7 = vld [vmem:[%s9182_s20 + $0x1e4] ss:$16 sps:$4 sm:$0xff]   ;;  %v6317_v8 = vld [vmem:[%s9182_s20 + $0x1ec] ss:$16 sps:$4 sm:$0xff]   ;;  %v338_v14 = vcombine.high %v7168_v9, %v7168_v9 }
  0x1d   :  { %v6319_v10 = vld [vmem:[%s9182_s20 + $0x1e0] ss:$16 sps:$4 sm:$0xff]   ;;  %v6320_v11 = vld [vmem:[%s9182_s20 + $0x1e8] ss:$16 sps:$4 sm:$0xff]   ;;  %v6325_v12 = vld [vmem:[%s9182_s20 + $0x204] ss:$16 sps:$4 sm:$0xff]  }
  0x1e   :  { %1685 = vmatpush1.bf16.msra.mxu0 %v6259_v22  ;;  %1849 = vmatpush1.bf16.msra.mxu1 %v6260_v23  ;;  %v6328_v13 = vld [vmem:[%s9182_s20 + $0x20c] ss:$16 sps:$4 sm:$0xff]   ;;  %v6323_v16 = vld [vmem:[%s9182_s20 + $0x200] ss:$16 sps:$4 sm:$0xff]   ;;  %v6326_v17 = vld [vmem:[%s9182_s20 + $0x208] ss:$16 sps:$4 sm:$0xff]   ;;  %v367_v20 = vpack.c.bf16 %v338_v14, %v338_v14 }
  0x1f   :  { %1686 = vmatprep.subr.bf16.mxu0 %v6261_v24  ;;  %1850 = vmatprep.subr.bf16.mxu1 %v6263_v25  ;;  %v6331_v18 = vld [vmem:[%s9182_s20 + $0x224] ss:$16 sps:$4 sm:$0xff]   ;;  %v6334_v19 = vld [vmem:[%s9182_s20 + $0x22c] ss:$16 sps:$4 sm:$0xff]   ;;  %v6329_v21 = vld [vmem:[%s9182_s20 + $0x220] ss:$16 sps:$4 sm:$0xff]  }
  0x20   :  { %1706 = vmatprep.mubr.bf16.mxu0 %v365_v59  ;;  %1870 = vmatprep.mubr.bf16.mxu1 %v365_v59  ;;  %v6332_v22 = vld [vmem:[%s9182_s20 + $0x228] ss:$16 sps:$4 sm:$0xff]   ;;  %v6337_v23 = vld [vmem:[%s9182_s20 + $0x244] ss:$16 sps:$4 sm:$0xff]   ;;  %v6340_v24 = vld [vmem:[%s9182_s20 + $0x24c] ss:$16 sps:$4 sm:$0xff]  }
  0x21   :  { %v6335_v25 = vld [vmem:[%s9182_s20 + $0x240] ss:$16 sps:$4 sm:$0xff]   ;;  %v6358_v36 = vld [vmem:[%s9182_s20 + $0x2ac] ss:$16 sps:$4 sm:$0xff]   ;;  %v6356_v38 = vld [vmem:[%s9182_s20 + $0x2a8] ss:$16 sps:$4 sm:$0xff]  }
  0x22   :  { %1687 = vmatpush1.bf16.msra.mxu0 %v6265_v26  ;;  %1851 = vmatpush1.bf16.msra.mxu1 %v6266_v27  ;;  %v6338_v26 = vld [vmem:[%s9182_s20 + $0x248] ss:$16 sps:$4 sm:$0xff]   ;;  %v6343_v27 = vld [vmem:[%s9182_s20 + $0x264] ss:$16 sps:$4 sm:$0xff]   ;;  %v6353_v37 = vld [vmem:[%s9182_s20 + $0x2a0] ss:$16 sps:$4 sm:$0xff]  }
  0x23   :  { %1688 = vmatprep.subr.bf16.mxu0 %v6267_v28  ;;  %1852 = vmatprep.subr.bf16.mxu1 %v6269_v29  ;;  %v6346_v28 = vld [vmem:[%s9182_s20 + $0x26c] ss:$16 sps:$4 sm:$0xff]   ;;  %v6341_v29 = vld [vmem:[%s9182_s20 + $0x260] ss:$16 sps:$4 sm:$0xff]   ;;  %v6362_v42 = vld [vmem:[%s9182_s20 + $0x2c8] ss:$16 sps:$4 sm:$0xff]  }
  0x24   :  { %v6374_v52 = vld [vmem:[%s9182_s20 + $0x308] ss:$16 sps:$4 sm:$0xff]   ;;  %v6379_v53 = vld [vmem:[%s9182_s20 + $0x324] ss:$16 sps:$4 sm:$0xff]   ;;  %v6388_v58 = vld [vmem:[%s9182_s20 + $0x34c] ss:$16 sps:$4 sm:$0xff]  }
  0x25   :  { %v6383_v59 = vld [vmem:[%s9182_s20 + $0x340] ss:$16 sps:$4 sm:$0xff]   ;;  %v6398_v4 = vld [vmem:[%s9182_s20 + $0x388] ss:$16 sps:$4 sm:$0xff]  }
  0x26   :  { %1689 = vmatpush1.bf16.msra.mxu0 %v6271_v30  ;;  %1853 = vmatpush1.bf16.msra.mxu1 %v6272_v31  ;;  %v6344_v30 = vld [vmem:[%s9182_s20 + $0x268] ss:$16 sps:$4 sm:$0xff]   ;;  %v6349_v31 = vld [vmem:[%s9182_s20 + $0x284] ss:$16 sps:$4 sm:$0xff]  }
  0x27   :  { %1690 = vmatprep.subr.bf16.mxu0 %v6273_v32  ;;  %1854 = vmatprep.subr.bf16.mxu1 %v6275_v33  ;;  %v6352_v32 = vld [vmem:[%s9182_s20 + $0x28c] ss:$16 sps:$4 sm:$0xff]   ;;  %v6347_v33 = vld [vmem:[%s9182_s20 + $0x280] ss:$16 sps:$4 sm:$0xff]   ;;  %v6410_v14 = vld [vmem:[%s9182_s20 + $0x3c8] ss:$16 sps:$4 sm:$0xff]  }
  0x2a   :  { %1691 = vmatpush1.bf16.msra.mxu0 %v6277_v34  ;;  %1855 = vmatpush1.bf16.msra.mxu1 %v6278_v35  ;;  %v6350_v34 = vld [vmem:[%s9182_s20 + $0x288] ss:$16 sps:$4 sm:$0xff]   ;;  %v6355_v35 = vld [vmem:[%s9182_s20 + $0x2a4] ss:$16 sps:$4 sm:$0xff]  }
  0x2b   :  { %1692 = vmatprep.subr.bf16.mxu0 %v6279_v39  ;;  %1856 = vmatprep.subr.bf16.mxu1 %v6281_v40  ;;  %v6361_v39 = vld [vmem:[%s9182_s20 + $0x2c4] ss:$16 sps:$4 sm:$0xff]   ;;  %v6364_v40 = vld [vmem:[%s9182_s20 + $0x2cc] ss:$16 sps:$4 sm:$0xff]  }
  0x2e   :  { %1693 = vmatpush1.bf16.msra.mxu0 %v6283_v41  ;;  %1857 = vmatpush1.bf16.msra.mxu1 %v6284_v44  ;;  %v6359_v41 = vld [vmem:[%s9182_s20 + $0x2c0] ss:$16 sps:$4 sm:$0xff]   ;;  %v6367_v44 = vld [vmem:[%s9182_s20 + $0x2e4] ss:$16 sps:$4 sm:$0xff]  }
  0x2f   :  { %1694 = vmatprep.subr.bf16.mxu0 %v6285_v45  ;;  %1858 = vmatprep.subr.bf16.mxu1 %v6287_v46  ;;  %v6370_v45 = vld [vmem:[%s9182_s20 + $0x2ec] ss:$16 sps:$4 sm:$0xff]   ;;  %v6365_v46 = vld [vmem:[%s9182_s20 + $0x2e0] ss:$16 sps:$4 sm:$0xff]  }
  0x32   :  { %1695 = vmatpush1.bf16.msra.mxu0 %v6289_v47  ;;  %1859 = vmatpush1.bf16.msra.mxu1 %v6290_v48  ;;  %v6368_v47 = vld [vmem:[%s9182_s20 + $0x2e8] ss:$16 sps:$4 sm:$0xff]   ;;  %v6373_v48 = vld [vmem:[%s9182_s20 + $0x304] ss:$16 sps:$4 sm:$0xff]  }
  0x33   :  { %1696 = vmatprep.subr.bf16.mxu0 %v6291_v50  ;;  %1860 = vmatprep.subr.bf16.mxu1 %v6293_v51  ;;  %v6376_v50 = vld [vmem:[%s9182_s20 + $0x30c] ss:$16 sps:$4 sm:$0xff]   ;;  %v6371_v51 = vld [vmem:[%s9182_s20 + $0x300] ss:$16 sps:$4 sm:$0xff]  }
  0x36   :  { %1697 = vmatpush1.bf16.msra.mxu0 %v6295_v54  ;;  %1861 = vmatpush1.bf16.msra.mxu1 %v6296_v55  ;;  %v6382_v54 = vld [vmem:[%s9182_s20 + $0x32c] ss:$16 sps:$4 sm:$0xff]   ;;  %v6377_v55 = vld [vmem:[%s9182_s20 + $0x320] ss:$16 sps:$4 sm:$0xff]  }
  0x37   :  { %1698 = vmatprep.subr.bf16.mxu0 %v6297_v56  ;;  %1862 = vmatprep.subr.bf16.mxu1 %v6299_v57  ;;  %v6380_v56 = vld [vmem:[%s9182_s20 + $0x328] ss:$16 sps:$4 sm:$0xff]   ;;  %v6385_v57 = vld [vmem:[%s9182_s20 + $0x344] ss:$16 sps:$4 sm:$0xff]  }
  0x3a   :  { %1699 = vmatpush1.bf16.msra.mxu0 %v6301_v60  ;;  %1863 = vmatpush1.bf16.msra.mxu1 %v6302_v61  ;;  %v6386_v60 = vld [vmem:[%s9182_s20 + $0x348] ss:$16 sps:$4 sm:$0xff]   ;;  %v6391_v61 = vld [vmem:[%s9182_s20 + $0x364] ss:$16 sps:$4 sm:$0xff]  }
  0x3b   :  { %1700 = vmatprep.subr.bf16.mxu0 %v6303_v62  ;;  %1864 = vmatprep.subr.bf16.mxu1 %v6305_v63  ;;  %v6394_v62 = vld [vmem:[%s9182_s20 + $0x36c] ss:$16 sps:$4 sm:$0xff]   ;;  %v6389_v63 = vld [vmem:[%s9182_s20 + $0x360] ss:$16 sps:$4 sm:$0xff]  }
  0x3e   :  { %1701 = vmatpush1.bf16.msra.mxu0 %v6307_v0  ;;  %1865 = vmatpush1.bf16.msra.mxu1 %v6308_v1  ;;  %v6392_v0 = vld [vmem:[%s9182_s20 + $0x368] ss:$16 sps:$4 sm:$0xff]   ;;  %v6397_v1 = vld [vmem:[%s9182_s20 + $0x384] ss:$16 sps:$4 sm:$0xff]  }
  0x3f   :  { %1702 = vmatprep.subr.bf16.mxu0 %v6309_v2  ;;  %1866 = vmatprep.subr.bf16.mxu1 %v6311_v3  ;;  %v6400_v2 = vld [vmem:[%s9182_s20 + $0x38c] ss:$16 sps:$4 sm:$0xff]   ;;  %v6395_v3 = vld [vmem:[%s9182_s20 + $0x380] ss:$16 sps:$4 sm:$0xff]  }
  0x42   :  { %1703 = vmatpush1.bf16.msra.mxu0 %v6313_v5  ;;  %1867 = vmatpush1.bf16.msra.mxu1 %v6314_v6  ;;  %v6403_v5 = vld [vmem:[%s9182_s20 + $0x3a4] ss:$16 sps:$4 sm:$0xff]   ;;  %v6406_v6 = vld [vmem:[%s9182_s20 + $0x3ac] ss:$16 sps:$4 sm:$0xff]  }
  0x43   :  { %1704 = vmatprep.subr.bf16.mxu0 %v6315_v7  ;;  %1868 = vmatprep.subr.bf16.mxu1 %v6317_v8  ;;  %v6401_v7 = vld [vmem:[%s9182_s20 + $0x3a0] ss:$16 sps:$4 sm:$0xff]   ;;  %v6404_v8 = vld [vmem:[%s9182_s20 + $0x3a8] ss:$16 sps:$4 sm:$0xff]  }
  0x46   :  { %1705 = vmatpush1.bf16.msra.mxu0 %v6319_v10  ;;  %1869 = vmatpush1.bf16.msra.mxu1 %v6320_v11  ;;  %v6409_v10 = vld [vmem:[%s9182_s20 + $0x3c4] ss:$16 sps:$4 sm:$0xff]   ;;  %v6412_v11 = vld [vmem:[%s9182_s20 + $0x3cc] ss:$16 sps:$4 sm:$0xff]  }
  0x47   :  { %1715 = vmatprep.subr.bf16.mxu0 %v6325_v12  ;;  %1879 = vmatprep.subr.bf16.mxu1 %v6328_v13  ;;  %v7355_v12 = vld [vmem:[%s9183_s26 + $0x8] sm:$0xff]  ;;  %v6407_v13 = vld [vmem:[%s9182_s20 + $0x3c0] ss:$16 sps:$4 sm:$0xff]  }
  0x49   :  { %1707 = vmatmul.mubr.bf16.vlgmr.msra.gmra.mrb[0].mxu0 %v364_v15  ;;  %1871 = vmatmul.mubr.bf16.vlgmr.msra.gmra.mrb[0].mxu1 %v364_v15  ;;  %v6415_v15 = vld [vmem:[%s9182_s20 + $0x3e4] ss:$16 sps:$4 sm:$0xff]  }
  0x4a   :  { %1716 = vmatpush1.bf16.msra.mxu0 %v6323_v16  ;;  %1880 = vmatpush1.bf16.msra.mxu1 %v6326_v17  ;;  %v6418_v16 = vld [vmem:[%s9182_s20 + $0x3ec] ss:$16 sps:$4 sm:$0xff]   ;;  %v7371_v17 = vrot.slane %v7355_v12, %v7107_v49 }
  0x4b   :  { %1717 = vmatprep.subr.bf16.mxu0 %v6331_v18  ;;  %1881 = vmatprep.subr.bf16.mxu1 %v6334_v19  ;;  %v6413_v18 = vld [vmem:[%s9182_s20 + $0x3e0] ss:$16 sps:$4 sm:$0xff]   ;;  %v6416_v19 = vld [vmem:[%s9182_s20 + $0x3e8] ss:$16 sps:$4 sm:$0xff]  }
  0x4c   :  { %1747 = vmatprep.mubr.bf16.mxu0 %v367_v20  ;;  %1911 = vmatprep.mubr.bf16.mxu1 %v367_v20  ;;  %v6421_v20 = vld [vmem:[%s9182_s20 + $0x404] ss:$16 sps:$4 sm:$0xff]  }
  0x4e   :  { %1718 = vmatpush1.bf16.msra.mxu0 %v6329_v21  ;;  %1882 = vmatpush1.bf16.msra.mxu1 %v6332_v22  ;;  %v6424_v21 = vld [vmem:[%s9182_s20 + $0x40c] ss:$16 sps:$4 sm:$0xff]   ;;  %v354_v22 = vcombine.high %v7371_v17, %v7371_v17 }
  0x4f   :  { %1719 = vmatprep.subr.bf16.mxu0 %v6337_v23  ;;  %1883 = vmatprep.subr.bf16.mxu1 %v6340_v24  ;;  %v366_v23 = vpack.c.bf16 %v7168_v9, %v7168_v9  ;;  %v6419_v24 = vld [vmem:[%s9182_s20 + $0x400] ss:$16 sps:$4 sm:$0xff]   ;;  %v6430_v9 = vld [vmem:[%s9182_s20 + $0x42c] ss:$16 sps:$4 sm:$0xff]  }
  0x52   :  { %1720 = vmatpush1.bf16.msra.mxu0 %v6335_v25  ;;  %1884 = vmatpush1.bf16.msra.mxu1 %v6338_v26  ;;  %v6422_v25 = vld [vmem:[%s9182_s20 + $0x408] ss:$16 sps:$4 sm:$0xff]   ;;  %v6427_v26 = vld [vmem:[%s9182_s20 + $0x424] ss:$16 sps:$4 sm:$0xff]  }
  0x53   :  { %1721 = vmatprep.subr.bf16.mxu0 %v6343_v27  ;;  %1885 = vmatprep.subr.bf16.mxu1 %v6346_v28  ;;  %v369_v27 = vpack.c.bf16 %v354_v22, %v354_v22  ;;  %v6425_v28 = vld [vmem:[%s9182_s20 + $0x420] ss:$16 sps:$4 sm:$0xff]  }
  0x54   :  { %v6503_v22 = vld [vmem:[%s9182_s20 + $0x5c0] ss:$16 sps:$4 sm:$0xff]  }
  0x56   :  { %1722 = vmatpush1.bf16.msra.mxu0 %v6341_v29  ;;  %1886 = vmatpush1.bf16.msra.mxu1 %v6344_v30  ;;  %v6428_v29 = vld [vmem:[%s9182_s20 + $0x428] ss:$16 sps:$4 sm:$0xff]   ;;  %v6433_v30 = vld [vmem:[%s9182_s20 + $0x444] ss:$16 sps:$4 sm:$0xff]  }
  0x57   :  { %1723 = vmatprep.subr.bf16.mxu0 %v6349_v31  ;;  %1887 = vmatprep.subr.bf16.mxu1 %v6352_v32  ;;  %v6436_v31 = vld [vmem:[%s9182_s20 + $0x44c] ss:$16 sps:$4 sm:$0xff]   ;;  %v6431_v32 = vld [vmem:[%s9182_s20 + $0x440] ss:$16 sps:$4 sm:$0xff]  }
  0x5a   :  { %1724 = vmatpush1.bf16.msra.mxu0 %v6347_v33  ;;  %1888 = vmatpush1.bf16.msra.mxu1 %v6350_v34  ;;  %v6434_v33 = vld [vmem:[%s9182_s20 + $0x448] ss:$16 sps:$4 sm:$0xff]   ;;  %v6439_v34 = vld [vmem:[%s9182_s20 + $0x464] ss:$16 sps:$4 sm:$0xff]  }
  0x5b   :  { %1725 = vmatprep.subr.bf16.mxu0 %v6355_v35  ;;  %1889 = vmatprep.subr.bf16.mxu1 %v6358_v36  ;;  %v6442_v35 = vld [vmem:[%s9182_s20 + $0x46c] ss:$16 sps:$4 sm:$0xff]   ;;  %v6437_v36 = vld [vmem:[%s9182_s20 + $0x460] ss:$16 sps:$4 sm:$0xff]  }
  0x5e   :  { %1726 = vmatpush1.bf16.msra.mxu0 %v6353_v37  ;;  %1890 = vmatpush1.bf16.msra.mxu1 %v6356_v38  ;;  %v6440_v37 = vld [vmem:[%s9182_s20 + $0x468] ss:$16 sps:$4 sm:$0xff]   ;;  %v6445_v38 = vld [vmem:[%s9182_s20 + $0x484] ss:$16 sps:$4 sm:$0xff]  }
  0x5f   :  { %1727 = vmatprep.subr.bf16.mxu0 %v6361_v39  ;;  %1891 = vmatprep.subr.bf16.mxu1 %v6364_v40  ;;  %v6448_v39 = vld [vmem:[%s9182_s20 + $0x48c] ss:$16 sps:$4 sm:$0xff]   ;;  %v6443_v40 = vld [vmem:[%s9182_s20 + $0x480] ss:$16 sps:$4 sm:$0xff]  }
  0x62   :  { %1728 = vmatpush1.bf16.msra.mxu0 %v6359_v41  ;;  %1892 = vmatpush1.bf16.msra.mxu1 %v6362_v42  ;;  %v6446_v41 = vld [vmem:[%s9182_s20 + $0x488] ss:$16 sps:$4 sm:$0xff]   ;;  %v6451_v42 = vld [vmem:[%s9182_s20 + $0x4a4] ss:$16 sps:$4 sm:$0xff]  }
  0x63   :  { %1729 = vmatprep.subr.bf16.mxu0 %v6367_v44  ;;  %1893 = vmatprep.subr.bf16.mxu1 %v6370_v45  ;;  %v6454_v44 = vld [vmem:[%s9182_s20 + $0x4ac] ss:$16 sps:$4 sm:$0xff]   ;;  %v6449_v45 = vld [vmem:[%s9182_s20 + $0x4a0] ss:$16 sps:$4 sm:$0xff]  }
  0x66   :  { %1730 = vmatpush1.bf16.msra.mxu0 %v6365_v46  ;;  %1894 = vmatpush1.bf16.msra.mxu1 %v6368_v47  ;;  %v6452_v46 = vld [vmem:[%s9182_s20 + $0x4a8] ss:$16 sps:$4 sm:$0xff]   ;;  %v6457_v47 = vld [vmem:[%s9182_s20 + $0x4c4] ss:$16 sps:$4 sm:$0xff]  }
  0x67   :  { %1731 = vmatprep.subr.bf16.mxu0 %v6373_v48  ;;  %1895 = vmatprep.subr.bf16.mxu1 %v6376_v50  ;;  %v6460_v48 = vld [vmem:[%s9182_s20 + $0x4cc] ss:$16 sps:$4 sm:$0xff]   ;;  %v6455_v50 = vld [vmem:[%s9182_s20 + $0x4c0] ss:$16 sps:$4 sm:$0xff]  }
  0x6a   :  { %1732 = vmatpush1.bf16.msra.mxu0 %v6371_v51  ;;  %1896 = vmatpush1.bf16.msra.mxu1 %v6374_v52  ;;  %v6458_v51 = vld [vmem:[%s9182_s20 + $0x4c8] ss:$16 sps:$4 sm:$0xff]   ;;  %v6463_v52 = vld [vmem:[%s9182_s20 + $0x4e4] ss:$16 sps:$4 sm:$0xff]  }
  0x6b   :  { %1733 = vmatprep.subr.bf16.mxu0 %v6379_v53  ;;  %1897 = vmatprep.subr.bf16.mxu1 %v6382_v54  ;;  %v6466_v53 = vld [vmem:[%s9182_s20 + $0x4ec] ss:$16 sps:$4 sm:$0xff]   ;;  %v6461_v54 = vld [vmem:[%s9182_s20 + $0x4e0] ss:$16 sps:$4 sm:$0xff]  }
  0x6e   :  { %1734 = vmatpush1.bf16.msra.mxu0 %v6377_v55  ;;  %1898 = vmatpush1.bf16.msra.mxu1 %v6380_v56  ;;  %v6464_v55 = vld [vmem:[%s9182_s20 + $0x4e8] ss:$16 sps:$4 sm:$0xff]   ;;  %v6469_v56 = vld [vmem:[%s9182_s20 + $0x504] ss:$16 sps:$4 sm:$0xff]  }
  0x6f   :  { %1735 = vmatprep.subr.bf16.mxu0 %v6385_v57  ;;  %1899 = vmatprep.subr.bf16.mxu1 %v6388_v58  ;;  %v6472_v57 = vld [vmem:[%s9182_s20 + $0x50c] ss:$16 sps:$4 sm:$0xff]   ;;  %v6467_v58 = vld [vmem:[%s9182_s20 + $0x500] ss:$16 sps:$4 sm:$0xff]  }
  0x72   :  { %1736 = vmatpush1.bf16.msra.mxu0 %v6383_v59  ;;  %1900 = vmatpush1.bf16.msra.mxu1 %v6386_v60  ;;  %v6470_v59 = vld [vmem:[%s9182_s20 + $0x508] ss:$16 sps:$4 sm:$0xff]   ;;  %v6475_v60 = vld [vmem:[%s9182_s20 + $0x524] ss:$16 sps:$4 sm:$0xff]  }
  0x73   :  { %1737 = vmatprep.subr.bf16.mxu0 %v6391_v61  ;;  %1901 = vmatprep.subr.bf16.mxu1 %v6394_v62  ;;  %v6478_v61 = vld [vmem:[%s9182_s20 + $0x52c] ss:$16 sps:$4 sm:$0xff]   ;;  %v6473_v62 = vld [vmem:[%s9182_s20 + $0x520] ss:$16 sps:$4 sm:$0xff]  }
  0x76   :  { %1738 = vmatpush1.bf16.msra.mxu0 %v6389_v63  ;;  %1902 = vmatpush1.bf16.msra.mxu1 %v6392_v0  ;;  %v6476_v63 = vld [vmem:[%s9182_s20 + $0x528] ss:$16 sps:$4 sm:$0xff]   ;;  %v6481_v0 = vld [vmem:[%s9182_s20 + $0x544] ss:$16 sps:$4 sm:$0xff]  }
  0x77   :  { %1739 = vmatprep.subr.bf16.mxu0 %v6397_v1  ;;  %1903 = vmatprep.subr.bf16.mxu1 %v6400_v2  ;;  %v6484_v1 = vld [vmem:[%s9182_s20 + $0x54c] ss:$16 sps:$4 sm:$0xff]   ;;  %v6479_v2 = vld [vmem:[%s9182_s20 + $0x540] ss:$16 sps:$4 sm:$0xff]  }
  0x7a   :  { %1740 = vmatpush1.bf16.msra.mxu0 %v6395_v3  ;;  %1904 = vmatpush1.bf16.msra.mxu1 %v6398_v4  ;;  %v6482_v3 = vld [vmem:[%s9182_s20 + $0x548] ss:$16 sps:$4 sm:$0xff]   ;;  %v6487_v4 = vld [vmem:[%s9182_s20 + $0x564] ss:$16 sps:$4 sm:$0xff]  }
  0x7b   :  { %1741 = vmatprep.subr.bf16.mxu0 %v6403_v5  ;;  %1905 = vmatprep.subr.bf16.mxu1 %v6406_v6  ;;  %v6490_v5 = vld [vmem:[%s9182_s20 + $0x56c] ss:$16 sps:$4 sm:$0xff]   ;;  %v6485_v6 = vld [vmem:[%s9182_s20 + $0x560] ss:$16 sps:$4 sm:$0xff]  }
  0x7e   :  { %1742 = vmatpush1.bf16.msra.mxu0 %v6401_v7  ;;  %1906 = vmatpush1.bf16.msra.mxu1 %v6404_v8  ;;  %v6488_v7 = vld [vmem:[%s9182_s20 + $0x568] ss:$16 sps:$4 sm:$0xff]   ;;  %v6493_v8 = vld [vmem:[%s9182_s20 + $0x584] ss:$16 sps:$4 sm:$0xff]  }
  0x7f   :  { %1743 = vmatprep.subr.bf16.mxu0 %v6409_v10  ;;  %1907 = vmatprep.subr.bf16.mxu1 %v6412_v11  ;;  %v6496_v10 = vld [vmem:[%s9182_s20 + $0x58c] ss:$16 sps:$4 sm:$0xff]   ;;  %v6491_v11 = vld [vmem:[%s9182_s20 + $0x580] ss:$16 sps:$4 sm:$0xff]  }
  0x82   :  { %1744 = vmatpush1.bf16.msra.mxu0 %v6407_v13  ;;  %1908 = vmatpush1.bf16.msra.mxu1 %v6410_v14  ;;  %v6494_v13 = vld [vmem:[%s9182_s20 + $0x588] ss:$16 sps:$4 sm:$0xff]   ;;  %v6499_v14 = vld [vmem:[%s9182_s20 + $0x5a4] ss:$16 sps:$4 sm:$0xff]  }
  0x83   :  { %1745 = vmatprep.subr.bf16.mxu0 %v6415_v15  ;;  %1909 = vmatprep.subr.bf16.mxu1 %v6418_v16  ;;  %v6502_v15 = vld [vmem:[%s9182_s20 + $0x5ac] ss:$16 sps:$4 sm:$0xff]   ;;  %v6497_v16 = vld [vmem:[%s9182_s20 + $0x5a0] ss:$16 sps:$4 sm:$0xff]  }
  0x86   :  { %1746 = vmatpush1.bf16.msra.mxu0 %v6413_v18  ;;  %1910 = vmatpush1.bf16.msra.mxu1 %v6416_v19  ;;  %v6500_v18 = vld [vmem:[%s9182_s20 + $0x5a8] ss:$16 sps:$4 sm:$0xff]   ;;  %v6505_v19 = vld [vmem:[%s9182_s20 + $0x5c4] ss:$16 sps:$4 sm:$0xff]  }
  0x87   :  { %1756 = vmatprep.subr.bf16.mxu0 %v6421_v20  ;;  %1920 = vmatprep.subr.bf16.mxu1 %v6424_v21  ;;  %v6508_v20 = vld [vmem:[%s9182_s20 + $0x5cc] ss:$16 sps:$4 sm:$0xff]   ;;  %v339_v21 = vcombine.high %v7355_v12, %v7355_v12 }
  0x88   :  { %v6514_v12 = vld [vmem:[%s9182_s20 + $0x5ec] ss:$16 sps:$4 sm:$0xff]  }
  0x89   :  { %1748 = vmatmul.mubr.bf16.vlgmr.msra.gmra.mrb[0].mxu0 %v366_v23  ;;  %1912 = vmatmul.mubr.bf16.vlgmr.msra.gmra.mrb[0].mxu1 %v366_v23  ;;  %v6506_v23 = vld [vmem:[%s9182_s20 + $0x5c8] ss:$16 sps:$4 sm:$0xff]  }
  0x8a   :  { %1757 = vmatpush1.bf16.msra.mxu0 %v6419_v24  ;;  %1921 = vmatpush1.bf16.msra.mxu1 %v6422_v25  ;;  %v6511_v24 = vld [vmem:[%s9182_s20 + $0x5e4] ss:$16 sps:$4 sm:$0xff]   ;;  %v7572_v25 = vrot.slane %v339_v21, %v7107_v49  ;;  %v6590_v21 = vld [vmem:[%s9182_s20 + $0x788] ss:$16 sps:$4 sm:$0xff]  }
  0x8b   :  { %1758 = vmatprep.subr.bf16.mxu0 %v6427_v26  ;;  %1922 = vmatprep.subr.bf16.mxu1 %v6430_v9  ;;  %v6509_v26 = vld [vmem:[%s9182_s20 + $0x5e0] ss:$16 sps:$4 sm:$0xff]   ;;  %v6512_v9 = vld [vmem:[%s9182_s20 + $0x5e8] ss:$16 sps:$4 sm:$0xff]  }
  0x8c   :  { %1788 = vmatprep.mubr.bf16.mxu0 %v369_v27  ;;  %1952 = vmatprep.mubr.bf16.mxu1 %v369_v27  ;;  %v6517_v27 = vld [vmem:[%s9182_s20 + $0x604] ss:$16 sps:$4 sm:$0xff]  }
  0x8e   :  { %1759 = vmatpush1.bf16.msra.mxu0 %v6425_v28  ;;  %1923 = vmatpush1.bf16.msra.mxu1 %v6428_v29  ;;  %v6520_v28 = vld [vmem:[%s9182_s20 + $0x60c] ss:$16 sps:$4 sm:$0xff]   ;;  %v6515_v29 = vld [vmem:[%s9182_s20 + $0x600] ss:$16 sps:$4 sm:$0xff]  }
  0x8f   :  { %1760 = vmatprep.subr.bf16.mxu0 %v6433_v30  ;;  %1924 = vmatprep.subr.bf16.mxu1 %v6436_v31  ;;  %v6518_v30 = vld [vmem:[%s9182_s20 + $0x608] ss:$16 sps:$4 sm:$0xff]   ;;  %v355_v31 = vcombine.high %v7572_v25, %v7572_v25 }
  0x92   :  { %1761 = vmatpush1.bf16.msra.mxu0 %v6431_v32  ;;  %1925 = vmatpush1.bf16.msra.mxu1 %v6434_v33  ;;  %v368_v32 = vpack.c.bf16 %v7371_v17, %v7371_v17  ;;  %v6523_v33 = vld [vmem:[%s9182_s20 + $0x624] ss:$16 sps:$4 sm:$0xff]   ;;  %v6524_v17 = vld [vmem:[%s9182_s20 + $0x628] ss:$16 sps:$4 sm:$0xff]  }
  0x93   :  { %1762 = vmatprep.subr.bf16.mxu0 %v6439_v34  ;;  %1926 = vmatprep.subr.bf16.mxu1 %v6442_v35  ;;  %v6526_v34 = vld [vmem:[%s9182_s20 + $0x62c] ss:$16 sps:$4 sm:$0xff]   ;;  %v6521_v35 = vld [vmem:[%s9182_s20 + $0x620] ss:$16 sps:$4 sm:$0xff]  }
  0x96   :  { %1763 = vmatpush1.bf16.msra.mxu0 %v6437_v36  ;;  %1927 = vmatpush1.bf16.msra.mxu1 %v6440_v37  ;;  %v371_v36 = vpack.c.bf16 %v355_v31, %v355_v31  ;;  %v6529_v37 = vld [vmem:[%s9182_s20 + $0x644] ss:$16 sps:$4 sm:$0xff]   ;;  %v6605_v31 = vld [vmem:[%s9182_s20 + $0x7e0] ss:$16 sps:$4 sm:$0xff]  }
  0x97   :  { %1764 = vmatprep.subr.bf16.mxu0 %v6445_v38  ;;  %1928 = vmatprep.subr.bf16.mxu1 %v6448_v39  ;;  %v6532_v38 = vld [vmem:[%s9182_s20 + $0x64c] ss:$16 sps:$4 sm:$0xff]   ;;  %v6527_v39 = vld [vmem:[%s9182_s20 + $0x640] ss:$16 sps:$4 sm:$0xff]  }
  0x9a   :  { %1765 = vmatpush1.bf16.msra.mxu0 %v6443_v40  ;;  %1929 = vmatpush1.bf16.msra.mxu1 %v6446_v41  ;;  %v6530_v40 = vld [vmem:[%s9182_s20 + $0x648] ss:$16 sps:$4 sm:$0xff]   ;;  %v6535_v41 = vld [vmem:[%s9182_s20 + $0x664] ss:$16 sps:$4 sm:$0xff]  }
  0x9b   :  { %1766 = vmatprep.subr.bf16.mxu0 %v6451_v42  ;;  %1930 = vmatprep.subr.bf16.mxu1 %v6454_v44  ;;  %v6538_v42 = vld [vmem:[%s9182_s20 + $0x66c] ss:$16 sps:$4 sm:$0xff]   ;;  %v6533_v44 = vld [vmem:[%s9182_s20 + $0x660] ss:$16 sps:$4 sm:$0xff]  }
  0x9e   :  { %1767 = vmatpush1.bf16.msra.mxu0 %v6449_v45  ;;  %1931 = vmatpush1.bf16.msra.mxu1 %v6452_v46  ;;  %v6536_v45 = vld [vmem:[%s9182_s20 + $0x668] ss:$16 sps:$4 sm:$0xff]   ;;  %v6541_v46 = vld [vmem:[%s9182_s20 + $0x684] ss:$16 sps:$4 sm:$0xff]  }
  0x9f   :  { %1768 = vmatprep.subr.bf16.mxu0 %v6457_v47  ;;  %1932 = vmatprep.subr.bf16.mxu1 %v6460_v48  ;;  %v6544_v47 = vld [vmem:[%s9182_s20 + $0x68c] ss:$16 sps:$4 sm:$0xff]   ;;  %v6539_v48 = vld [vmem:[%s9182_s20 + $0x680] ss:$16 sps:$4 sm:$0xff]  }
  0xa2   :  { %1769 = vmatpush1.bf16.msra.mxu0 %v6455_v50  ;;  %1933 = vmatpush1.bf16.msra.mxu1 %v6458_v51  ;;  %v6542_v50 = vld [vmem:[%s9182_s20 + $0x688] ss:$16 sps:$4 sm:$0xff]   ;;  %v6547_v51 = vld [vmem:[%s9182_s20 + $0x6a4] ss:$16 sps:$4 sm:$0xff]  }
  0xa3   :  { %1770 = vmatprep.subr.bf16.mxu0 %v6463_v52  ;;  %1934 = vmatprep.subr.bf16.mxu1 %v6466_v53  ;;  %v6550_v52 = vld [vmem:[%s9182_s20 + $0x6ac] ss:$16 sps:$4 sm:$0xff]   ;;  %v6545_v53 = vld [vmem:[%s9182_s20 + $0x6a0] ss:$16 sps:$4 sm:$0xff]  }
  0xa6   :  { %1771 = vmatpush1.bf16.msra.mxu0 %v6461_v54  ;;  %1935 = vmatpush1.bf16.msra.mxu1 %v6464_v55  ;;  %v6548_v54 = vld [vmem:[%s9182_s20 + $0x6a8] ss:$16 sps:$4 sm:$0xff]   ;;  %v6553_v55 = vld [vmem:[%s9182_s20 + $0x6c4] ss:$16 sps:$4 sm:$0xff]  }
  0xa7   :  { %1772 = vmatprep.subr.bf16.mxu0 %v6469_v56  ;;  %1936 = vmatprep.subr.bf16.mxu1 %v6472_v57  ;;  %v6556_v56 = vld [vmem:[%s9182_s20 + $0x6cc] ss:$16 sps:$4 sm:$0xff]   ;;  %v6551_v57 = vld [vmem:[%s9182_s20 + $0x6c0] ss:$16 sps:$4 sm:$0xff]  }
  0xaa   :  { %1773 = vmatpush1.bf16.msra.mxu0 %v6467_v58  ;;  %1937 = vmatpush1.bf16.msra.mxu1 %v6470_v59  ;;  %v6554_v58 = vld [vmem:[%s9182_s20 + $0x6c8] ss:$16 sps:$4 sm:$0xff]   ;;  %v6559_v59 = vld [vmem:[%s9182_s20 + $0x6e4] ss:$16 sps:$4 sm:$0xff]  }
  0xab   :  { %1774 = vmatprep.subr.bf16.mxu0 %v6475_v60  ;;  %1938 = vmatprep.subr.bf16.mxu1 %v6478_v61  ;;  %v6562_v60 = vld [vmem:[%s9182_s20 + $0x6ec] ss:$16 sps:$4 sm:$0xff]   ;;  %v6557_v61 = vld [vmem:[%s9182_s20 + $0x6e0] ss:$16 sps:$4 sm:$0xff]  }
  0xae   :  { %1775 = vmatpush1.bf16.msra.mxu0 %v6473_v62  ;;  %1939 = vmatpush1.bf16.msra.mxu1 %v6476_v63  ;;  %v6560_v62 = vld [vmem:[%s9182_s20 + $0x6e8] ss:$16 sps:$4 sm:$0xff]   ;;  %v6565_v63 = vld [vmem:[%s9182_s20 + $0x704] ss:$16 sps:$4 sm:$0xff]  }
  0xaf   :  { %1776 = vmatprep.subr.bf16.mxu0 %v6481_v0  ;;  %1940 = vmatprep.subr.bf16.mxu1 %v6484_v1  ;;  %v6568_v0 = vld [vmem:[%s9182_s20 + $0x70c] ss:$16 sps:$4 sm:$0xff]   ;;  %v6563_v1 = vld [vmem:[%s9182_s20 + $0x700] ss:$16 sps:$4 sm:$0xff]  }
  0xb2   :  { %1777 = vmatpush1.bf16.msra.mxu0 %v6479_v2  ;;  %1941 = vmatpush1.bf16.msra.mxu1 %v6482_v3  ;;  %v6566_v2 = vld [vmem:[%s9182_s20 + $0x708] ss:$16 sps:$4 sm:$0xff]   ;;  %v6571_v3 = vld [vmem:[%s9182_s20 + $0x724] ss:$16 sps:$4 sm:$0xff]  }
  0xb3   :  { %1778 = vmatprep.subr.bf16.mxu0 %v6487_v4  ;;  %1942 = vmatprep.subr.bf16.mxu1 %v6490_v5  ;;  %v6574_v4 = vld [vmem:[%s9182_s20 + $0x72c] ss:$16 sps:$4 sm:$0xff]   ;;  %v6569_v5 = vld [vmem:[%s9182_s20 + $0x720] ss:$16 sps:$4 sm:$0xff]  }
  0xb6   :  { %1779 = vmatpush1.bf16.msra.mxu0 %v6485_v6  ;;  %1943 = vmatpush1.bf16.msra.mxu1 %v6488_v7  ;;  %v6572_v6 = vld [vmem:[%s9182_s20 + $0x728] ss:$16 sps:$4 sm:$0xff]   ;;  %v6577_v7 = vld [vmem:[%s9182_s20 + $0x744] ss:$16 sps:$4 sm:$0xff]  }
  0xb7   :  { %1780 = vmatprep.subr.bf16.mxu0 %v6493_v8  ;;  %1944 = vmatprep.subr.bf16.mxu1 %v6496_v10  ;;  %v6580_v8 = vld [vmem:[%s9182_s20 + $0x74c] ss:$16 sps:$4 sm:$0xff]   ;;  %v6575_v10 = vld [vmem:[%s9182_s20 + $0x740] ss:$16 sps:$4 sm:$0xff]  }
  0xba   :  { %1781 = vmatpush1.bf16.msra.mxu0 %v6491_v11  ;;  %1945 = vmatpush1.bf16.msra.mxu1 %v6494_v13  ;;  %v6578_v11 = vld [vmem:[%s9182_s20 + $0x748] ss:$16 sps:$4 sm:$0xff]   ;;  %v6583_v13 = vld [vmem:[%s9182_s20 + $0x764] ss:$16 sps:$4 sm:$0xff]  }
  0xbb   :  { %1782 = vmatprep.subr.bf16.mxu0 %v6499_v14  ;;  %1946 = vmatprep.subr.bf16.mxu1 %v6502_v15  ;;  %v6586_v14 = vld [vmem:[%s9182_s20 + $0x76c] ss:$16 sps:$4 sm:$0xff]   ;;  %v6581_v15 = vld [vmem:[%s9182_s20 + $0x760] ss:$16 sps:$4 sm:$0xff]  }
  0xbe   :  { %1783 = vmatpush1.bf16.msra.mxu0 %v6497_v16  ;;  %1947 = vmatpush1.bf16.msra.mxu1 %v6500_v18  ;;  %v6584_v16 = vld [vmem:[%s9182_s20 + $0x768] ss:$16 sps:$4 sm:$0xff]   ;;  %v6589_v18 = vld [vmem:[%s9182_s20 + $0x784] ss:$16 sps:$4 sm:$0xff]  }
  0xbf   :  { %1784 = vmatprep.subr.bf16.mxu0 %v6505_v19  ;;  %1948 = vmatprep.subr.bf16.mxu1 %v6508_v20  ;;  %v6592_v19 = vld [vmem:[%s9182_s20 + $0x78c] ss:$16 sps:$4 sm:$0xff]   ;;  %v6587_v20 = vld [vmem:[%s9182_s20 + $0x780] ss:$16 sps:$4 sm:$0xff]  }
  0xc2   :  { %1785 = vmatpush1.bf16.msra.mxu0 %v6503_v22  ;;  %1949 = vmatpush1.bf16.msra.mxu1 %v6506_v23  ;;  %v6595_v22 = vld [vmem:[%s9182_s20 + $0x7a4] ss:$16 sps:$4 sm:$0xff]   ;;  %v6598_v23 = vld [vmem:[%s9182_s20 + $0x7ac] ss:$16 sps:$4 sm:$0xff]  }
  0xc3   :  { %1786 = vmatprep.subr.bf16.mxu0 %v6511_v24  ;;  %1950 = vmatprep.subr.bf16.mxu1 %v6514_v12  ;;  %v6593_v24 = vld [vmem:[%s9182_s20 + $0x7a0] ss:$16 sps:$4 sm:$0xff]   ;;  %v6596_v12 = vld [vmem:[%s9182_s20 + $0x7a8] ss:$16 sps:$4 sm:$0xff]  }
  0xc6   :  { %1787 = vmatpush1.bf16.msra.mxu0 %v6509_v26  ;;  %1951 = vmatpush1.bf16.msra.mxu1 %v6512_v9  ;;  %v6601_v26 = vld [vmem:[%s9182_s20 + $0x7c4] ss:$16 sps:$4 sm:$0xff]   ;;  %v6604_v9 = vld [vmem:[%s9182_s20 + $0x7cc] ss:$16 sps:$4 sm:$0xff]  }
  0xc7   :  { %1797 = vmatprep.subr.bf16.mxu0 %v6517_v27  ;;  %1961 = vmatprep.subr.bf16.mxu1 %v6520_v28  ;;  %v6599_v27 = vld [vmem:[%s9182_s20 + $0x7c0] ss:$16 sps:$4 sm:$0xff]   ;;  %v6602_v28 = vld [vmem:[%s9182_s20 + $0x7c8] ss:$16 sps:$4 sm:$0xff]  }
  0xc9   :  { %1789 = vmatmul.mubr.bf16.vlgmr.msra.gmra.mrb[0].mxu0 %v368_v32  ;;  %1953 = vmatmul.mubr.bf16.vlgmr.msra.gmra.mrb[0].mxu1 %v368_v32  ;;  %v6608_v32 = vld [vmem:[%s9182_s20 + $0x7e8] ss:$16 sps:$4 sm:$0xff]  }
  0xca   :  { %1798 = vmatpush1.bf16.msra.mxu0 %v6515_v29  ;;  %1962 = vmatpush1.bf16.msra.mxu1 %v6518_v30  ;;  %v6607_v29 = vld [vmem:[%s9182_s20 + $0x7e4] ss:$16 sps:$4 sm:$0xff]   ;;  %v6610_v30 = vld [vmem:[%s9182_s20 + $0x7ec] ss:$16 sps:$4 sm:$0xff]  }
  0xcb   :  { %1799 = vmatprep.subr.bf16.mxu0 %v6523_v33  ;;  %1963 = vmatprep.subr.bf16.mxu1 %v6526_v34  ;;  %v6613_v33 = vld [vmem:[%s9184_s29 + $0x4] ss:$8 sps:$4 sm:$0xff]   ;;  %v370_v34 = vpack.c.bf16 %v7572_v25, %v7572_v25 }
  0xcc   :  { %1829 = vmatprep.mubr.bf16.mxu0 %v371_v36  ;;  %1993 = vmatprep.mubr.bf16.mxu1 %v371_v36  ;;  %v6614_v36 = vld [vmem:[%s9184_s29 + $0x10] ss:$8 sps:$4 sm:$0xff]   ;;  %v6619_v25 = vld [vmem:[%s9184_s29 + $0x24] ss:$8 sps:$4 sm:$0xff]  }
  0xce   :  { %1800 = vmatpush1.bf16.msra.mxu0 %v6521_v35  ;;  %1964 = vmatpush1.bf16.msra.mxu1 %v6524_v17  ;;  %v6611_v35 = vld [vmem:[%s9184_s29] ss:$8 sps:$4 sm:$0xff]   ;;  %v6616_v17 = vld [vmem:[%s9184_s29 + $0x14] ss:$8 sps:$4 sm:$0xff]  }
  0xcf   :  { %1801 = vmatprep.subr.bf16.mxu0 %v6529_v37  ;;  %1965 = vmatprep.subr.bf16.mxu1 %v6532_v38  ;;  %v6617_v37 = vld [vmem:[%s9184_s29 + $0x20] ss:$8 sps:$4 sm:$0xff]   ;;  %v6622_v38 = vld [vmem:[%s9184_s29 + $0x34] ss:$8 sps:$4 sm:$0xff]  }
  0xd2   :  { %1802 = vmatpush1.bf16.msra.mxu0 %v6527_v39  ;;  %1966 = vmatpush1.bf16.msra.mxu1 %v6530_v40  ;;  %v6620_v39 = vld [vmem:[%s9184_s29 + $0x30] ss:$8 sps:$4 sm:$0xff]   ;;  %v6625_v40 = vld [vmem:[%s9184_s29 + $0x44] ss:$8 sps:$4 sm:$0xff]  }
  0xd3   :  { %1803 = vmatprep.subr.bf16.mxu0 %v6535_v41  ;;  %1967 = vmatprep.subr.bf16.mxu1 %v6538_v42  ;;  %v6623_v41 = vld [vmem:[%s9184_s29 + $0x40] ss:$8 sps:$4 sm:$0xff]   ;;  %v6628_v42 = vld [vmem:[%s9184_s29 + $0x54] ss:$8 sps:$4 sm:$0xff]  }
  0xd6   :  { %1804 = vmatpush1.bf16.msra.mxu0 %v6533_v44  ;;  %1968 = vmatpush1.bf16.msra.mxu1 %v6536_v45  ;;  %v6626_v44 = vld [vmem:[%s9184_s29 + $0x50] ss:$8 sps:$4 sm:$0xff]   ;;  %v6631_v45 = vld [vmem:[%s9184_s29 + $0x64] ss:$8 sps:$4 sm:$0xff]  }
  0xd7   :  { %1805 = vmatprep.subr.bf16.mxu0 %v6541_v46  ;;  %1969 = vmatprep.subr.bf16.mxu1 %v6544_v47  ;;  %v6629_v46 = vld [vmem:[%s9184_s29 + $0x60] ss:$8 sps:$4 sm:$0xff]   ;;  %v6634_v47 = vld [vmem:[%s9184_s29 + $0x74] ss:$8 sps:$4 sm:$0xff]  }
  0xda   :  { %1806 = vmatpush1.bf16.msra.mxu0 %v6539_v48  ;;  %1970 = vmatpush1.bf16.msra.mxu1 %v6542_v50  ;;  %v6632_v48 = vld [vmem:[%s9184_s29 + $0x70] ss:$8 sps:$4 sm:$0xff]   ;;  %v6637_v50 = vld [vmem:[%s9184_s29 + $0x84] ss:$8 sps:$4 sm:$0xff]  }
  0xdb   :  { %1807 = vmatprep.subr.bf16.mxu0 %v6547_v51  ;;  %1971 = vmatprep.subr.bf16.mxu1 %v6550_v52  ;;  %v6635_v51 = vld [vmem:[%s9184_s29 + $0x80] ss:$8 sps:$4 sm:$0xff]   ;;  %v6640_v52 = vld [vmem:[%s9184_s29 + $0x94] ss:$8 sps:$4 sm:$0xff]  }
  0xde   :  { %1808 = vmatpush1.bf16.msra.mxu0 %v6545_v53  ;;  %1972 = vmatpush1.bf16.msra.mxu1 %v6548_v54  ;;  %v6638_v53 = vld [vmem:[%s9184_s29 + $0x90] ss:$8 sps:$4 sm:$0xff]   ;;  %v6643_v54 = vld [vmem:[%s9184_s29 + $0xa4] ss:$8 sps:$4 sm:$0xff]  }
  0xdf   :  { %1809 = vmatprep.subr.bf16.mxu0 %v6553_v55  ;;  %1973 = vmatprep.subr.bf16.mxu1 %v6556_v56  ;;  %v6641_v55 = vld [vmem:[%s9184_s29 + $0xa0] ss:$8 sps:$4 sm:$0xff]   ;;  %v6646_v56 = vld [vmem:[%s9184_s29 + $0xb4] ss:$8 sps:$4 sm:$0xff]  }
  0xe2   :  { %1810 = vmatpush1.bf16.msra.mxu0 %v6551_v57  ;;  %1974 = vmatpush1.bf16.msra.mxu1 %v6554_v58  ;;  %v6644_v57 = vld [vmem:[%s9184_s29 + $0xb0] ss:$8 sps:$4 sm:$0xff]   ;;  %v6649_v58 = vld [vmem:[%s9184_s29 + $0xc4] ss:$8 sps:$4 sm:$0xff]  }
  0xe3   :  { %1811 = vmatprep.subr.bf16.mxu0 %v6559_v59  ;;  %1975 = vmatprep.subr.bf16.mxu1 %v6562_v60  ;;  %v6647_v59 = vld [vmem:[%s9184_s29 + $0xc0] ss:$8 sps:$4 sm:$0xff]   ;;  %v6652_v60 = vld [vmem:[%s9184_s29 + $0xd4] ss:$8 sps:$4 sm:$0xff]  }
  0xe6   :  { %1812 = vmatpush1.bf16.msra.mxu0 %v6557_v61  ;;  %1976 = vmatpush1.bf16.msra.mxu1 %v6560_v62  ;;  %v6650_v61 = vld [vmem:[%s9184_s29 + $0xd0] ss:$8 sps:$4 sm:$0xff]   ;;  %v6655_v62 = vld [vmem:[%s9184_s29 + $0xe4] ss:$8 sps:$4 sm:$0xff]  }
  0xe7   :  { %1813 = vmatprep.subr.bf16.mxu0 %v6565_v63  ;;  %1977 = vmatprep.subr.bf16.mxu1 %v6568_v0  ;;  %v6653_v63 = vld [vmem:[%s9184_s29 + $0xe0] ss:$8 sps:$4 sm:$0xff]   ;;  %v6658_v0 = vld [vmem:[%s9184_s29 + $0xf4] ss:$8 sps:$4 sm:$0xff]  }
  0xea   :  { %1814 = vmatpush1.bf16.msra.mxu0 %v6563_v1  ;;  %1978 = vmatpush1.bf16.msra.mxu1 %v6566_v2  ;;  %v6656_v1 = vld [vmem:[%s9184_s29 + $0xf0] ss:$8 sps:$4 sm:$0xff]   ;;  %v6661_v2 = vld [vmem:[%s9184_s29 + $0x104] ss:$8 sps:$4 sm:$0xff]  }
  0xeb   :  { %1815 = vmatprep.subr.bf16.mxu0 %v6571_v3  ;;  %1979 = vmatprep.subr.bf16.mxu1 %v6574_v4  ;;  %v7878_v3 = vsub.s32 0, %v7089_v43  ;;  %v7883_v4 = vld [vmem:[%s9158_s3] sm:$0xf] }
  0xee   :  { %1816 = vmatpush1.bf16.msra.mxu0 %v6569_v5  ;;  %1980 = vmatpush1.bf16.msra.mxu1 %v6572_v6  ;;  %v7886_v5 = vsub.s32 1, %v7089_v43  ;;  %v7889_v6 = vsub.s32 3, %v7089_v43 }
  0xef   :  { %1817 = vmatprep.subr.bf16.mxu0 %v6577_v7  ;;  %1981 = vmatprep.subr.bf16.mxu1 %v6580_v8  ;;  %v377_v7 = vrot.slane %v7883_v4, %v7878_v3 }
  0xf0   :  { %v381_v8 = vrot.slane %v7883_v4, %v7886_v5 }
  0xf2   :  { %1818 = vmatpush1.bf16.msra.mxu0 %v6575_v10  ;;  %1982 = vmatpush1.bf16.msra.mxu1 %v6578_v11  ;;  %v389_v10 = vrot.slane %v7883_v4, %v7889_v6 }
  0xf3   :  { %1819 = vmatprep.subr.bf16.mxu0 %v6583_v13  ;;  %1983 = vmatprep.subr.bf16.mxu1 %v6586_v14 }
  0xf6   :  { %1820 = vmatpush1.bf16.msra.mxu0 %v6581_v15  ;;  %1984 = vmatpush1.bf16.msra.mxu1 %v6584_v16 }
  0xf7   :  { %1821 = vmatprep.subr.bf16.mxu0 %v6589_v18  ;;  %1985 = vmatprep.subr.bf16.mxu1 %v6592_v19 }
  0xfa   :  { %1822 = vmatpush1.bf16.msra.mxu0 %v6587_v20  ;;  %1986 = vmatpush1.bf16.msra.mxu1 %v6590_v21 }
  0xfb   :  { %1823 = vmatprep.subr.bf16.mxu0 %v6595_v22  ;;  %1987 = vmatprep.subr.bf16.mxu1 %v6598_v23 }
  0xfe   :  { %1824 = vmatpush1.bf16.msra.mxu0 %v6593_v24  ;;  %1988 = vmatpush1.bf16.msra.mxu1 %v6596_v12 }
  0xff   :  { %1825 = vmatprep.subr.bf16.mxu0 %v6601_v26  ;;  %1989 = vmatprep.subr.bf16.mxu1 %v6604_v9 }
 0x102   :  { %1826 = vmatpush1.bf16.msra.mxu0 %v6599_v27  ;;  %1990 = vmatpush1.bf16.msra.mxu1 %v6602_v28  ;;  %v6659_v27 = vld [vmem:[%s9184_s29 + $0x100] ss:$8 sps:$4 sm:$0xff]  }
 0x103   :  { %1827 = vmatprep.subr.bf16.mxu0 %v6607_v29  ;;  %1991 = vmatprep.subr.bf16.mxu1 %v6610_v30  ;;  %v6664_v29 = vld [vmem:[%s9184_s29 + $0x114] ss:$8 sps:$4 sm:$0xff]  }
 0x106   :  { %1828 = vmatpush1.bf16.msra.mxu0 %v6605_v31  ;;  %1992 = vmatpush1.bf16.msra.mxu1 %v6608_v32  ;;  %v6662_v31 = vld [vmem:[%s9184_s29 + $0x110] ss:$8 sps:$4 sm:$0xff]   ;;  %v6667_v32 = vld [vmem:[%s9184_s29 + $0x124] ss:$8 sps:$4 sm:$0xff]  }
 0x107   :  { %2406 = vmatprep.subr.bf16.mxu0 %v6613_v33  ;;  %v6665_v33 = vld [vmem:[%s9184_s29 + $0x120] ss:$8 sps:$4 sm:$0xff]  }
 0x109   :  { %1830 = vmatmul.mubr.bf16.vlgmr.msra.gmra.mrb[0].mxu0 %v370_v34  ;;  %1994 = vmatmul.mubr.bf16.vlgmr.msra.gmra.mrb[0].mxu1 %v370_v34  ;;  %v6670_v34 = vld [vmem:[%s9184_s29 + $0x134] ss:$8 sps:$4 sm:$0xff]  }
 0x10a   :  { %2407 = vmatpush1.bf16.msra.mxu0 %v6611_v35  ;;  %v6668_v35 = vld [vmem:[%s9184_s29 + $0x130] ss:$8 sps:$4 sm:$0xff]  }
 0x10b   :  { %2408 = vmatprep.subr.bf16.mxu0 %v6616_v17  ;;  %v6673_v17 = vld [vmem:[%s9184_s29 + $0x144] ss:$8 sps:$4 sm:$0xff]  }
 0x10e   :  { %2409 = vmatpush1.bf16.msra.mxu0 %v6614_v36  ;;  %v6671_v36 = vld [vmem:[%s9184_s29 + $0x140] ss:$8 sps:$4 sm:$0xff]  }
 0x10f   :  { %2410 = vmatprep.subr.bf16.mxu0 %v6619_v25  ;;  %v6676_v25 = vld [vmem:[%s9184_s29 + $0x154] ss:$8 sps:$4 sm:$0xff]  }
 0x112   :  { %2411 = vmatpush1.bf16.msra.mxu0 %v6617_v37  ;;  %v6674_v37 = vld [vmem:[%s9184_s29 + $0x150] ss:$8 sps:$4 sm:$0xff]  }
 0x113   :  { %2412 = vmatprep.subr.bf16.mxu0 %v6622_v38  ;;  %v6679_v38 = vld [vmem:[%s9184_s29 + $0x164] ss:$8 sps:$4 sm:$0xff]  }
 0x116   :  { %2413 = vmatpush1.bf16.msra.mxu0 %v6620_v39  ;;  %v6677_v39 = vld [vmem:[%s9184_s29 + $0x160] ss:$8 sps:$4 sm:$0xff]  }
 0x117   :  { %2414 = vmatprep.subr.bf16.mxu0 %v6625_v40  ;;  %v6682_v40 = vld [vmem:[%s9184_s29 + $0x174] ss:$8 sps:$4 sm:$0xff]  }
 0x11a   :  { %2415 = vmatpush1.bf16.msra.mxu0 %v6623_v41  ;;  %v6680_v41 = vld [vmem:[%s9184_s29 + $0x170] ss:$8 sps:$4 sm:$0xff]  }
 0x11b   :  { %2416 = vmatprep.subr.bf16.mxu0 %v6628_v42  ;;  %v6685_v42 = vld [vmem:[%s9184_s29 + $0x184] ss:$8 sps:$4 sm:$0xff]  }
 0x11e   :  { %2417 = vmatpush1.bf16.msra.mxu0 %v6626_v44  ;;  %v6683_v44 = vld [vmem:[%s9184_s29 + $0x180] ss:$8 sps:$4 sm:$0xff]  }
 0x11f   :  { %2418 = vmatprep.subr.bf16.mxu0 %v6631_v45  ;;  %v6688_v45 = vld [vmem:[%s9184_s29 + $0x194] ss:$8 sps:$4 sm:$0xff]  }
 0x122   :  { %2419 = vmatpush1.bf16.msra.mxu0 %v6629_v46  ;;  %v6686_v46 = vld [vmem:[%s9184_s29 + $0x190] ss:$8 sps:$4 sm:$0xff]  }
 0x123   :  { %2420 = vmatprep.subr.bf16.mxu0 %v6634_v47  ;;  %v6691_v47 = vld [vmem:[%s9184_s29 + $0x1a4] ss:$8 sps:$4 sm:$0xff]  }
 0x126   :  { %2421 = vmatpush1.bf16.msra.mxu0 %v6632_v48  ;;  %v6689_v48 = vld [vmem:[%s9184_s29 + $0x1a0] ss:$8 sps:$4 sm:$0xff]  }
 0x127   :  { %2422 = vmatprep.subr.bf16.mxu0 %v6637_v50  ;;  %v6694_v50 = vld [vmem:[%s9184_s29 + $0x1b4] ss:$8 sps:$4 sm:$0xff]  }
 0x12a   :  { %2423 = vmatpush1.bf16.msra.mxu0 %v6635_v51  ;;  %v6692_v51 = vld [vmem:[%s9184_s29 + $0x1b0] ss:$8 sps:$4 sm:$0xff]  }
 0x12b   :  { %2424 = vmatprep.subr.bf16.mxu0 %v6640_v52  ;;  %v6697_v52 = vld [vmem:[%s9184_s29 + $0x1c4] ss:$8 sps:$4 sm:$0xff]  }
 0x12e   :  { %2425 = vmatpush1.bf16.msra.mxu0 %v6638_v53  ;;  %v6695_v53 = vld [vmem:[%s9184_s29 + $0x1c0] ss:$8 sps:$4 sm:$0xff]  }
 0x12f   :  { %2426 = vmatprep.subr.bf16.mxu0 %v6643_v54  ;;  %v7975_v54 = vsub.s32 2, %v7089_v43 }
 0x132   :  { %2427 = vmatpush1.bf16.msra.mxu0 %v6641_v55  ;;  %v6700_v55 = vld [vmem:[%s9184_s29 + $0x1d4] ss:$8 sps:$4 sm:$0xff]  }
 0x133   :  { %2428 = vmatprep.subr.bf16.mxu0 %v6646_v56  ;;  %v6698_v56 = vld [vmem:[%s9184_s29 + $0x1d0] ss:$8 sps:$4 sm:$0xff]  }
 0x136   :  { %2429 = vmatpush1.bf16.msra.mxu0 %v6644_v57  ;;  %v385_v57 = vrot.slane %v7883_v4, %v7975_v54  ;;  %v6709_v4 = vld [vmem:[%s9185_s28 + $0x48] sm:$0xff]  }
 0x137   :  { %2430 = vmatprep.subr.bf16.mxu0 %v6649_v58  ;;  %v6703_v58 = vld [vmem:[%s9184_s29 + $0x1e4] ss:$8 sps:$4 sm:$0xff]  }
 0x13a   :  { %2431 = vmatpush1.bf16.msra.mxu0 %v6647_v59  ;;  %v6701_v59 = vld [vmem:[%s9184_s29 + $0x1e0] ss:$8 sps:$4 sm:$0xff]  }
 0x13b   :  { %2432 = vmatprep.subr.bf16.mxu0 %v6652_v60 }
 0x13e   :  { %2433 = vmatpush1.bf16.msra.mxu0 %v6650_v61  ;;  %v6706_v61 = vld [vmem:[%s9184_s29 + $0x1f4] ss:$8 sps:$4 sm:$0xff]  }
 0x13f   :  { %2434 = vmatprep.subr.bf16.mxu0 %v6655_v62  ;;  %v6704_v62 = vld [vmem:[%s9184_s29 + $0x1f0] ss:$8 sps:$4 sm:$0xff]  }
 0x142   :  { %2435 = vmatpush1.bf16.msra.mxu0 %v6653_v63 }
 0x143   :  { %2436 = vmatprep.subr.bf16.mxu0 %v6658_v0  ;;  %v6707_v0 = vld [vmem:[%s9185_s28 + $0x40] sm:$0xff]  }
 0x146   :  { %2437 = vmatpush1.bf16.msra.mxu0 %v6656_v1  ;;  %v6708_v1 = vld [vmem:[%s9185_s28] sm:$0xff]  }
 0x147   :  { %2447 = vmatprep.subr.bf16.mxu0 %v6661_v2 }
 0x1dc   :  { %v1831_v11 = vpop.f32.mrb[0].mxu0  ;;  %v7897_v13 = vpop.f32.mrb[0].mxu1 }
 0x1dd   :  { %v6161_v14 = vadd.f32 %v1831_v11, %v377_v7  ;;  %v1833_v15 = vpop.f32.mrb[1].mxu0  ;;  %v1997_v16 = vpop.f32.mrb[1].mxu1  ;;  %v6163_v60 = vadd.f32 %v7897_v13, %v385_v57  ;;  %v6710_v7 = vld [vmem:[%s9185_s28 + $0x8] sm:$0xff]   ;;  %v6713_v11 = vld [vmem:[%s9185_s28 + $0x58] sm:$0xff]  }
 0x1de   :  { %v6162_v18 = vadd.f32 %v1833_v15, %v381_v8  ;;  %v6164_v19 = vadd.f32 %v1997_v16, %v389_v10  ;;  %v1835_v20 = vpop.f32.mrb[2].mxu0  ;;  %v1999_v21 = vpop.f32.mrb[2].mxu1  ;;  %v6711_v8 = vld [vmem:[%s9185_s28 + $0x50] sm:$0xff]   ;;  %v6714_v13 = vld [vmem:[%s9185_s28 + $0x18] sm:$0xff]   ;;  %v6716_v15 = vld [vmem:[%s9185_s28 + $0x20] sm:$0xff]  }
 0x1df   :  { %v2002_v22 = vmax.f32 %v6161_v14, 0.0  ;;  %v1836_v23 = vpop.f32.mrb[3].mxu0  ;;  %v2000_v24 = vpop.f32.mrb[3].mxu1  ;;  %v2004_v63 = vmax.f32 %v6163_v60, 0.0  ;;  %v6712_v10 = vld [vmem:[%s9185_s28 + $0x10] sm:$0xff]   ;;  %v6715_v14 = vld [vmem:[%s9185_s28 + $0x60] sm:$0xff]  }
 0x1e0   :  { %v2003_v12 = vmax.f32 %v6162_v18, 0.0  ;;  %v2005_v26 = vmax.f32 %v6164_v19, 0.0  ;;  %v6717_v16 = vld [vmem:[%s9185_s28 + $0x68] sm:$0xff]   ;;  %v6719_v19 = vld [vmem:[%s9185_s28 + $0x70] sm:$0xff]   ;;  %v6721_v21 = vld [vmem:[%s9185_s28 + $0x78] sm:$0xff]  }
 0x1e1   :  { %v2070_v28 = vpack.c.bf16 %v2002_v22, %v2002_v22  ;;  %v2072_v2 = vpack.c.bf16 %v2004_v63, %v2004_v63  ;;  %v6718_v18 = vld [vmem:[%s9185_s28 + $0x28] sm:$0xff]   ;;  %v6720_v20 = vld [vmem:[%s9185_s28 + $0x30] sm:$0xff]   ;;  %v6722_v22 = vld [vmem:[%s9185_s28 + $0x38] sm:$0xff]  }
 0x1e2   :  { %v2071_v9 = vpack.c.bf16 %v2003_v12, %v2003_v12  ;;  %v2073_v30 = vpack.c.bf16 %v2005_v26, %v2005_v26  ;;  %v2074_v23 = vld [vmem:[%s9159_s5] sm:$0x3] }
 0x1e3   :  { %v2079_v24 = vrot.slane %v2074_v23, %v7878_v3  ;;  %v2083_v12 = vrot.slane %v2074_v23, %v7886_v5 }
 0x1e4   :  { %2438 = vmatprep.mubr.bf16.mxu0 %v2071_v9 }
 0x1e5   :  { %2439 = vmatmul.mubr.bf16.vlgmr.msra.gmra.mrb[4].mxu0 %v2070_v28 }
 0x1e6   :  { %2448 = vmatpush1.bf16.msra.mxu0 %v6659_v27  ;;  %2479 = vmatprep.mubr.bf16.mxu0 %v2073_v30 }
 0x1e7   :  { %2449 = vmatprep.subr.bf16.mxu0 %v6664_v29 }
 0x1ea   :  { %2450 = vmatpush1.bf16.msra.mxu0 %v6662_v31 }
 0x1eb   :  { %2451 = vmatprep.subr.bf16.mxu0 %v6667_v32 }
 0x1ee   :  { %2452 = vmatpush1.bf16.msra.mxu0 %v6665_v33 }
 0x1ef   :  { %2453 = vmatprep.subr.bf16.mxu0 %v6670_v34 }
 0x1f2   :  { %2454 = vmatpush1.bf16.msra.mxu0 %v6668_v35  ;;  %v2490_v35 = vld [vmem:[%s9160_s7] sm:$0x7] }
 0x1f3   :  { %2455 = vmatprep.subr.bf16.mxu0 %v6673_v17 }
 0x1f6   :  { %2456 = vmatpush1.bf16.msra.mxu0 %v6671_v36  ;;  %v2528_v36 = vrot.slane %v2490_v35, %v7878_v3 }
 0x1f7   :  { %2457 = vmatprep.subr.bf16.mxu0 %v6676_v25 }
 0x1fa   :  { %2458 = vmatpush1.bf16.msra.mxu0 %v6674_v37 }
 0x1fb   :  { %2459 = vmatprep.subr.bf16.mxu0 %v6679_v38 }
 0x1fe   :  { %2460 = vmatpush1.bf16.msra.mxu0 %v6677_v39 }
 0x1ff   :  { %2461 = vmatprep.subr.bf16.mxu0 %v6682_v40 }
 0x202   :  { %2462 = vmatpush1.bf16.msra.mxu0 %v6680_v41 }
 0x203   :  { %2463 = vmatprep.subr.bf16.mxu0 %v6685_v42 }
 0x206   :  { %2464 = vmatpush1.bf16.msra.mxu0 %v6683_v44 }
 0x207   :  { %2465 = vmatprep.subr.bf16.mxu0 %v6688_v45 }
 0x20a   :  { %2466 = vmatpush1.bf16.msra.mxu0 %v6686_v46 }
 0x20b   :  { %2467 = vmatprep.subr.bf16.mxu0 %v6691_v47 }
 0x20e   :  { %2468 = vmatpush1.bf16.msra.mxu0 %v6689_v48  ;;  %v6723_v48 = vld [vmem:[%s9161_s8] sm:$0xff]  }
 0x20f   :  { %2469 = vmatprep.subr.bf16.mxu0 %v6694_v50  ;;  %v6867_v50 = vmov 0.0  }
 0x210   :  { %6147 = vmatprep.subr.bf16.mxu1 %v6867_v50  ;;  %6151 = vmatprep.mubr.msk.bf16.mxu1 %vm6868_vm1, %v6867_v50 }
 0x211   :  { %6148 = vmatpush3.bf16.msra.mxu1 %v6723_v48 }
 0x212   :  { %2470 = vmatpush1.bf16.msra.mxu0 %v6692_v51  ;;  %v6724_v51 = vld [vmem:[%s9161_s8 + $0x8] sm:$0xff]   ;;  %6149 = vmatprep.subr.bf16.mxu1 %v6867_v50 }
 0x213   :  { %2471 = vmatprep.subr.bf16.mxu0 %v6697_v52 }
 0x215   :  { %6150 = vmatpush3.bf16.msra.mxu1 %v6724_v51 }
 0x216   :  { %2472 = vmatpush1.bf16.msra.mxu0 %v6695_v53  ;;  %6155 = vmatprep.subr.bf16.mxu1 %v6867_v50 }
 0x217   :  { %2473 = vmatprep.subr.bf16.mxu0 %v6700_v55 }
 0x21a   :  { %2474 = vmatpush1.bf16.msra.mxu0 %v6698_v56  ;;  %v2683_v56 = vrot.slane %v2490_v35, %v7886_v5 }
 0x21b   :  { %2475 = vmatprep.subr.bf16.mxu0 %v6703_v58  ;;  %v2688_v58 = vrot.slane %v2490_v35, %v7975_v54  ;;  %v6731_v35 = vld [vmem:[%s9167_s12 + $0x14] ss:$8 sps:$4 sm:$0xff]  }
 0x21e   :  { %2476 = vmatpush1.bf16.msra.mxu0 %v6701_v59 }
 0x21f   :  { %2477 = vmatprep.subr.bf16.mxu0 %v6706_v61 }
 0x222   :  { %2478 = vmatpush1.bf16.msra.mxu0 %v6704_v62 }
 0x223   :  { %6120 = vmatprep.subr.bf16.mxu0 %v6707_v0  ;;  %v6725_v0 = vld [vmem:[%s9162_s10] sm:$0xff]   ;;  %s6869_s10 = smov 112  }
 0x225   :  { %2480 = vmatmul.mubr.bf16.vlgmr.msra.gmra.mrb[4].mxu0 %v2072_v2 }
 0x226   :  { %6121 = vmatpush3.bf16.msra.mxu0 %v6708_v1  ;;  %v5781_v1 = vld [vmem:[%s9163_s9] ss:$0 sm:$0xff] }
 0x227   :  { %6122 = vmatprep.subr.bf16.mxu0 %v6709_v4 }
 0x22a   :  { %6123 = vmatpush3.bf16.msra.mxu0 %v6710_v7 }
 0x22b   :  { %6124 = vmatprep.subr.bf16.mxu0 %v6711_v8 }
 0x22e   :  { %6125 = vmatpush3.bf16.msra.mxu0 %v6712_v10 }
 0x22f   :  { %6126 = vmatprep.subr.bf16.mxu0 %v6713_v11 }
 0x232   :  { %6127 = vmatpush3.bf16.msra.mxu0 %v6714_v13 }
 0x233   :  { %6128 = vmatprep.subr.bf16.mxu0 %v6715_v14 }
 0x236   :  { %6129 = vmatpush3.bf16.msra.mxu0 %v6716_v15  ;;  %v2759_v15 = vld [vmem:[%s9165_s1] sm:$0x3]  ;;  %s6870_s1 = smov 32  }
 0x237   :  { %6130 = vmatprep.subr.bf16.mxu0 %v6717_v16 }
 0x23a   :  { %6131 = vmatpush3.bf16.msra.mxu0 %v6718_v18 }
 0x23b   :  { %6132 = vmatprep.subr.bf16.mxu0 %v6719_v19 }
 0x23e   :  { %6133 = vmatpush3.bf16.msra.mxu0 %v6720_v20 }
 0x23f   :  { %6134 = vmatprep.subr.bf16.mxu0 %v6721_v21  ;;  %v2776_v21 = vld [vmem:[%s9166_s11] sm:$0x7] }
 0x242   :  { %6135 = vmatpush3.bf16.msra.mxu0 %v6722_v22  ;;  %v2783_v22 = vrot.slane %v2776_v21, %v7878_v3 }
 0x2f8   :  { %v2481_v26 = vpop.f32.mrb[4].mxu0 }
 0x2f9   :  { %v6165_v9 = vadd.f32 %v2481_v26, %v2079_v24  ;;  %v2483_v27 = vpop.f32.mrb[5].mxu0 }
 0x2fa   :  { %v6166_v28 = vadd.f32 %v2483_v27, %v2083_v12  ;;  %v2485_v29 = vpop.f32.mrb[6].mxu0 }
 0x2fb   :  { %v2488_v30 = vmax.f32 %v6165_v9, 0.0  ;;  %v2486_v31 = vpop.f32.mrb[7].mxu0 }
 0x2fc   :  { %v2489_v32 = vmax.f32 %v6166_v28, 0.0 }
 0x2fd   :  { %v2523_v34 = vpack.c.bf16 %v2488_v30, %v2488_v30 }
 0x2fe   :  { %v2524_v33 = vpack.c.bf16 %v2489_v32, %v2489_v32 }
 0x300   :  { %2657 = vmatprep.mubr.bf16.mxu0 %v2524_v33  ;;  %v6728_v33 = vld [vmem:[%s9167_s12 + $0x4] ss:$8 sps:$4 sm:$0xff]  }
 0x301   :  { %2658 = vmatmul.mubr.bf16.vlgmr.msra.gmra.mrb[8].mxu0 %v2523_v34  ;;  %v6726_v34 = vld [vmem:[%s9167_s12] ss:$8 sps:$4 sm:$0xff]  }
 0x3d4   :  { %v6136_v17 = vpop.f32.mrb[8].mxu0 }
 0x3d5   :  { %v6137_v25 = vpop.f32.mrb[9].mxu0 }
 0x3d6   :  { %v6138_v37 = vadd.f32 %v6137_v25, %v6136_v17  ;;  %v6139_v38 = vpop.f32.mrb[10].mxu0  ;;  %v6729_v17 = vld [vmem:[%s9167_s12 + $0x10] ss:$8 sps:$4 sm:$0xff]   ;;  %v6734_v25 = vld [vmem:[%s9168_s14 + $0x4] ss:$16 sps:$4 sm:$0xff]  }
 0x3d7   :  { %v6140_v39 = vpop.f32.mrb[11].mxu0 }
 0x3d8   :  { %v2660_v40 = vadd.f32 %v6138_v37, %v2528_v36  ;;  %v6871_v36 = vmov 0  }
 0x3da   :  { %v2666_v41 = vsel %vm2665_vm0, %v2660_v40, 0.0 }
 0x3db   :  { %2667 = vadd.xlane.f32.xlu0 %v2666_v41  ;;  %v2850_v41 = vrot.slane %v2776_v21, %v7886_v5 }
 0x468   :  { %v2668_v42 = vpop.xlane.xlu0 %2667 }
 0x469   :  { %v2670_v44 = vmul.f32 0.03125, %v2668_v42 }
 0x46b   :  { %v2671_v45 = vsub.f32 %v2660_v40, %v2670_v44  ;;  %v2855_v44 = vrot.slane %v2776_v21, %v7975_v54  ;;  %v6776_v21 = vld [vmem:[%s9168_s14 + $0x1c4] ss:$16 sps:$4 sm:$0xff]  }
 0x46d   :  { %v2672_v46 = vmul.f32 %v2671_v45, %v2671_v45 }
 0x46f   :  { %v2673_v47 = vsel %vm2665_vm0, %v2672_v46, 0.0 }
 0x470   :  { %2674 = vadd.xlane.f32.xlu0 %v2673_v47 }
 0x4fd   :  { %v2675_v52 = vpop.xlane.xlu0 %2674 }
 0x4fe   :  { %v2676_v53 = vmul.f32 0.03125, %v2675_v52  ;;  %v6737_v52 = vld [vmem:[%s9168_s14 + $0x24] ss:$16 sps:$4 sm:$0xff]  }
 0x500   :  { %v2677_v55 = vadd.f32 1e-05, %v2676_v53  ;;  %v6735_v53 = vld [vmem:[%s9168_s14 + $0x20] ss:$16 sps:$4 sm:$0xff]  }
 0x502   :  { %6828 = vrsqrt.f32 %v2677_v55  ;;  %v6740_v55 = vld [vmem:[%s9168_s14 + $0x44] ss:$16 sps:$4 sm:$0xff]  }
 0x50c   :  { %v6829_v57 = vpop.eup %6828 }
 0x50d   :  { %v2679_v59 = vmul.f32 %v6829_v57, %v2671_v45  ;;  %v6743_v57 = vld [vmem:[%s9168_s14 + $0x64] ss:$16 sps:$4 sm:$0xff]  }
 0x50f   :  { %v2684_v60 = vmul.f32 %v2683_v56, %v2679_v59  ;;  %v6738_v56 = vld [vmem:[%s9168_s14 + $0x40] ss:$16 sps:$4 sm:$0xff]   ;;  %v6746_v59 = vld [vmem:[%s9168_s14 + $0x84] ss:$16 sps:$4 sm:$0xff]  }
 0x511   :  { %v2689_v61 = vadd.f32 %v2688_v58, %v2684_v60  ;;  %v6741_v58 = vld [vmem:[%s9168_s14 + $0x60] ss:$16 sps:$4 sm:$0xff]  }
 0x512   :  { %v6744_v60 = vld [vmem:[%s9168_s14 + $0x80] ss:$16 sps:$4 sm:$0xff]  }
 0x513   :  { %v2690_v62 = vmax.f32 %v2689_v61, 0.0  ;;  %v6749_v61 = vld [vmem:[%s9168_s14 + $0xa4] ss:$16 sps:$4 sm:$0xff]  }
 0x515   :  { %v2695_v63 = vpack.c.bf16 %v2690_v62, %v2690_v62  ;;  %v6747_v62 = vld [vmem:[%s9168_s14 + $0xa0] ss:$16 sps:$4 sm:$0xff]  }
 0x517   :  { %6152 = vmatmul.mubr.msk.bf16.vlgmr.msra.gmra.mrb[4].mxu1 %vm2715_vm2, %v2695_v63  ;;  %v6752_v63 = vld [vmem:[%s9168_s14 + $0xc4] ss:$16 sps:$4 sm:$0xff]  }
 0x518   :  { %6157 = vmatprep.mubr.msk.bf16.mxu1 %vm6868_vm1, %v6867_v50  ;;  %6156 = vmatpush3.bf16.msra.mxu1 %v6725_v0  ;;  %v6732_v50 = vld [vmem:[%s9168_s14] ss:$16 sps:$4 sm:$0xff]  }
 0x519   :  { %2898 = vmatprep.subr.bf16.mxu1 %v6728_v33  ;;  %v6750_v0 = vld [vmem:[%s9168_s14 + $0xc0] ss:$16 sps:$4 sm:$0xff]  }
 0x51a   :  { %v3449_v33 = vld [vmem:[%s9169_s16 + $0x80] sm:$0xff] }
 0x5ea   :  { %v2753_v2 = vpop.f32.mrb[4].mxu1 }
 0x5eb   :  { %v2754_v4 = vadd.f32 %v5781_v1, %v2753_v2  ;;  %v6153_v7 = vpop.f32.mrb[5].mxu1  ;;  %v6755_v1 = vld [vmem:[%s9168_s14 + $0xe4] ss:$16 sps:$4 sm:$0xff]   ;;  %v6753_v2 = vld [vmem:[%s9168_s14 + $0xe0] ss:$16 sps:$4 sm:$0xff]  }
 0x5ec   :  { %v2756_v8 = vpop.f32.mrb[6].mxu1  ;;  %v6756_v7 = vld [vmem:[%s9168_s14 + $0x100] ss:$16 sps:$4 sm:$0xff]  }
 0x5ed   :  { %v2760_v10 = vmul.f32 0.5, %v2754_v4  ;;  %2769 = vst.msk [vmem:[%s9164_s19] sm:$0x3] %vm2665_vm0, %v2754_v4  ;;  %v6154_v11 = vpop.f32.mrb[7].mxu1  ;;  %v6761_v8 = vld [vmem:[%s9168_s14 + $0x124] ss:$16 sps:$4 sm:$0xff]  }
 0x5ee   :  { %v6764_v11 = vld [vmem:[%s9168_s14 + $0x144] ss:$16 sps:$4 sm:$0xff]  }
 0x5ef   :  { %v2761_v13 = vmul.f32 1.442695, %v2760_v10  ;;  %v6759_v10 = vld [vmem:[%s9168_s14 + $0x120] ss:$16 sps:$4 sm:$0xff]  }
 0x5f1   :  { %6830 = vpow2.f32 %v2761_v13  ;;  %v6762_v13 = vld [vmem:[%s9168_s14 + $0x140] ss:$16 sps:$4 sm:$0xff]  }
 0x5fb   :  { %v6831_v14 = vpop.eup %6830 }
 0x5fc   :  { %2764 = vrot.lane.b32.xlu1 %v6831_v14, %s6869_s10  ;;  %v6767_v14 = vld [vmem:[%s9168_s14 + $0x164] ss:$16 sps:$4 sm:$0xff]  }
 0x66e   :  { %v2765_v16 = vpop.permute.xlu1 %2764 }
 0x66f   :  { %v2767_v18 = vmul.f32 %v2765_v16, %v2759_v15  ;;  %v6765_v15 = vld [vmem:[%s9168_s14 + $0x160] ss:$16 sps:$4 sm:$0xff]   ;;  %v6770_v16 = vld [vmem:[%s9168_s14 + $0x184] ss:$16 sps:$4 sm:$0xff]  }
 0x671   :  { %v2768_v19 = vadd.f32 %v2767_v18, %v2754_v4  ;;  %v6758_v4 = vld [vmem:[%s9168_s14 + $0x104] ss:$16 sps:$4 sm:$0xff]   ;;  %v6768_v18 = vld [vmem:[%s9168_s14 + $0x180] ss:$16 sps:$4 sm:$0xff]  }
 0x673   :  { %v2779_v20 = vpack.c.bf16 %v2768_v19, %v2768_v19 }
 0x675   :  { %6158 = vmatmul.mubr.msk.bf16.vlgmr.msra.gmra.mrb[8].mxu1 %vm2790_vm3, %v2779_v20  ;;  %v6771_v20 = vld [vmem:[%s9168_s14 + $0x1a0] ss:$16 sps:$4 sm:$0xff]  }
 0x676   :  { %2899 = vmatpush1.bf16.msra.mxu1 %v6726_v34  ;;  %2930 = vmatprep.mubr.bf16.mxu1 %v6871_v36  ;;  %v3453_v34 = vld [vmem:[%s9169_s16 + $0xa0] sm:$0xff] }
 0x677   :  { %2900 = vmatprep.subr.bf16.mxu1 %v6731_v35  ;;  %v5873_v35 = vcombine.high %v3449_v33, %v3453_v34  ;;  %v3457_v36 = vld [vmem:[%s9169_s16 + $0xc0] sm:$0xff] }
 0x67a   :  { %2901 = vmatpush1.bf16.msra.mxu1 %v6729_v17  ;;  %v5872_v17 = vcombine.low %v3449_v33, %v3453_v34  ;;  %v6780_v33 = vld [vmem:[%s9168_s14 + $0x8] ss:$16 sps:$4 sm:$0xff]  }
 0x67b   :  { %3347 = vmatprep.subr.bf16.mxu1 %v6734_v25  ;;  %v3461_v25 = vld [vmem:[%s9169_s16 + $0xe0] sm:$0xff] }
 0x748   :  { %v2828_v23 = vpop.f32.mrb[8].mxu1 }
 0x749   :  { %v2829_v24 = vadd.f32 %v2828_v23, %v2783_v22  ;;  %v6159_v12 = vpop.f32.mrb[9].mxu1  ;;  %v6774_v22 = vld [vmem:[%s9168_s14 + $0x1c0] ss:$16 sps:$4 sm:$0xff]   ;;  %v6779_v23 = vld [vmem:[%s9168_s14 + $0x1e4] ss:$16 sps:$4 sm:$0xff]  }
 0x74a   :  { %v2831_v26 = vpop.f32.mrb[10].mxu1  ;;  %v6782_v12 = vld [vmem:[%s9168_s14 + $0xc] ss:$16 sps:$4 sm:$0xff]  }
 0x74b   :  { %v6160_v9 = vpop.f32.mrb[11].mxu1  ;;  %v2834_v27 = vsel %vm2665_vm0, %v2829_v24, 0.0  ;;  %v3433_v26 = vld [vmem:[%s9169_s16] sm:$0xff] }
 0x74c   :  { %2835 = vadd.xlane.f32.xlu1 %v2834_v27  ;;  %v3437_v9 = vld [vmem:[%s9169_s16 + $0x20] sm:$0xff] }
 0x74d   :  { %v5856_v27 = vcombine.low %v3433_v26, %v3437_v9 }
 0x7d9   :  { %v2836_v28 = vpop.xlane.xlu1 %2835 }
 0x7da   :  { %v2837_v29 = vmul.f32 0.03125, %v2836_v28  ;;  %v5857_v28 = vcombine.high %v3433_v26, %v3437_v9 }
 0x7dc   :  { %v2838_v30 = vsub.f32 %v2829_v24, %v2837_v29  ;;  %v6777_v24 = vld [vmem:[%s9168_s14 + $0x1e0] ss:$16 sps:$4 sm:$0xff]   ;;  %5015 = vmatprep.subr.bf16.mxu0 %v5857_v28 }
 0x7dd   :  { %v3441_v29 = vld [vmem:[%s9169_s16 + $0x40] sm:$0xff]  ;;  %5016 = vmatpush1.bf16.msra.mxu0 %v5856_v27 }
 0x7de   :  { %v2839_v31 = vmul.f32 %v2838_v30, %v2838_v30 }
 0x7e0   :  { %v2840_v32 = vsel %vm2665_vm0, %v2839_v31, 0.0 }
 0x7e1   :  { %2841 = vadd.xlane.f32.xlu0 %v2840_v32 }
 0x7f7   :  { %2771 = vrot.lane.b32.xlu0 %v2768_v19, %s6870_s1  ;;  %v6773_v19 = vld [vmem:[%s9168_s14 + $0x1a4] ss:$16 sps:$4 sm:$0xff]  }
 0x86e   :  { %v2842_v37 = vpop.xlane.xlu0 %2841 }
 0x86f   :  { %v2843_v38 = vmul.f32 0.03125, %v2842_v37  ;;  %v5881_v37 = vcombine.high %v3457_v36, %v3461_v25 }
 0x871   :  { %v2844_v39 = vadd.f32 1e-05, %v2843_v38  ;;  %v5880_v38 = vcombine.low %v3457_v36, %v3461_v25  ;;  %v6788_v36 = vld [vmem:[%s9168_s14 + $0x4c] ss:$16 sps:$4 sm:$0xff]   ;;  %v6786_v25 = vld [vmem:[%s9168_s14 + $0x48] ss:$16 sps:$4 sm:$0xff]  }
 0x872   :  { %v2772_v40 = vpop.permute.xlu0 %2771 }
 0x873   :  { %6832 = vrsqrt.f32 %v2844_v39  ;;  %2775 = vst.msk [vmem:[%s9164_s19] sm:$0x3] %vm2774_vm4, %v2772_v40  ;;  %v3465_v39 = vld [vmem:[%s9169_s16 + $0x100] sm:$0xff] }
 0x874   :  { %v3469_v40 = vld [vmem:[%s9169_s16 + $0x120] sm:$0xff] }
 0x87d   :  { %v6833_v42 = vpop.eup %6832 }
 0x87e   :  { %v2846_v45 = vmul.f32 %v6833_v42, %v2838_v30  ;;  %v3445_v30 = vld [vmem:[%s9169_s16 + $0x60] sm:$0xff]  ;;  %v5888_v42 = vcombine.low %v3465_v39, %v3469_v40 }
 0x87f   :  { %v5865_v31 = vcombine.high %v3441_v29, %v3445_v30  ;;  %v5864_v32 = vcombine.low %v3441_v29, %v3445_v30 }
 0x880   :  { %v2851_v46 = vmul.f32 %v2850_v41, %v2846_v45  ;;  %v5889_v41 = vcombine.high %v3465_v39, %v3469_v40  ;;  %v3477_v45 = vld [vmem:[%s9169_s16 + $0x160] sm:$0xff]  ;;  %v6794_v39 = vld [vmem:[%s9168_s14 + $0x8c] ss:$16 sps:$4 sm:$0xff]   ;;  %v6792_v40 = vld [vmem:[%s9168_s14 + $0x88] ss:$16 sps:$4 sm:$0xff]  }
 0x881   :  { %5017 = vmatprep.subr.bf16.mxu0 %v5865_v31 }
 0x882   :  { %v2856_v47 = vadd.f32 %v2855_v44, %v2851_v46  ;;  %5018 = vmatpush1.bf16.msra.mxu0 %v5864_v32  ;;  %v3473_v44 = vld [vmem:[%s9169_s16 + $0x140] sm:$0xff] }
 0x883   :  { %5019 = vmatprep.subr.bf16.mxu0 %v5873_v35  ;;  %v5897_v46 = vcombine.high %v3473_v44, %v3477_v45  ;;  %v6785_v35 = vld [vmem:[%s9168_s14 + $0x2c] ss:$16 sps:$4 sm:$0xff]  }
 0x884   :  { %v2857_v48 = vmax.f32 %v2856_v47, 0.0  ;;  %v5896_v47 = vcombine.low %v3473_v44, %v3477_v45  ;;  %v6800_v44 = vld [vmem:[%s9168_s14 + $0xcc] ss:$16 sps:$4 sm:$0xff]   ;;  %v6798_v45 = vld [vmem:[%s9168_s14 + $0xc8] ss:$16 sps:$4 sm:$0xff]  }
 0x886   :  { %v2862_v51 = vpack.c.bf16 %v2857_v48, %v2857_v48  ;;  %5020 = vmatpush1.bf16.msra.mxu0 %v5872_v17  ;;  %v3481_v48 = vld [vmem:[%s9169_s16 + $0x180] sm:$0xff]  ;;  %v6783_v17 = vld [vmem:[%s9168_s14 + $0x28] ss:$16 sps:$4 sm:$0xff]  }
 0x887   :  { %5021 = vmatprep.subr.bf16.mxu0 %v5881_v37  ;;  %v6791_v37 = vld [vmem:[%s9168_s14 + $0x6c] ss:$16 sps:$4 sm:$0xff]  }
 0x888   :  { %5791 = vmatmul.mubr.msk.bf16.vlgmr.msra.gmra.mrb[12].mxu1 %vm2715_vm2, %v2862_v51 }
 0x889   :  { %3348 = vmatpush1.bf16.msra.mxu1 %v6732_v50  ;;  %v3485_v50 = vld [vmem:[%s9169_s16 + $0x1a0] sm:$0xff] }
 0x88a   :  { %3349 = vmatprep.subr.bf16.mxu1 %v6737_v52  ;;  %5022 = vmatpush1.bf16.msra.mxu0 %v5880_v38  ;;  %v5905_v51 = vcombine.high %v3481_v48, %v3485_v50  ;;  %v5904_v52 = vcombine.low %v3481_v48, %v3485_v50  ;;  %v6789_v38 = vld [vmem:[%s9168_s14 + $0x68] ss:$16 sps:$4 sm:$0xff]   ;;  %v6806_v48 = vld [vmem:[%s9168_s14 + $0x10c] ss:$16 sps:$4 sm:$0xff]  }
 0x88b   :  { %5023 = vmatprep.subr.bf16.mxu0 %v5889_v41  ;;  %v6797_v41 = vld [vmem:[%s9168_s14 + $0xac] ss:$16 sps:$4 sm:$0xff]   ;;  %v6804_v50 = vld [vmem:[%s9168_s14 + $0x108] ss:$16 sps:$4 sm:$0xff]  }
 0x88d   :  { %3350 = vmatpush1.bf16.msra.mxu1 %v6735_v53  ;;  %v3489_v53 = vld [vmem:[%s9169_s16 + $0x1c0] sm:$0xff] }
 0x88e   :  { %3351 = vmatprep.subr.bf16.mxu1 %v6740_v55  ;;  %5024 = vmatpush1.bf16.msra.mxu0 %v5888_v42  ;;  %v3493_v55 = vld [vmem:[%s9169_s16 + $0x1e0] sm:$0xff]  ;;  %v6795_v42 = vld [vmem:[%s9168_s14 + $0xa8] ss:$16 sps:$4 sm:$0xff]  }
 0x88f   :  { %5025 = vmatprep.subr.bf16.mxu0 %v5897_v46  ;;  %v6803_v46 = vld [vmem:[%s9168_s14 + $0xec] ss:$16 sps:$4 sm:$0xff]  }
 0x891   :  { %3352 = vmatpush1.bf16.msra.mxu1 %v6738_v56  ;;  %v5913_v56 = vcombine.high %v3489_v53, %v3493_v55 }
 0x892   :  { %3353 = vmatprep.subr.bf16.mxu1 %v6743_v57  ;;  %5026 = vmatpush1.bf16.msra.mxu0 %v5896_v47  ;;  %v5912_v57 = vcombine.low %v3489_v53, %v3493_v55  ;;  %v6801_v47 = vld [vmem:[%s9168_s14 + $0xe8] ss:$16 sps:$4 sm:$0xff]   ;;  %v6812_v53 = vld [vmem:[%s9168_s14 + $0x14c] ss:$16 sps:$4 sm:$0xff]  }
 0x893   :  { %5027 = vmatprep.subr.bf16.mxu0 %v5905_v51  ;;  %v6809_v51 = vld [vmem:[%s9168_s14 + $0x12c] ss:$16 sps:$4 sm:$0xff]   ;;  %v6810_v55 = vld [vmem:[%s9168_s14 + $0x148] ss:$16 sps:$4 sm:$0xff]  }
 0x895   :  { %3354 = vmatpush1.bf16.msra.mxu1 %v6741_v58  ;;  %v3497_v58 = vld [vmem:[%s9169_s16 + $0x200] sm:$0xff] }
 0x896   :  { %3355 = vmatprep.subr.bf16.mxu1 %v6746_v59  ;;  %5028 = vmatpush1.bf16.msra.mxu0 %v5904_v52  ;;  %v3501_v59 = vld [vmem:[%s9169_s16 + $0x220] sm:$0xff]  ;;  %v6807_v52 = vld [vmem:[%s9168_s14 + $0x128] ss:$16 sps:$4 sm:$0xff]  }
 0x897   :  { %5029 = vmatprep.subr.bf16.mxu0 %v5913_v56  ;;  %v6815_v56 = vld [vmem:[%s9168_s14 + $0x16c] ss:$16 sps:$4 sm:$0xff]  }
 0x899   :  { %3356 = vmatpush1.bf16.msra.mxu1 %v6744_v60  ;;  %v5921_v60 = vcombine.high %v3497_v58, %v3501_v59 }
 0x89a   :  { %3357 = vmatprep.subr.bf16.mxu1 %v6749_v61  ;;  %5030 = vmatpush1.bf16.msra.mxu0 %v5912_v57  ;;  %v5920_v61 = vcombine.low %v3497_v58, %v3501_v59  ;;  %v6813_v57 = vld [vmem:[%s9168_s14 + $0x168] ss:$16 sps:$4 sm:$0xff]   ;;  %v6818_v58 = vld [vmem:[%s9168_s14 + $0x18c] ss:$16 sps:$4 sm:$0xff]  }
 0x89b   :  { %5031 = vmatprep.subr.bf16.mxu0 %v5921_v60  ;;  %v6816_v59 = vld [vmem:[%s9168_s14 + $0x188] ss:$16 sps:$4 sm:$0xff]   ;;  %v6821_v60 = vld [vmem:[%s9168_s14 + $0x1ac] ss:$16 sps:$4 sm:$0xff]  }
 0x89d   :  { %3358 = vmatpush1.bf16.msra.mxu1 %v6747_v62  ;;  %v3505_v62 = vld [vmem:[%s9169_s16 + $0x240] sm:$0xff] }
 0x89e   :  { %3359 = vmatprep.subr.bf16.mxu1 %v6752_v63  ;;  %v3509_v63 = vld [vmem:[%s9169_s16 + $0x260] sm:$0xff]  ;;  %5032 = vmatpush1.bf16.msra.mxu0 %v5920_v61  ;;  %v6819_v61 = vld [vmem:[%s9168_s14 + $0x1a8] ss:$16 sps:$4 sm:$0xff]  }
 0x8a1   :  { %3360 = vmatpush1.bf16.msra.mxu1 %v6750_v0  ;;  %v5929_v0 = vcombine.high %v3505_v62, %v3509_v63 }
 0x8a2   :  { %3361 = vmatprep.subr.bf16.mxu1 %v6755_v1  ;;  %v5928_v1 = vcombine.low %v3505_v62, %v3509_v63  ;;  %v6824_v62 = vld [vmem:[%s9168_s14 + $0x1cc] ss:$16 sps:$4 sm:$0xff]   ;;  %v6822_v63 = vld [vmem:[%s9168_s14 + $0x1c8] ss:$16 sps:$4 sm:$0xff]  }
 0x8a3   :  { %5033 = vmatprep.subr.bf16.mxu0 %v5929_v0  ;;  %v6827_v0 = vld [vmem:[%s9168_s14 + $0x1ec] ss:$16 sps:$4 sm:$0xff]  }
 0x8a4   :  { %5034 = vmatpush1.bf16.msra.mxu0 %v5928_v1  ;;  %v3434_v1 = vld [vmem:[%s9169_s16 + $0x8] sm:$0xff] }
 0x8a5   :  { %3362 = vmatpush1.bf16.msra.mxu1 %v6753_v2  ;;  %v3513_v2 = vld [vmem:[%s9169_s16 + $0x280] sm:$0xff] }
 0x8a6   :  { %3363 = vmatprep.subr.bf16.mxu1 %v6758_v4  ;;  %v3517_v4 = vld [vmem:[%s9169_s16 + $0x2a0] sm:$0xff] }
 0x8a9   :  { %3364 = vmatpush1.bf16.msra.mxu1 %v6756_v7  ;;  %v5937_v7 = vcombine.high %v3513_v2, %v3517_v4 }
 0x8aa   :  { %3365 = vmatprep.subr.bf16.mxu1 %v6761_v8  ;;  %v5936_v8 = vcombine.low %v3513_v2, %v3517_v4  ;;  %v3438_v2 = vld [vmem:[%s9169_s16 + $0x28] sm:$0xff] }
 0x8ab   :  { %5035 = vmatprep.subr.bf16.mxu0 %v5937_v7  ;;  %v6825_v4 = vld [vmem:[%s9168_s14 + $0x1e8] ss:$16 sps:$4 sm:$0xff]   ;;  %v5859_v7 = vcombine.high %v3434_v1, %v3438_v2 }
 0x8ac   :  { %5036 = vmatpush1.bf16.msra.mxu0 %v5936_v8  ;;  %v3442_v8 = vld [vmem:[%s9169_s16 + $0x48] sm:$0xff] }
 0x8ad   :  { %3366 = vmatpush1.bf16.msra.mxu1 %v6759_v10  ;;  %v3521_v10 = vld [vmem:[%s9169_s16 + $0x2c0] sm:$0xff] }
 0x8ae   :  { %3367 = vmatprep.subr.bf16.mxu1 %v6764_v11  ;;  %v3525_v11 = vld [vmem:[%s9169_s16 + $0x2e0] sm:$0xff] }
 0x8b1   :  { %3368 = vmatpush1.bf16.msra.mxu1 %v6762_v13  ;;  %v5945_v13 = vcombine.high %v3521_v10, %v3525_v11 }
 0x8b2   :  { %3369 = vmatprep.subr.bf16.mxu1 %v6767_v14  ;;  %v5944_v14 = vcombine.low %v3521_v10, %v3525_v11  ;;  %v3446_v10 = vld [vmem:[%s9169_s16 + $0x68] sm:$0xff]  ;;  %v5858_v11 = vcombine.low %v3434_v1, %v3438_v2 }
 0x8b3   :  { %5037 = vmatprep.subr.bf16.mxu0 %v5945_v13  ;;  %v5867_v13 = vcombine.high %v3442_v8, %v3446_v10  ;;  %v3522_v2 = vld [vmem:[%s9169_s16 + $0x2c8] sm:$0xff] }
 0x8b4   :  { %5038 = vmatpush1.bf16.msra.mxu0 %v5944_v14  ;;  %v3450_v14 = vld [vmem:[%s9169_s16 + $0x88] sm:$0xff] }
 0x8b5   :  { %3370 = vmatpush1.bf16.msra.mxu1 %v6765_v15  ;;  %v3529_v15 = vld [vmem:[%s9169_s16 + $0x300] sm:$0xff] }
 0x8b6   :  { %3371 = vmatprep.subr.bf16.mxu1 %v6770_v16  ;;  %v3533_v16 = vld [vmem:[%s9169_s16 + $0x320] sm:$0xff] }
 0x8b9   :  { %3372 = vmatpush1.bf16.msra.mxu1 %v6768_v18  ;;  %v5953_v18 = vcombine.high %v3529_v15, %v3533_v16 }
 0x8ba   :  { %3373 = vmatprep.subr.bf16.mxu1 %v6773_v19  ;;  %v5952_v19 = vcombine.low %v3529_v15, %v3533_v16  ;;  %v3454_v15 = vld [vmem:[%s9169_s16 + $0xa8] sm:$0xff]  ;;  %v5866_v16 = vcombine.low %v3442_v8, %v3446_v10 }
 0x8bb   :  { %5039 = vmatprep.subr.bf16.mxu0 %v5953_v18  ;;  %v5875_v18 = vcombine.high %v3450_v14, %v3454_v15  ;;  %v3530_v10 = vld [vmem:[%s9169_s16 + $0x308] sm:$0xff] }
 0x8bc   :  { %5040 = vmatpush1.bf16.msra.mxu0 %v5952_v19  ;;  %v3458_v19 = vld [vmem:[%s9169_s16 + $0xc8] sm:$0xff] }
 0x8bd   :  { %3374 = vmatpush1.bf16.msra.mxu1 %v6771_v20  ;;  %v3537_v20 = vld [vmem:[%s9169_s16 + $0x340] sm:$0xff] }
 0x8be   :  { %3375 = vmatprep.subr.bf16.mxu1 %v6776_v21  ;;  %v3541_v21 = vld [vmem:[%s9169_s16 + $0x360] sm:$0xff] }
 0x8c1   :  { %3376 = vmatpush1.bf16.msra.mxu1 %v6774_v22  ;;  %v5961_v22 = vcombine.high %v3537_v20, %v3541_v21 }
 0x8c2   :  { %3377 = vmatprep.subr.bf16.mxu1 %v6779_v23  ;;  %v2863_v23 = vld [vmem:[%s9170_s13] sm:$0x3] }
 0x8c3   :  { %5041 = vmatprep.subr.bf16.mxu0 %v5961_v22  ;;  %v2872_v26 = vrot.slane %v2863_v23, %v7886_v5 }
 0x8c5   :  { %3378 = vmatpush1.bf16.msra.mxu1 %v6777_v24  ;;  %v5960_v24 = vcombine.low %v3537_v20, %v3541_v21  ;;  %v3462_v20 = vld [vmem:[%s9169_s16 + $0xe8] sm:$0xff]  ;;  %v5874_v21 = vcombine.low %v3450_v14, %v3454_v15 }
 0x8c6   :  { %3388 = vmatprep.subr.bf16.mxu1 %v6782_v12  ;;  %v2868_v12 = vrot.slane %v2863_v23, %v7878_v3  ;;  %v5883_v22 = vcombine.high %v3458_v19, %v3462_v20  ;;  %v3466_v23 = vld [vmem:[%s9169_s16 + $0x108] sm:$0xff] }
 0x8c7   :  { %5042 = vmatpush1.bf16.msra.mxu0 %v5960_v24  ;;  %v3470_v24 = vld [vmem:[%s9169_s16 + $0x128] sm:$0xff] }
 0x8c8   :  { %v3538_v15 = vld [vmem:[%s9169_s16 + $0x348] sm:$0xff] }
 0x95b   :  { %v2932_v9 = vpop.f32.mrb[12].mxu1 }
 0x95c   :  { %v2933_v27 = vadd.f32 %v2932_v9, %v2868_v12  ;;  %v2934_v28 = vpop.f32.mrb[13].mxu1  ;;  %v5882_v12 = vcombine.low %v3458_v19, %v3462_v20  ;;  %v3474_v9 = vld [vmem:[%s9169_s16 + $0x148] sm:$0xff] }
 0x95d   :  { %v2935_v29 = vadd.f32 %v2934_v28, %v2872_v26  ;;  %v2936_v30 = vpop.f32.mrb[14].mxu1  ;;  %v5891_v26 = vcombine.high %v3466_v23, %v3470_v24  ;;  %v5890_v28 = vcombine.low %v3466_v23, %v3470_v24  ;;  %v3546_v20 = vld [vmem:[%s9169_s16 + $0x388] sm:$0xff] }
 0x95e   :  { %v2937_v31 = vpop.f32.mrb[15].mxu1  ;;  %v8296_v34 = vpack.c.bf16 %v2933_v27, %v2933_v27  ;;  %v3478_v27 = vld [vmem:[%s9169_s16 + $0x168] sm:$0xff] }
 0x95f   :  { %v3004_v32 = vpack.c.bf16 %v2935_v29, %v2935_v29  ;;  %v5899_v29 = vcombine.high %v3474_v9, %v3478_v27  ;;  %v3482_v30 = vld [vmem:[%s9169_s16 + $0x188] sm:$0xff] }
 0x960   :  { %v3486_v31 = vld [vmem:[%s9169_s16 + $0x1a8] sm:$0xff] }
 0x961   :  { %3379 = vmatprep.mubr.bf16.mxu1 %v3004_v32  ;;  %v3554_v24 = vld [vmem:[%s9169_s16 + $0x3c8] sm:$0xff] }
 0x962   :  { %3380 = vmatmul.mubr.bf16.vlgmr.msra.gmra.mrb[16].mxu1 %v8296_v34 }
 0x963   :  { %3389 = vmatpush1.bf16.msra.mxu1 %v6780_v33  ;;  %3420 = vmatprep.mubr.bf16.mxu1 %v3004_v32  ;;  %v5898_v32 = vcombine.low %v3474_v9, %v3478_v27  ;;  %v3545_v33 = vld [vmem:[%s9169_s16 + $0x380] sm:$0xff] }
 0x964   :  { %3390 = vmatprep.subr.bf16.mxu1 %v6785_v35  ;;  %v5907_v35 = vcombine.high %v3482_v30, %v3486_v31 }
 0x967   :  { %3391 = vmatpush1.bf16.msra.mxu1 %v6783_v17 }
 0x968   :  { %3392 = vmatprep.subr.bf16.mxu1 %v6788_v36  ;;  %v3490_v36 = vld [vmem:[%s9169_s16 + $0x1c8] sm:$0xff] }
 0x96b   :  { %3393 = vmatpush1.bf16.msra.mxu1 %v6786_v25  ;;  %v3494_v25 = vld [vmem:[%s9169_s16 + $0x1e8] sm:$0xff] }
 0x96c   :  { %3394 = vmatprep.subr.bf16.mxu1 %v6791_v37 }
 0x96f   :  { %3395 = vmatpush1.bf16.msra.mxu1 %v6789_v38  ;;  %v5906_v38 = vcombine.low %v3482_v30, %v3486_v31 }
 0x970   :  { %3396 = vmatprep.subr.bf16.mxu1 %v6794_v39  ;;  %v3553_v39 = vld [vmem:[%s9169_s16 + $0x3c0] sm:$0xff] }
 0x973   :  { %3397 = vmatpush1.bf16.msra.mxu1 %v6792_v40  ;;  %v3557_v40 = vld [vmem:[%s9169_s16 + $0x3e0] sm:$0xff] }
 0x974   :  { %3398 = vmatprep.subr.bf16.mxu1 %v6797_v41  ;;  %v5915_v41 = vcombine.high %v3490_v36, %v3494_v25 }
 0x977   :  { %3399 = vmatpush1.bf16.msra.mxu1 %v6795_v42  ;;  %v5977_v42 = vcombine.high %v3553_v39, %v3557_v40 }
 0x978   :  { %3400 = vmatprep.subr.bf16.mxu1 %v6800_v44  ;;  %v3498_v44 = vld [vmem:[%s9169_s16 + $0x208] sm:$0xff] }
 0x97b   :  { %3401 = vmatpush1.bf16.msra.mxu1 %v6798_v45  ;;  %v3502_v45 = vld [vmem:[%s9169_s16 + $0x228] sm:$0xff] }
 0x97c   :  { %3402 = vmatprep.subr.bf16.mxu1 %v6803_v46  ;;  %v5976_v46 = vcombine.low %v3553_v39, %v3557_v40  ;;  %v3573_v39 = vld [vmem:[%s9169_s16 + $0x460] sm:$0xff]  ;;  %v3570_v40 = vld [vmem:[%s9169_s16 + $0x448] sm:$0xff] }
 0x97f   :  { %3403 = vmatpush1.bf16.msra.mxu1 %v6801_v47  ;;  %v5914_v47 = vcombine.low %v3490_v36, %v3494_v25 }
 0x980   :  { %3404 = vmatprep.subr.bf16.mxu1 %v6806_v48  ;;  %v8459_v48 = vld [vmem:[%s9169_s16 + $0x400] sm:$0xff] }
 0x983   :  { %3405 = vmatpush1.bf16.msra.mxu1 %v6804_v50  ;;  %v8464_v50 = vld [vmem:[%s9169_s16 + $0x420] sm:$0xff] }
 0x984   :  { %3406 = vmatprep.subr.bf16.mxu1 %v6809_v51  ;;  %v8469_v51 = vld [vmem:[%s9169_s16 + $0x408] sm:$0xff] }
 0x987   :  { %3407 = vmatpush1.bf16.msra.mxu1 %v6807_v52  ;;  %v5923_v52 = vcombine.high %v3498_v44, %v3502_v45 }
 0x988   :  { %3408 = vmatprep.subr.bf16.mxu1 %v6812_v53  ;;  %v5985_v53 = vcombine.high %v8459_v48, %v8464_v50 }
 0x98b   :  { %3409 = vmatpush1.bf16.msra.mxu1 %v6810_v55  ;;  %v8476_v55 = vld [vmem:[%s9169_s16 + $0x428] sm:$0xff] }
 0x98c   :  { %3410 = vmatprep.subr.bf16.mxu1 %v6815_v56  ;;  %v3506_v56 = vld [vmem:[%s9169_s16 + $0x248] sm:$0xff] }
 0x98f   :  { %3411 = vmatpush1.bf16.msra.mxu1 %v6813_v57  ;;  %v3510_v57 = vld [vmem:[%s9169_s16 + $0x268] sm:$0xff] }
 0x990   :  { %3412 = vmatprep.subr.bf16.mxu1 %v6818_v58  ;;  %v5984_v58 = vcombine.low %v8459_v48, %v8464_v50  ;;  %v3586_v48 = vld [vmem:[%s9169_s16 + $0x4c8] sm:$0xff] }
 0x991   :  { %v3590_v50 = vld [vmem:[%s9169_s16 + $0x4e8] sm:$0xff] }
 0x993   :  { %3413 = vmatpush1.bf16.msra.mxu1 %v6816_v59  ;;  %v5986_v59 = vcombine.low %v8469_v51, %v8476_v55 }
 0x994   :  { %3414 = vmatprep.subr.bf16.mxu1 %v6821_v60  ;;  %v5922_v60 = vcombine.low %v3498_v44, %v3502_v45 }
 0x997   :  { %3415 = vmatpush1.bf16.msra.mxu1 %v6819_v61  ;;  %v5931_v61 = vcombine.high %v3506_v56, %v3510_v57 }
 0x998   :  { %3416 = vmatprep.subr.bf16.mxu1 %v6824_v62  ;;  %v3514_v62 = vld [vmem:[%s9169_s16 + $0x288] sm:$0xff] }
 0x99b   :  { %3417 = vmatpush1.bf16.msra.mxu1 %v6822_v63  ;;  %v3518_v63 = vld [vmem:[%s9169_s16 + $0x2a8] sm:$0xff] }
 0x99c   :  { %3418 = vmatprep.subr.bf16.mxu1 %v6827_v0  ;;  %v5930_v0 = vcombine.low %v3506_v56, %v3510_v57  ;;  %v5939_v1 = vcombine.high %v3514_v62, %v3518_v63  ;;  %v3582_v56 = vld [vmem:[%s9169_s16 + $0x4a8] sm:$0xff] }
 0x99f   :  { %3419 = vmatpush1.bf16.msra.mxu1 %v6825_v4  ;;  %v3526_v4 = vld [vmem:[%s9169_s16 + $0x2e8] sm:$0xff] }
 0x9a0   :  { %5097 = vmatprep.subr.bf16.mxu1 %v5859_v7  ;;  %v5938_v7 = vcombine.low %v3514_v62, %v3518_v63  ;;  %v5947_v8 = vcombine.high %v3522_v2, %v3526_v4  ;;  %v3585_v63 = vld [vmem:[%s9169_s16 + $0x4c0] sm:$0xff] }
 0x9a2   :  { %3421 = vmatmul.mubr.bf16.vlgmr.msra.gmra.mrb[20].mxu1 %v8296_v34  ;;  %v3549_v34 = vld [vmem:[%s9169_s16 + $0x3a0] sm:$0xff] }
 0x9a3   :  { %5098 = vmatpush1.bf16.msra.mxu1 %v5858_v11  ;;  %v5969_v17 = vcombine.high %v3545_v33, %v3549_v34  ;;  %v5968_v37 = vcombine.low %v3545_v33, %v3549_v34  ;;  %v3534_v11 = vld [vmem:[%s9169_s16 + $0x328] sm:$0xff] }
 0x9a4   :  { %5099 = vmatprep.subr.bf16.mxu1 %v5867_v13  ;;  %v5946_v13 = vcombine.low %v3522_v2, %v3526_v4  ;;  %v5955_v14 = vcombine.high %v3530_v10, %v3534_v11  ;;  %v3597_v2 = vld [vmem:[%s9169_s16 + $0x520] sm:$0xff]  ;;  %v3594_v4 = vld [vmem:[%s9169_s16 + $0x508] sm:$0xff] }
 0x9a5   :  { %5043 = vmatprep.subr.bf16.mxu0 %v5969_v17 }
 0x9a6   :  { %5044 = vmatpush1.bf16.msra.mxu0 %v5968_v37  ;;  %v3569_v37 = vld [vmem:[%s9169_s16 + $0x440] sm:$0xff] }
 0x9a7   :  { %5100 = vmatpush1.bf16.msra.mxu1 %v5866_v16  ;;  %5045 = vmatprep.subr.bf16.mxu0 %v5977_v42  ;;  %v3542_v16 = vld [vmem:[%s9169_s16 + $0x368] sm:$0xff]  ;;  %v5993_v45 = vcombine.high %v3569_v37, %v3573_v39  ;;  %v5992_v57 = vcombine.low %v3569_v37, %v3573_v39  ;;  %v3625_v37 = vld [vmem:[%s9169_s16 + $0x600] sm:$0xff] }
 0x9a8   :  { %5101 = vmatprep.subr.bf16.mxu1 %v5875_v18  ;;  %v5954_v18 = vcombine.low %v3530_v10, %v3534_v11  ;;  %v5963_v19 = vcombine.high %v3538_v15, %v3542_v16  ;;  %v6010_v10 = vcombine.low %v3586_v48, %v3590_v50  ;;  %v3626_v39 = vld [vmem:[%s9169_s16 + $0x608] sm:$0xff] }
 0x9aa   :  { %5046 = vmatpush1.bf16.msra.mxu0 %v5976_v46 }
 0x9ab   :  { %5102 = vmatpush1.bf16.msra.mxu1 %v5874_v21  ;;  %5056 = vmatprep.subr.bf16.mxu0 %v5985_v53  ;;  %v3550_v21 = vld [vmem:[%s9169_s16 + $0x3a8] sm:$0xff] }
 0x9ac   :  { %5103 = vmatprep.subr.bf16.mxu1 %v5883_v22  ;;  %v5962_v22 = vcombine.low %v3538_v15, %v3542_v16  ;;  %v5971_v23 = vcombine.high %v3546_v20, %v3550_v21  ;;  %v3578_v53 = vld [vmem:[%s9169_s16 + $0x488] sm:$0xff]  ;;  %v3605_v15 = vld [vmem:[%s9169_s16 + $0x560] sm:$0xff] }
 0x9ad   :  { %v6003_v62 = vcombine.high %v3578_v53, %v3582_v56  ;;  %v3602_v16 = vld [vmem:[%s9169_s16 + $0x548] sm:$0xff] }
 0x9af   :  { %5104 = vmatpush1.bf16.msra.mxu1 %v5882_v12  ;;  %v3558_v12 = vld [vmem:[%s9169_s16 + $0x3e8] sm:$0xff] }
 0x9b0   :  { %5105 = vmatprep.subr.bf16.mxu1 %v5891_v26  ;;  %v5970_v26 = vcombine.low %v3546_v20, %v3550_v21  ;;  %v5979_v9 = vcombine.high %v3554_v24, %v3558_v12  ;;  %v5978_v27 = vcombine.low %v3554_v24, %v3558_v12  ;;  %v3613_v24 = vld [vmem:[%s9169_s16 + $0x5a0] sm:$0xff]  ;;  %v3610_v12 = vld [vmem:[%s9169_s16 + $0x588] sm:$0xff] }
 0x9b3   :  { %5106 = vmatpush1.bf16.msra.mxu1 %v5890_v28  ;;  %v5987_v28 = vcombine.high %v8469_v51, %v8476_v55  ;;  %v6002_v55 = vcombine.low %v3578_v53, %v3582_v56  ;;  %v3637_v53 = vld [vmem:[%s9169_s16 + $0x660] sm:$0xff]  ;;  %v3634_v56 = vld [vmem:[%s9169_s16 + $0x648] sm:$0xff] }
 0x9b4   :  { %5107 = vmatprep.subr.bf16.mxu1 %v5899_v29  ;;  %v8529_v29 = vld [vmem:[%s9171_s15] sm:$0xf] }
 0x9b5   :  { %v3010_v30 = vrot.slane %v8529_v29, %v7878_v3  ;;  %v3014_v31 = vrot.slane %v8529_v29, %v7886_v5 }
 0x9b7   :  { %5108 = vmatpush1.bf16.msra.mxu1 %v5898_v32 }
 0x9b8   :  { %5109 = vmatprep.subr.bf16.mxu1 %v5907_v35 }
 0x9bb   :  { %5110 = vmatpush1.bf16.msra.mxu1 %v5906_v38 }
 0x9bc   :  { %5111 = vmatprep.subr.bf16.mxu1 %v5915_v41  ;;  %v3574_v41 = vld [vmem:[%s9169_s16 + $0x468] sm:$0xff] }
 0x9bd   :  { %v5995_v46 = vcombine.high %v3570_v40, %v3574_v41 }
 0x9bf   :  { %5112 = vmatpush1.bf16.msra.mxu1 %v5914_v47  ;;  %v3577_v47 = vld [vmem:[%s9169_s16 + $0x480] sm:$0xff] }
 0x9c0   :  { %5113 = vmatprep.subr.bf16.mxu1 %v5923_v52  ;;  %v3581_v52 = vld [vmem:[%s9169_s16 + $0x4a0] sm:$0xff] }
 0x9c1   :  { %v6000_v51 = vcombine.low %v3577_v47, %v3581_v52 }
 0x9c3   :  { %5114 = vmatpush1.bf16.msra.mxu1 %v5922_v60  ;;  %v5994_v60 = vcombine.low %v3570_v40, %v3574_v41  ;;  %v3630_v40 = vld [vmem:[%s9169_s16 + $0x628] sm:$0xff] }
 0x9c4   :  { %5115 = vmatprep.subr.bf16.mxu1 %v5931_v61  ;;  %v6001_v61 = vcombine.high %v3577_v47, %v3581_v52  ;;  %v6051_v47 = vcombine.high %v3626_v39, %v3630_v40  ;;  %v3633_v52 = vld [vmem:[%s9169_s16 + $0x640] sm:$0xff] }
 0x9c7   :  { %5116 = vmatpush1.bf16.msra.mxu1 %v5930_v0  ;;  %v3589_v0 = vld [vmem:[%s9169_s16 + $0x4e0] sm:$0xff] }
 0x9c8   :  { %5117 = vmatprep.subr.bf16.mxu1 %v5939_v1  ;;  %v3593_v1 = vld [vmem:[%s9169_s16 + $0x500] sm:$0xff] }
 0x9c9   :  { %v6017_v11 = vcombine.high %v3593_v1, %v3597_v2 }
 0x9cb   :  { %5118 = vmatpush1.bf16.msra.mxu1 %v5938_v7  ;;  %v3598_v7 = vld [vmem:[%s9169_s16 + $0x528] sm:$0xff] }
 0x9cc   :  { %5119 = vmatprep.subr.bf16.mxu1 %v5947_v8  ;;  %v6008_v8 = vcombine.low %v3585_v63, %v3589_v0  ;;  %v6018_v20 = vcombine.low %v3594_v4, %v3598_v7 }
 0x9cf   :  { %5120 = vmatpush1.bf16.msra.mxu1 %v5946_v13  ;;  %v6019_v13 = vcombine.high %v3594_v4, %v3598_v7  ;;  %v3653_v4 = vld [vmem:[%s9169_s16 + $0x6e0] sm:$0xff]  ;;  %v3650_v7 = vld [vmem:[%s9169_s16 + $0x6c8] sm:$0xff] }
 0x9d0   :  { %5121 = vmatprep.subr.bf16.mxu1 %v5955_v14  ;;  %v3601_v14 = vld [vmem:[%s9169_s16 + $0x540] sm:$0xff] }
 0x9d1   :  { %v6025_v21 = vcombine.high %v3601_v14, %v3605_v15 }
 0x9d3   :  { %5122 = vmatpush1.bf16.msra.mxu1 %v5954_v18  ;;  %v3606_v18 = vld [vmem:[%s9169_s16 + $0x568] sm:$0xff] }
 0x9d4   :  { %5123 = vmatprep.subr.bf16.mxu1 %v5963_v19  ;;  %v6016_v19 = vcombine.low %v3593_v1, %v3597_v2  ;;  %v3649_v2 = vld [vmem:[%s9169_s16 + $0x6c0] sm:$0xff] }
 0x9d7   :  { %5124 = vmatpush1.bf16.msra.mxu1 %v5962_v22  ;;  %v6027_v22 = vcombine.high %v3602_v16, %v3606_v18 }
 0x9d8   :  { %5125 = vmatprep.subr.bf16.mxu1 %v5971_v23  ;;  %v3609_v23 = vld [vmem:[%s9169_s16 + $0x580] sm:$0xff] }
 0x9db   :  { %5126 = vmatpush1.bf16.msra.mxu1 %v5970_v26  ;;  %v3614_v26 = vld [vmem:[%s9169_s16 + $0x5a8] sm:$0xff] }
 0x9dc   :  { %5127 = vmatprep.subr.bf16.mxu1 %v5979_v9  ;;  %v6024_v9 = vcombine.low %v3601_v14, %v3605_v15  ;;  %v3657_v15 = vld [vmem:[%s9169_s16 + $0x700] sm:$0xff] }
 0x9df   :  { %5128 = vmatpush1.bf16.msra.mxu1 %v5978_v27  ;;  %v6026_v27 = vcombine.low %v3602_v16, %v3606_v18  ;;  %v3661_v16 = vld [vmem:[%s9169_s16 + $0x720] sm:$0xff]  ;;  %v3658_v18 = vld [vmem:[%s9169_s16 + $0x708] sm:$0xff] }
 0x9e0   :  { %5138 = vmatprep.subr.bf16.mxu1 %v5987_v28  ;;  %v6033_v28 = vcombine.high %v3609_v23, %v3613_v24 }
 0xa35   :  { %v3381_v32 = vpop.f32.mrb[16].mxu1 }
 0xa36   :  { %v3382_v33 = vadd.f32 %v3381_v32, %v3010_v30  ;;  %v3383_v34 = vpop.f32.mrb[17].mxu1  ;;  %v6035_v30 = vcombine.high %v3610_v12, %v3614_v26  ;;  %v3621_v32 = vld [vmem:[%s9169_s16 + $0x5e0] sm:$0xff] }
 0xa37   :  { %v3384_v35 = vadd.f32 %v3383_v34, %v3014_v31  ;;  %v3385_v17 = vpop.f32.mrb[18].mxu1  ;;  %v3617_v31 = vld [vmem:[%s9169_s16 + $0x5c0] sm:$0xff]  ;;  %v3622_v34 = vld [vmem:[%s9169_s16 + $0x5e8] sm:$0xff] }
 0xa38   :  { %v3429_v36 = vmax.f32 %v3382_v33, 0.0  ;;  %v3386_v25 = vpop.f32.mrb[19].mxu1  ;;  %v3618_v33 = vld [vmem:[%s9169_s16 + $0x5c8] sm:$0xff]  ;;  %v6034_v17 = vcombine.low %v3610_v12, %v3614_v26  ;;  %v6040_v41 = vcombine.low %v3617_v31, %v3621_v32  ;;  %v3669_v12 = vld [vmem:[%s9169_s16 + $0x760] sm:$0xff] }
 0xa39   :  { %v3430_v38 = vmax.f32 %v3384_v35, 0.0  ;;  %v6032_v35 = vcombine.low %v3609_v23, %v3613_v24  ;;  %v6043_v25 = vcombine.high %v3618_v33, %v3622_v34  ;;  %v3665_v24 = vld [vmem:[%s9169_s16 + $0x740] sm:$0xff]  ;;  %v3666_v26 = vld [vmem:[%s9169_s16 + $0x748] sm:$0xff] }
 0xa3a   :  { %v8549_v44 = vpack.c.bf16 %v3429_v36, %v3429_v36  ;;  %v6041_v36 = vcombine.high %v3617_v31, %v3621_v32  ;;  %v3673_v32 = vld [vmem:[%s9169_s16 + $0x780] sm:$0xff] }
 0xa3b   :  { %v8547_v42 = vpack.c.bf16 %v3430_v38, %v3430_v38  ;;  %v3629_v38 = vld [vmem:[%s9169_s16 + $0x620] sm:$0xff] }
 0xa3d   :  { %5047 = vmatprep.mubr.bf16.mxu0 %v8547_v42  ;;  %5129 = vmatprep.mubr.bf16.mxu1 %v8547_v42 }
 0xa3e   :  { %5048 = vmatmul.mubr.bf16.vlgmr.msra.gmra.mrb[12].mxu0 %v8549_v44  ;;  %5130 = vmatmul.mubr.bf16.vlgmr.msra.gmra.mrb[24].mxu1 %v8549_v44 }
 0xa3f   :  { %5057 = vmatpush1.bf16.msra.mxu0 %v5984_v58  ;;  %5139 = vmatpush1.bf16.msra.mxu1 %v5986_v59  ;;  %v6009_v58 = vcombine.high %v3585_v63, %v3589_v0  ;;  %v6011_v59 = vcombine.high %v3586_v48, %v3590_v50  ;;  %v3641_v0 = vld [vmem:[%s9169_s16 + $0x680] sm:$0xff]  ;;  %v3642_v50 = vld [vmem:[%s9169_s16 + $0x688] sm:$0xff] }
 0xa40   :  { %5058 = vmatprep.subr.bf16.mxu0 %v5993_v45  ;;  %5140 = vmatprep.subr.bf16.mxu1 %v5995_v46  ;;  %v6042_v45 = vcombine.low %v3618_v33, %v3622_v34  ;;  %v6049_v46 = vcombine.high %v3625_v37, %v3629_v38  ;;  %v3645_v48 = vld [vmem:[%s9169_s16 + $0x6a0] sm:$0xff]  ;;  %v3674_v34 = vld [vmem:[%s9169_s16 + $0x788] sm:$0xff] }
 0xa41   :  { %v3677_v33 = vld [vmem:[%s9169_s16 + $0x7a0] sm:$0xff] }
 0xa43   :  { %5059 = vmatpush1.bf16.msra.mxu0 %v5992_v57  ;;  %5141 = vmatpush1.bf16.msra.mxu1 %v5994_v60  ;;  %v3638_v57 = vld [vmem:[%s9169_s16 + $0x668] sm:$0xff]  ;;  %v6048_v60 = vcombine.low %v3625_v37, %v3629_v38  ;;  %v3681_v38 = vld [vmem:[%s9169_s16 + $0x7c0] sm:$0xff] }
 0xa44   :  { %5060 = vmatprep.subr.bf16.mxu0 %v6001_v61  ;;  %5142 = vmatprep.subr.bf16.mxu1 %v6003_v62  ;;  %v6050_v61 = vcombine.low %v3626_v39, %v3630_v40  ;;  %v6057_v62 = vcombine.high %v3633_v52, %v3637_v53  ;;  %v6059_v63 = vcombine.high %v3634_v56, %v3638_v57  ;;  %v3685_v39 = vld [vmem:[%s9169_s16 + $0x7e0] sm:$0xff]  ;;  %v3682_v40 = vld [vmem:[%s9169_s16 + $0x7c8] sm:$0xff] }
 0xa47   :  { %5061 = vmatpush1.bf16.msra.mxu0 %v6000_v51  ;;  %5143 = vmatpush1.bf16.msra.mxu1 %v6002_v55  ;;  %v3646_v51 = vld [vmem:[%s9169_s16 + $0x6a8] sm:$0xff]  ;;  %v6056_v55 = vcombine.low %v3633_v52, %v3637_v53  ;;  %v6105_v53 = vcombine.high %v3681_v38, %v3685_v39 }
 0xa48   :  { %5062 = vmatprep.subr.bf16.mxu0 %v6009_v58  ;;  %5144 = vmatprep.subr.bf16.mxu1 %v6011_v59  ;;  %v6058_v58 = vcombine.low %v3634_v56, %v3638_v57  ;;  %v6065_v59 = vcombine.high %v3641_v0, %v3645_v48  ;;  %v6067_v1 = vcombine.high %v3642_v50, %v3646_v51  ;;  %v3435_v57 = vld [vmem:[%s9169_s16 + $0x10] sm:$0xff] }
 0xa4b   :  { %5063 = vmatpush1.bf16.msra.mxu0 %v6008_v8  ;;  %5145 = vmatpush1.bf16.msra.mxu1 %v6010_v10  ;;  %v3654_v8 = vld [vmem:[%s9169_s16 + $0x6e8] sm:$0xff]  ;;  %v6064_v10 = vcombine.low %v3641_v0, %v3645_v48 }
 0xa4c   :  { %5064 = vmatprep.subr.bf16.mxu0 %v6017_v11  ;;  %5146 = vmatprep.subr.bf16.mxu1 %v6019_v13  ;;  %v6066_v11 = vcombine.low %v3642_v50, %v3646_v51  ;;  %v6073_v13 = vcombine.high %v3649_v2, %v3653_v4  ;;  %v6075_v14 = vcombine.high %v3650_v7, %v3654_v8 }
 0xa4d   :  { %v6104_v51 = vcombine.low %v3681_v38, %v3685_v39 }
 0xa4f   :  { %5065 = vmatpush1.bf16.msra.mxu0 %v6016_v19  ;;  %5147 = vmatpush1.bf16.msra.mxu1 %v6018_v20  ;;  %v3662_v19 = vld [vmem:[%s9169_s16 + $0x728] sm:$0xff]  ;;  %v6072_v20 = vcombine.low %v3649_v2, %v3653_v4 }
 0xa50   :  { %5066 = vmatprep.subr.bf16.mxu0 %v6025_v21  ;;  %5148 = vmatprep.subr.bf16.mxu1 %v6027_v22  ;;  %v6074_v21 = vcombine.low %v3650_v7, %v3654_v8  ;;  %v6081_v22 = vcombine.high %v3657_v15, %v3661_v16  ;;  %v6083_v23 = vcombine.high %v3658_v18, %v3662_v19  ;;  %v3443_v7 = vld [vmem:[%s9169_s16 + $0x50] sm:$0xff] }
 0xa51   :  { %v3447_v8 = vld [vmem:[%s9169_s16 + $0x70] sm:$0xff] }
 0xa53   :  { %5067 = vmatpush1.bf16.msra.mxu0 %v6024_v9  ;;  %5149 = vmatpush1.bf16.msra.mxu1 %v6026_v27  ;;  %v3670_v9 = vld [vmem:[%s9169_s16 + $0x768] sm:$0xff]  ;;  %v6080_v27 = vcombine.low %v3657_v15, %v3661_v16 }
 0xa54   :  { %5068 = vmatprep.subr.bf16.mxu0 %v6033_v28  ;;  %5150 = vmatprep.subr.bf16.mxu1 %v6035_v30  ;;  %v6082_v28 = vcombine.low %v3658_v18, %v3662_v19  ;;  %v6089_v30 = vcombine.high %v3665_v24, %v3669_v12  ;;  %v6091_v31 = vcombine.high %v3666_v26, %v3670_v9 }
 0xa55   :  { %v5869_v18 = vcombine.high %v3443_v7, %v3447_v8 }
 0xa57   :  { %5069 = vmatpush1.bf16.msra.mxu0 %v6032_v35  ;;  %5151 = vmatpush1.bf16.msra.mxu1 %v6034_v17  ;;  %v3678_v35 = vld [vmem:[%s9169_s16 + $0x7a8] sm:$0xff]  ;;  %v6088_v17 = vcombine.low %v3665_v24, %v3669_v12  ;;  %v5868_v24 = vcombine.low %v3443_v7, %v3447_v8  ;;  %v3499_v8 = vld [vmem:[%s9169_s16 + $0x210] sm:$0xff] }
 0xa58   :  { %5070 = vmatprep.subr.bf16.mxu0 %v6041_v36  ;;  %5152 = vmatprep.subr.bf16.mxu1 %v6043_v25  ;;  %v6090_v36 = vcombine.low %v3666_v26, %v3670_v9  ;;  %v6097_v25 = vcombine.high %v3673_v32, %v3677_v33  ;;  %v6099_v37 = vcombine.high %v3674_v34, %v3678_v35 }
 0xa59   :  { %v6098_v52 = vcombine.low %v3674_v34, %v3678_v35  ;;  %v3467_v35 = vld [vmem:[%s9169_s16 + $0x110] sm:$0xff] }
 0xa5b   :  { %5071 = vmatpush1.bf16.msra.mxu0 %v6040_v41  ;;  %5153 = vmatpush1.bf16.msra.mxu1 %v6042_v45  ;;  %v3686_v41 = vld [vmem:[%s9169_s16 + $0x7e8] sm:$0xff]  ;;  %v3018_v45 = vrot.slane %v8529_v29, %v7975_v54 }
 0xa5c   :  { %5072 = vmatprep.subr.bf16.mxu0 %v6049_v46  ;;  %5154 = vmatprep.subr.bf16.mxu1 %v6051_v47  ;;  %v3022_v46 = vrot.slane %v8529_v29, %v7889_v6  ;;  %v6096_v47 = vcombine.low %v3673_v32, %v3677_v33  ;;  %v6107_v56 = vcombine.high %v3682_v40, %v3686_v41  ;;  %v3440_v29 = vld [vmem:[%s9169_s16 + $0x38] sm:$0xff] }
 0xa5f   :  { %5073 = vmatpush1.bf16.msra.mxu0 %v6048_v60  ;;  %5155 = vmatpush1.bf16.msra.mxu1 %v6050_v61  ;;  %v3439_v61 = vld [vmem:[%s9169_s16 + $0x30] sm:$0xff] }
 0xa60   :  { %5074 = vmatprep.subr.bf16.mxu0 %v6057_v62  ;;  %5156 = vmatprep.subr.bf16.mxu1 %v6059_v63  ;;  %v3436_v62 = vld [vmem:[%s9169_s16 + $0x18] sm:$0xff] }
 0xa61   :  { %v5863_v2 = vcombine.high %v3436_v62, %v3440_v29  ;;  %v5862_v16 = vcombine.low %v3436_v62, %v3440_v29  ;;  %v3484_v62 = vld [vmem:[%s9169_s16 + $0x198] sm:$0xff] }
 0xa62   :  { %v3488_v29 = vld [vmem:[%s9169_s16 + $0x1b8] sm:$0xff] }
 0xa63   :  { %5075 = vmatpush1.bf16.msra.mxu0 %v6056_v55  ;;  %5157 = vmatpush1.bf16.msra.mxu1 %v6058_v58  ;;  %v6106_v55 = vcombine.low %v3682_v40, %v3686_v41  ;;  %v3475_v41 = vld [vmem:[%s9169_s16 + $0x150] sm:$0xff] }
 0xa64   :  { %5076 = vmatprep.subr.bf16.mxu0 %v6065_v59  ;;  %5158 = vmatprep.subr.bf16.mxu1 %v6067_v1  ;;  %v5861_v1 = vcombine.high %v3435_v57, %v3439_v61 }
 0xa67   :  { %5077 = vmatpush1.bf16.msra.mxu0 %v6064_v10  ;;  %5159 = vmatpush1.bf16.msra.mxu1 %v6066_v11  ;;  %v3444_v10 = vld [vmem:[%s9169_s16 + $0x58] sm:$0xff] }
 0xa68   :  { %5078 = vmatprep.subr.bf16.mxu0 %v6073_v13  ;;  %5160 = vmatprep.subr.bf16.mxu1 %v6075_v14  ;;  %v3448_v11 = vld [vmem:[%s9169_s16 + $0x78] sm:$0xff]  ;;  %v5860_v14 = vcombine.low %v3435_v57, %v3439_v61  ;;  %v3487_v61 = vld [vmem:[%s9169_s16 + $0x1b0] sm:$0xff] }
 0xa69   :  { %v5871_v19 = vcombine.high %v3444_v10, %v3448_v11  ;;  %v5870_v12 = vcombine.low %v3444_v10, %v3448_v11  ;;  %v3503_v10 = vld [vmem:[%s9169_s16 + $0x230] sm:$0xff]  ;;  %v3500_v11 = vld [vmem:[%s9169_s16 + $0x218] sm:$0xff] }
 0xa6b   :  { %5079 = vmatpush1.bf16.msra.mxu0 %v6072_v20  ;;  %5161 = vmatpush1.bf16.msra.mxu1 %v6074_v21  ;;  %v3451_v20 = vld [vmem:[%s9169_s16 + $0x90] sm:$0xff] }
 0xa6c   :  { %5080 = vmatprep.subr.bf16.mxu0 %v6081_v22  ;;  %5162 = vmatprep.subr.bf16.mxu1 %v6083_v23  ;;  %v3455_v21 = vld [vmem:[%s9169_s16 + $0xb0] sm:$0xff]  ;;  %v3452_v22 = vld [vmem:[%s9169_s16 + $0x98] sm:$0xff] }
 0xa6d   :  { %v3456_v23 = vld [vmem:[%s9169_s16 + $0xb8] sm:$0xff]  ;;  %v5877_v26 = vcombine.high %v3451_v20, %v3455_v21 }
 0xa6e   :  { %v5879_v9 = vcombine.high %v3452_v22, %v3456_v23  ;;  %v5878_v32 = vcombine.low %v3452_v22, %v3456_v23  ;;  %v3511_v22 = vld [vmem:[%s9169_s16 + $0x270] sm:$0xff]  ;;  %v3508_v23 = vld [vmem:[%s9169_s16 + $0x258] sm:$0xff] }
 0xa6f   :  { %5081 = vmatpush1.bf16.msra.mxu0 %v6080_v27  ;;  %5163 = vmatpush1.bf16.msra.mxu1 %v6082_v28  ;;  %v3459_v27 = vld [vmem:[%s9169_s16 + $0xd0] sm:$0xff] }
 0xa70   :  { %5082 = vmatprep.subr.bf16.mxu0 %v6089_v30  ;;  %5164 = vmatprep.subr.bf16.mxu1 %v6091_v31  ;;  %v3463_v28 = vld [vmem:[%s9169_s16 + $0xf0] sm:$0xff]  ;;  %v3460_v30 = vld [vmem:[%s9169_s16 + $0xd8] sm:$0xff]  ;;  %v5876_v31 = vcombine.low %v3451_v20, %v3455_v21 }
 0xa71   :  { %v5885_v33 = vcombine.high %v3459_v27, %v3463_v28  ;;  %v3507_v21 = vld [vmem:[%s9169_s16 + $0x250] sm:$0xff] }
 0xa73   :  { %5083 = vmatpush1.bf16.msra.mxu0 %v6088_v17  ;;  %5165 = vmatpush1.bf16.msra.mxu1 %v6090_v36  ;;  %v3471_v17 = vld [vmem:[%s9169_s16 + $0x130] sm:$0xff]  ;;  %v3468_v36 = vld [vmem:[%s9169_s16 + $0x118] sm:$0xff] }
 0xa74   :  { %5084 = vmatprep.subr.bf16.mxu0 %v6097_v25  ;;  %5166 = vmatprep.subr.bf16.mxu1 %v6099_v37  ;;  %v3472_v25 = vld [vmem:[%s9169_s16 + $0x138] sm:$0xff]  ;;  %v5884_v37 = vcombine.low %v3459_v27, %v3463_v28  ;;  %v5893_v39 = vcombine.high %v3467_v35, %v3471_v17  ;;  %v3515_v28 = vld [vmem:[%s9169_s16 + $0x290] sm:$0xff] }
 0xa75   :  { %v3422_v60 = vpop.f32.mrb[20].mxu1  ;;  %v5895_v40 = vcombine.high %v3468_v36, %v3472_v25 }
 0xa76   :  { %v3423_v63 = vadd.f32 %v3422_v60, %v3018_v45  ;;  %v3424_v0 = vpop.f32.mrb[21].mxu1  ;;  %v3479_v45 = vld [vmem:[%s9169_s16 + $0x170] sm:$0xff] }
 0xa77   :  { %v3425_v48 = vadd.f32 %v3424_v0, %v3022_v46  ;;  %v3426_v50 = vpop.f32.mrb[22].mxu1  ;;  %5085 = vmatpush1.bf16.msra.mxu0 %v6096_v47  ;;  %5167 = vmatpush1.bf16.msra.mxu1 %v6098_v52  ;;  %v3476_v46 = vld [vmem:[%s9169_s16 + $0x158] sm:$0xff]  ;;  %v5892_v52 = vcombine.low %v3467_v35, %v3471_v17  ;;  %v3483_v60 = vld [vmem:[%s9169_s16 + $0x190] sm:$0xff] }
 0xa78   :  { %v3431_v58 = vmax.f32 %v3423_v63, 0.0  ;;  %v3427_v59 = vpop.f32.mrb[23].mxu1  ;;  %5086 = vmatprep.subr.bf16.mxu0 %v6105_v53  ;;  %5168 = vmatprep.subr.bf16.mxu1 %v6107_v56  ;;  %v3480_v47 = vld [vmem:[%s9169_s16 + $0x178] sm:$0xff]  ;;  %v5894_v53 = vcombine.low %v3468_v36, %v3472_v25  ;;  %v5901_v56 = vcombine.high %v3475_v41, %v3479_v45  ;;  %v5900_v63 = vcombine.low %v3475_v41, %v3479_v45  ;;  %v3523_v17 = vld [vmem:[%s9169_s16 + $0x2d0] sm:$0xff] }
 0xa79   :  { %v3432_v4 = vmax.f32 %v3425_v48, 0.0  ;;  %v5903_v57 = vcombine.high %v3476_v46, %v3480_v47  ;;  %v5902_v0 = vcombine.low %v3476_v46, %v3480_v47  ;;  %v5909_v48 = vcombine.high %v3483_v60, %v3487_v61  ;;  %v3496_v59 = vld [vmem:[%s9169_s16 + $0x1f8] sm:$0xff]  ;;  %v3527_v36 = vld [vmem:[%s9169_s16 + $0x2f0] sm:$0xff] }
 0xa7a   :  { %v8759_v15 = vpack.c.bf16 %v3431_v58, %v3431_v58  ;;  %v5911_v50 = vcombine.high %v3484_v62, %v3488_v29  ;;  %v3492_v58 = vld [vmem:[%s9169_s16 + $0x1d8] sm:$0xff]  ;;  %v3531_v45 = vld [vmem:[%s9169_s16 + $0x310] sm:$0xff] }
 0xa7b   :  { %v8757_v13 = vpack.c.bf16 %v3432_v4, %v3432_v4  ;;  %5087 = vmatpush1.bf16.msra.mxu0 %v6104_v51  ;;  %5169 = vmatpush1.bf16.msra.mxu1 %v6106_v55  ;;  %v3491_v51 = vld [vmem:[%s9169_s16 + $0x1d0] sm:$0xff]  ;;  %v5919_v7 = vcombine.high %v3492_v58, %v3496_v59  ;;  %v3524_v25 = vld [vmem:[%s9169_s16 + $0x2d8] sm:$0xff] }
 0xa7c   :  { %5179 = vmatprep.subr.bf16.mxu0 %v5861_v1  ;;  %5261 = vmatprep.subr.bf16.mxu1 %v5863_v2  ;;  %v3495_v55 = vld [vmem:[%s9169_s16 + $0x1f0] sm:$0xff]  ;;  %v5908_v1 = vcombine.low %v3483_v60, %v3487_v61  ;;  %v5910_v2 = vcombine.low %v3484_v62, %v3488_v29  ;;  %v3532_v47 = vld [vmem:[%s9169_s16 + $0x318] sm:$0xff] }
 0xa7d   :  { %5088 = vmatprep.mubr.bf16.mxu0 %v8757_v13  ;;  %5170 = vmatprep.mubr.bf16.mxu1 %v8757_v13  ;;  %v5917_v4 = vcombine.high %v3491_v51, %v3495_v55  ;;  %v3535_v46 = vld [vmem:[%s9169_s16 + $0x330] sm:$0xff]  ;;  %v3540_v29 = vld [vmem:[%s9169_s16 + $0x358] sm:$0xff] }
 0xa7e   :  { %5089 = vmatmul.mubr.bf16.vlgmr.msra.gmra.mrb[12].mxu0 %v8759_v15  ;;  %5171 = vmatmul.mubr.bf16.vlgmr.msra.gmra.mrb[24].mxu1 %v8759_v15  ;;  %v3539_v61 = vld [vmem:[%s9169_s16 + $0x350] sm:$0xff] }
 0xa7f   :  { %5180 = vmatpush1.bf16.msra.mxu0 %v5860_v14  ;;  %5211 = vmatprep.mubr.bf16.mxu0 %v8547_v42  ;;  %v3504_v14 = vld [vmem:[%s9169_s16 + $0x238] sm:$0xff]  ;;  %v3543_v62 = vld [vmem:[%s9169_s16 + $0x370] sm:$0xff] }
 0xa80   :  { %5262 = vmatpush1.bf16.msra.mxu1 %v5862_v16  ;;  %5293 = vmatprep.mubr.bf16.mxu1 %v8547_v42  ;;  %v3464_v42 = vld [vmem:[%s9169_s16 + $0xf8] sm:$0xff]  ;;  %v5916_v16 = vcombine.low %v3491_v51, %v3495_v55  ;;  %v5927_v20 = vcombine.high %v3500_v11, %v3504_v14  ;;  %v3547_v55 = vld [vmem:[%s9169_s16 + $0x390] sm:$0xff] }
 0xa81   :  { %5181 = vmatprep.subr.bf16.mxu0 %v5869_v18  ;;  %5263 = vmatprep.subr.bf16.mxu1 %v5871_v19  ;;  %v5887_v34 = vcombine.high %v3460_v30, %v3464_v42  ;;  %v5886_v38 = vcombine.low %v3460_v30, %v3464_v42  ;;  %v5918_v18 = vcombine.low %v3492_v58, %v3496_v59  ;;  %v3519_v30 = vld [vmem:[%s9169_s16 + $0x2b0] sm:$0xff]  ;;  %v3516_v42 = vld [vmem:[%s9169_s16 + $0x298] sm:$0xff] }
 0xa82   :  { %v5925_v19 = vcombine.high %v3499_v8, %v3503_v10  ;;  %v3551_v58 = vld [vmem:[%s9169_s16 + $0x3b0] sm:$0xff]  ;;  %v3548_v59 = vld [vmem:[%s9169_s16 + $0x398] sm:$0xff] }
 0xa83   :  { %5182 = vmatpush1.bf16.msra.mxu0 %v5868_v24  ;;  %v3512_v24 = vld [vmem:[%s9169_s16 + $0x278] sm:$0xff] }
 0xa84   :  { %5264 = vmatpush1.bf16.msra.mxu1 %v5870_v12  ;;  %5183 = vmatprep.subr.bf16.mxu0 %v5877_v26  ;;  %v5924_v12 = vcombine.low %v3499_v8, %v3503_v10  ;;  %v5926_v26 = vcombine.low %v3500_v11, %v3504_v14  ;;  %v5935_v27 = vcombine.high %v3508_v23, %v3512_v24  ;;  %v3555_v10 = vld [vmem:[%s9169_s16 + $0x3d0] sm:$0xff]  ;;  %v3556_v14 = vld [vmem:[%s9169_s16 + $0x3d8] sm:$0xff] }
 0xa85   :  { %5265 = vmatprep.subr.bf16.mxu1 %v5879_v9  ;;  %v5933_v9 = vcombine.high %v3507_v21, %v3511_v22  ;;  %v3559_v11 = vld [vmem:[%s9169_s16 + $0x3f0] sm:$0xff] }
 0xa87   :  { %5184 = vmatpush1.bf16.msra.mxu0 %v5876_v31  ;;  %v3520_v31 = vld [vmem:[%s9169_s16 + $0x2b8] sm:$0xff] }
 0xa88   :  { %5266 = vmatpush1.bf16.msra.mxu1 %v5878_v32  ;;  %5185 = vmatprep.subr.bf16.mxu0 %v5885_v33  ;;  %v5932_v32 = vcombine.low %v3507_v21, %v3511_v22  ;;  %v5934_v33 = vcombine.low %v3508_v23, %v3512_v24  ;;  %v5943_v35 = vcombine.high %v3516_v42, %v3520_v31  ;;  %v3563_v22 = vld [vmem:[%s9169_s16 + $0x410] sm:$0xff]  ;;  %v3564_v24 = vld [vmem:[%s9169_s16 + $0x418] sm:$0xff] }
 0xa89   :  { %5267 = vmatprep.subr.bf16.mxu1 %v5887_v34  ;;  %v5941_v34 = vcombine.high %v3515_v28, %v3519_v30  ;;  %v3567_v23 = vld [vmem:[%s9169_s16 + $0x430] sm:$0xff] }
 0xa8b   :  { %5186 = vmatpush1.bf16.msra.mxu0 %v5884_v37  ;;  %v3528_v37 = vld [vmem:[%s9169_s16 + $0x2f8] sm:$0xff] }
 0xa8c   :  { %5268 = vmatpush1.bf16.msra.mxu1 %v5886_v38  ;;  %5187 = vmatprep.subr.bf16.mxu0 %v5893_v39  ;;  %v5940_v38 = vcombine.low %v3515_v28, %v3519_v30  ;;  %v5942_v39 = vcombine.low %v3516_v42, %v3520_v31  ;;  %v5951_v41 = vcombine.high %v3524_v25, %v3528_v37  ;;  %v3571_v30 = vld [vmem:[%s9169_s16 + $0x450] sm:$0xff] }
 0xa8d   :  { %5269 = vmatprep.subr.bf16.mxu1 %v5895_v40  ;;  %v5949_v40 = vcombine.high %v3523_v17, %v3527_v36  ;;  %v3575_v42 = vld [vmem:[%s9169_s16 + $0x470] sm:$0xff]  ;;  %v5988_v31 = vcombine.low %v3563_v22, %v3567_v23 }
 0xa8f   :  { %5188 = vmatpush1.bf16.msra.mxu0 %v5892_v52  ;;  %v3536_v52 = vld [vmem:[%s9169_s16 + $0x338] sm:$0xff] }
 0xa90   :  { %5270 = vmatpush1.bf16.msra.mxu1 %v5894_v53  ;;  %5189 = vmatprep.subr.bf16.mxu0 %v5901_v56  ;;  %v5948_v53 = vcombine.low %v3523_v17, %v3527_v36  ;;  %v5950_v56 = vcombine.low %v3524_v25, %v3528_v37  ;;  %v5959_v60 = vcombine.high %v3532_v47, %v3536_v52  ;;  %v3579_v17 = vld [vmem:[%s9169_s16 + $0x490] sm:$0xff]  ;;  %v3580_v37 = vld [vmem:[%s9169_s16 + $0x498] sm:$0xff] }
 0xa91   :  { %5271 = vmatprep.subr.bf16.mxu1 %v5903_v57  ;;  %v5957_v57 = vcombine.high %v3531_v45, %v3535_v46  ;;  %v3583_v36 = vld [vmem:[%s9169_s16 + $0x4b0] sm:$0xff] }
 0xa93   :  { %5190 = vmatpush1.bf16.msra.mxu0 %v5900_v63  ;;  %v3544_v63 = vld [vmem:[%s9169_s16 + $0x378] sm:$0xff] }
 0xa94   :  { %5272 = vmatpush1.bf16.msra.mxu1 %v5902_v0  ;;  %5191 = vmatprep.subr.bf16.mxu0 %v5909_v48  ;;  %v5956_v0 = vcombine.low %v3531_v45, %v3535_v46  ;;  %v5958_v48 = vcombine.low %v3532_v47, %v3536_v52  ;;  %v5967_v51 = vcombine.high %v3540_v29, %v3544_v63  ;;  %v3587_v46 = vld [vmem:[%s9169_s16 + $0x4d0] sm:$0xff]  ;;  %v3592_v52 = vld [vmem:[%s9169_s16 + $0x4f8] sm:$0xff] }
 0xa95   :  { %5273 = vmatprep.subr.bf16.mxu1 %v5911_v50  ;;  %v5965_v50 = vcombine.high %v3539_v61, %v3543_v62  ;;  %v3591_v47 = vld [vmem:[%s9169_s16 + $0x4f0] sm:$0xff] }
 0xa97   :  { %5192 = vmatpush1.bf16.msra.mxu0 %v5908_v1  ;;  %v3552_v1 = vld [vmem:[%s9169_s16 + $0x3b8] sm:$0xff] }
 0xa98   :  { %5274 = vmatpush1.bf16.msra.mxu1 %v5910_v2  ;;  %5193 = vmatprep.subr.bf16.mxu0 %v5917_v4  ;;  %v5964_v2 = vcombine.low %v3539_v61, %v3543_v62  ;;  %v5966_v4 = vcombine.low %v3540_v29, %v3544_v63  ;;  %v5975_v8 = vcombine.high %v3548_v59, %v3552_v1  ;;  %v3599_v61 = vld [vmem:[%s9169_s16 + $0x530] sm:$0xff]  ;;  %v3596_v62 = vld [vmem:[%s9169_s16 + $0x518] sm:$0xff] }
 0xa99   :  { %5275 = vmatprep.subr.bf16.mxu1 %v5919_v7  ;;  %v5973_v7 = vcombine.high %v3547_v55, %v3551_v58  ;;  %v3600_v29 = vld [vmem:[%s9169_s16 + $0x538] sm:$0xff]  ;;  %v6012_v63 = vcombine.low %v3587_v46, %v3591_v47 }
 0xa9b   :  { %5194 = vmatpush1.bf16.msra.mxu0 %v5916_v16  ;;  %v3560_v16 = vld [vmem:[%s9169_s16 + $0x3f8] sm:$0xff] }
 0xa9c   :  { %5276 = vmatpush1.bf16.msra.mxu1 %v5918_v18  ;;  %5195 = vmatprep.subr.bf16.mxu0 %v5925_v19  ;;  %v5972_v18 = vcombine.low %v3547_v55, %v3551_v58  ;;  %v5974_v19 = vcombine.low %v3548_v59, %v3552_v1  ;;  %v5983_v21 = vcombine.high %v3556_v14, %v3560_v16  ;;  %v3607_v55 = vld [vmem:[%s9169_s16 + $0x570] sm:$0xff]  ;;  %v3604_v58 = vld [vmem:[%s9169_s16 + $0x558] sm:$0xff] }
 0xa9d   :  { %5277 = vmatprep.subr.bf16.mxu1 %v5927_v20  ;;  %v5981_v20 = vcombine.high %v3555_v10, %v3559_v11  ;;  %v3608_v59 = vld [vmem:[%s9169_s16 + $0x578] sm:$0xff] }
 0xa9f   :  { %5196 = vmatpush1.bf16.msra.mxu0 %v5924_v12  ;;  %v3568_v12 = vld [vmem:[%s9169_s16 + $0x438] sm:$0xff] }
 0xaa0   :  { %5278 = vmatpush1.bf16.msra.mxu1 %v5926_v26  ;;  %5197 = vmatprep.subr.bf16.mxu0 %v5933_v9  ;;  %v5980_v26 = vcombine.low %v3555_v10, %v3559_v11  ;;  %v5982_v9 = vcombine.low %v3556_v14, %v3560_v16  ;;  %v5991_v28 = vcombine.high %v3564_v24, %v3568_v12  ;;  %v3615_v10 = vld [vmem:[%s9169_s16 + $0x5b0] sm:$0xff]  ;;  %v3612_v11 = vld [vmem:[%s9169_s16 + $0x598] sm:$0xff] }
 0xaa1   :  { %5279 = vmatprep.subr.bf16.mxu1 %v5935_v27  ;;  %v5989_v27 = vcombine.high %v3563_v22, %v3567_v23  ;;  %v3616_v14 = vld [vmem:[%s9169_s16 + $0x5b8] sm:$0xff]  ;;  %v3623_v22 = vld [vmem:[%s9169_s16 + $0x5f0] sm:$0xff] }
 0xaa2   :  { %v3620_v23 = vld [vmem:[%s9169_s16 + $0x5d8] sm:$0xff] }
 0xaa3   :  { %5198 = vmatpush1.bf16.msra.mxu0 %v5932_v32  ;;  %v3572_v32 = vld [vmem:[%s9169_s16 + $0x458] sm:$0xff] }
 0xaa4   :  { %5280 = vmatpush1.bf16.msra.mxu1 %v5934_v33  ;;  %5199 = vmatprep.subr.bf16.mxu0 %v5941_v34  ;;  %v3576_v33 = vld [vmem:[%s9169_s16 + $0x478] sm:$0xff]  ;;  %v5990_v34 = vcombine.low %v3564_v24, %v3568_v12 }
 0xaa5   :  { %5281 = vmatprep.subr.bf16.mxu1 %v5943_v35  ;;  %v5997_v35 = vcombine.high %v3571_v30, %v3575_v42  ;;  %v5999_v25 = vcombine.high %v3572_v32, %v3576_v33  ;;  %v3624_v24 = vld [vmem:[%s9169_s16 + $0x5f8] sm:$0xff] }
 0xaa7   :  { %5200 = vmatpush1.bf16.msra.mxu0 %v5940_v38  ;;  %v3584_v38 = vld [vmem:[%s9169_s16 + $0x4b8] sm:$0xff] }
 0xaa8   :  { %5282 = vmatpush1.bf16.msra.mxu1 %v5942_v39  ;;  %5201 = vmatprep.subr.bf16.mxu0 %v5949_v40  ;;  %v5996_v39 = vcombine.low %v3571_v30, %v3575_v42  ;;  %v5998_v40 = vcombine.low %v3572_v32, %v3576_v33  ;;  %v6007_v45 = vcombine.high %v3580_v37, %v3584_v38  ;;  %v3631_v30 = vld [vmem:[%s9169_s16 + $0x630] sm:$0xff]  ;;  %v3628_v42 = vld [vmem:[%s9169_s16 + $0x618] sm:$0xff] }
 0xaa9   :  { %5283 = vmatprep.subr.bf16.mxu1 %v5951_v41  ;;  %v6005_v41 = vcombine.high %v3579_v17, %v3583_v36  ;;  %v6046_v33 = vcombine.low %v3620_v23, %v3624_v24 }
 0xaab   :  { %5202 = vmatpush1.bf16.msra.mxu0 %v5948_v53  ;;  %v6006_v53 = vcombine.low %v3580_v37, %v3584_v38  ;;  %v3640_v37 = vld [vmem:[%s9169_s16 + $0x678] sm:$0xff] }
 0xaac   :  { %5284 = vmatpush1.bf16.msra.mxu1 %v5950_v56  ;;  %5203 = vmatprep.subr.bf16.mxu0 %v5957_v57  ;;  %v6013_v56 = vcombine.high %v3587_v46, %v3591_v47  ;;  %v3647_v46 = vld [vmem:[%s9169_s16 + $0x6b0] sm:$0xff]  ;;  %v3644_v47 = vld [vmem:[%s9169_s16 + $0x698] sm:$0xff] }
 0xaad   :  { %5285 = vmatprep.subr.bf16.mxu1 %v5959_v60  ;;  %v3595_v60 = vld [vmem:[%s9169_s16 + $0x510] sm:$0xff] }
 0xaae   :  { %v6020_v1 = vcombine.low %v3595_v60, %v3599_v61 }
 0xaaf   :  { %5204 = vmatpush1.bf16.msra.mxu0 %v5956_v0 }
 0xab0   :  { %5286 = vmatpush1.bf16.msra.mxu1 %v5958_v48  ;;  %5205 = vmatprep.subr.bf16.mxu0 %v5965_v50  ;;  %v6021_v48 = vcombine.high %v3595_v60, %v3599_v61  ;;  %v6023_v50 = vcombine.high %v3596_v62, %v3600_v29  ;;  %v3655_v60 = vld [vmem:[%s9169_s16 + $0x6f0] sm:$0xff]  ;;  %v3652_v61 = vld [vmem:[%s9169_s16 + $0x6d8] sm:$0xff] }
 0xab1   :  { %5287 = vmatprep.subr.bf16.mxu1 %v5967_v51  ;;  %v3603_v51 = vld [vmem:[%s9169_s16 + $0x550] sm:$0xff] }
 0xab2   :  { %v6028_v16 = vcombine.low %v3603_v51, %v3607_v55 }
 0xab3   :  { %5206 = vmatpush1.bf16.msra.mxu0 %v5964_v2  ;;  %v6022_v2 = vcombine.low %v3596_v62, %v3600_v29  ;;  %v3656_v62 = vld [vmem:[%s9169_s16 + $0x6f8] sm:$0xff] }
 0xab4   :  { %5288 = vmatpush1.bf16.msra.mxu1 %v5966_v4  ;;  %5207 = vmatprep.subr.bf16.mxu0 %v5973_v7  ;;  %v6029_v4 = vcombine.high %v3603_v51, %v3607_v55  ;;  %v6031_v7 = vcombine.high %v3604_v58, %v3608_v59  ;;  %v3663_v51 = vld [vmem:[%s9169_s16 + $0x730] sm:$0xff]  ;;  %v3660_v55 = vld [vmem:[%s9169_s16 + $0x718] sm:$0xff] }
 0xab5   :  { %5289 = vmatprep.subr.bf16.mxu1 %v5975_v8  ;;  %v3611_v8 = vld [vmem:[%s9169_s16 + $0x590] sm:$0xff] }
 0xab6   :  { %v6036_v12 = vcombine.low %v3611_v8, %v3615_v10 }
 0xab7   :  { %5208 = vmatpush1.bf16.msra.mxu0 %v5972_v18  ;;  %v6030_v18 = vcombine.low %v3604_v58, %v3608_v59  ;;  %v3664_v58 = vld [vmem:[%s9169_s16 + $0x738] sm:$0xff] }
 0xab8   :  { %5290 = vmatpush1.bf16.msra.mxu1 %v5974_v19  ;;  %5209 = vmatprep.subr.bf16.mxu0 %v5981_v20  ;;  %v6037_v19 = vcombine.high %v3611_v8, %v3615_v10  ;;  %v6039_v20 = vcombine.high %v3612_v11, %v3616_v14  ;;  %v3671_v8 = vld [vmem:[%s9169_s16 + $0x770] sm:$0xff]  ;;  %v3668_v10 = vld [vmem:[%s9169_s16 + $0x758] sm:$0xff] }
 0xab9   :  { %5291 = vmatprep.subr.bf16.mxu1 %v5983_v21  ;;  %v3619_v21 = vld [vmem:[%s9169_s16 + $0x5d0] sm:$0xff] }
 0xaba   :  { %v6044_v32 = vcombine.low %v3619_v21, %v3623_v22 }
 0xabb   :  { %5210 = vmatpush1.bf16.msra.mxu0 %v5980_v26  ;;  %v6038_v26 = vcombine.low %v3612_v11, %v3616_v14  ;;  %v3672_v11 = vld [vmem:[%s9169_s16 + $0x778] sm:$0xff] }
 0xabc   :  { %5292 = vmatpush1.bf16.msra.mxu1 %v5982_v9  ;;  %5220 = vmatprep.subr.bf16.mxu0 %v5989_v27  ;;  %v6045_v9 = vcombine.high %v3619_v21, %v3623_v22  ;;  %v6047_v27 = vcombine.high %v3620_v23, %v3624_v24  ;;  %v3679_v21 = vld [vmem:[%s9169_s16 + $0x7b0] sm:$0xff]  ;;  %v3676_v22 = vld [vmem:[%s9169_s16 + $0x798] sm:$0xff] }
 0xabd   :  { %5302 = vmatprep.subr.bf16.mxu1 %v5991_v28  ;;  %v3627_v28 = vld [vmem:[%s9169_s16 + $0x610] sm:$0xff]  ;;  %v3680_v23 = vld [vmem:[%s9169_s16 + $0x7b8] sm:$0xff] }
 0xabe   :  { %5212 = vmatmul.mubr.bf16.vlgmr.msra.gmra.mrb[16].mxu0 %v8549_v44  ;;  %v6052_v38 = vcombine.low %v3627_v28, %v3631_v30 }
 0xabf   :  { %5294 = vmatmul.mubr.bf16.vlgmr.msra.gmra.mrb[28].mxu1 %v8549_v44  ;;  %5221 = vmatpush1.bf16.msra.mxu0 %v5988_v31  ;;  %v3588_v44 = vld [vmem:[%s9169_s16 + $0x4d8] sm:$0xff] }
 0xac0   :  { %5252 = vmatprep.mubr.bf16.mxu0 %v8757_v13  ;;  %5303 = vmatpush1.bf16.msra.mxu1 %v5990_v34  ;;  %v6015_v57 = vcombine.high %v3588_v44, %v3592_v52  ;;  %v6014_v0 = vcombine.low %v3588_v44, %v3592_v52  ;;  %v3632_v31 = vld [vmem:[%s9169_s16 + $0x638] sm:$0xff]  ;;  %v6053_v34 = vcombine.high %v3627_v28, %v3631_v30  ;;  %v3687_v28 = vld [vmem:[%s9169_s16 + $0x7f0] sm:$0xff] }
 0xac1   :  { %5334 = vmatprep.mubr.bf16.mxu1 %v8757_v13  ;;  %5222 = vmatprep.subr.bf16.mxu0 %v5997_v35  ;;  %v6004_v13 = vcombine.low %v3579_v17, %v3583_v36  ;;  %v6055_v35 = vcombine.high %v3628_v42, %v3632_v31  ;;  %v3635_v17 = vld [vmem:[%s9169_s16 + $0x650] sm:$0xff]  ;;  %v3648_v44 = vld [vmem:[%s9169_s16 + $0x6b8] sm:$0xff] }
 0xac2   :  { %5304 = vmatprep.subr.bf16.mxu1 %v5999_v25  ;;  %v3639_v36 = vld [vmem:[%s9169_s16 + $0x670] sm:$0xff]  ;;  %v3636_v25 = vld [vmem:[%s9169_s16 + $0x658] sm:$0xff] }
 0xac3   :  { %5223 = vmatpush1.bf16.msra.mxu0 %v5996_v39  ;;  %v6054_v39 = vcombine.low %v3628_v42, %v3632_v31  ;;  %v6060_v52 = vcombine.low %v3635_v17, %v3639_v36  ;;  %v3684_v30 = vld [vmem:[%s9169_s16 + $0x7d8] sm:$0xff] }
 0xac4   :  { %5305 = vmatpush1.bf16.msra.mxu1 %v5998_v40  ;;  %5224 = vmatprep.subr.bf16.mxu0 %v6005_v41  ;;  %v6061_v40 = vcombine.high %v3635_v17, %v3639_v36  ;;  %v6063_v41 = vcombine.high %v3636_v25, %v3640_v37  ;;  %v3688_v42 = vld [vmem:[%s9169_s16 + $0x7f8] sm:$0xff]  ;;  %v3693_v36 = vld [vmem:[%s9172_s17] sm:$0xff] }
 0xac5   :  { %5306 = vmatprep.subr.bf16.mxu1 %v6007_v45  ;;  %v3643_v45 = vld [vmem:[%s9169_s16 + $0x690] sm:$0xff]  ;;  %v6110_v17 = vcombine.low %v3684_v30, %v3688_v42 }
 0xac6   :  { %v6068_v29 = vcombine.low %v3643_v45, %v3647_v46 }
 0xac7   :  { %5225 = vmatpush1.bf16.msra.mxu0 %v6004_v13  ;;  %v6062_v13 = vcombine.low %v3636_v25, %v3640_v37  ;;  %v3698_v25 = vrot.slane %v3693_v36, %v7878_v3  ;;  %v3706_v37 = vrot.slane %v3693_v36, %v7975_v54 }
 0xac8   :  { %5307 = vmatpush1.bf16.msra.mxu1 %v6006_v53  ;;  %5226 = vmatprep.subr.bf16.mxu0 %v6013_v56  ;;  %v6069_v53 = vcombine.high %v3643_v45, %v3647_v46  ;;  %v6071_v56 = vcombine.high %v3644_v47, %v3648_v44 }
 0xac9   :  { %5308 = vmatprep.subr.bf16.mxu1 %v6015_v57  ;;  %v3651_v57 = vld [vmem:[%s9169_s16 + $0x6d0] sm:$0xff] }
 0xaca   :  { %v6076_v59 = vcombine.low %v3651_v57, %v3655_v60 }
 0xacb   :  { %5227 = vmatpush1.bf16.msra.mxu0 %v6012_v63  ;;  %v6070_v63 = vcombine.low %v3644_v47, %v3648_v44 }
 0xacc   :  { %5309 = vmatpush1.bf16.msra.mxu1 %v6014_v0  ;;  %5228 = vmatprep.subr.bf16.mxu0 %v6021_v48  ;;  %v6077_v0 = vcombine.high %v3651_v57, %v3655_v60  ;;  %v6079_v48 = vcombine.high %v3652_v61, %v3656_v62 }
 0xacd   :  { %5310 = vmatprep.subr.bf16.mxu1 %v6023_v50  ;;  %v3659_v50 = vld [vmem:[%s9169_s16 + $0x710] sm:$0xff] }
 0xace   :  { %v6084_v14 = vcombine.low %v3659_v50, %v3663_v51 }
 0xacf   :  { %5229 = vmatpush1.bf16.msra.mxu0 %v6020_v1  ;;  %v6078_v1 = vcombine.low %v3652_v61, %v3656_v62 }
 0xad0   :  { %5311 = vmatpush1.bf16.msra.mxu1 %v6022_v2  ;;  %5230 = vmatprep.subr.bf16.mxu0 %v6029_v4  ;;  %v6085_v2 = vcombine.high %v3659_v50, %v3663_v51  ;;  %v6087_v4 = vcombine.high %v3660_v55, %v3664_v58 }
 0xad1   :  { %5312 = vmatprep.subr.bf16.mxu1 %v6031_v7  ;;  %v3667_v7 = vld [vmem:[%s9169_s16 + $0x750] sm:$0xff] }
 0xad2   :  { %v6092_v24 = vcombine.low %v3667_v7, %v3671_v8 }
 0xad3   :  { %5231 = vmatpush1.bf16.msra.mxu0 %v6028_v16  ;;  %v6086_v16 = vcombine.low %v3660_v55, %v3664_v58 }
 0xad4   :  { %5313 = vmatpush1.bf16.msra.mxu1 %v6030_v18  ;;  %5232 = vmatprep.subr.bf16.mxu0 %v6037_v19  ;;  %v6093_v18 = vcombine.high %v3667_v7, %v3671_v8  ;;  %v6095_v19 = vcombine.high %v3668_v10, %v3672_v11 }
 0xad5   :  { %5314 = vmatprep.subr.bf16.mxu1 %v6039_v20  ;;  %v3675_v20 = vld [vmem:[%s9169_s16 + $0x790] sm:$0xff] }
 0xad6   :  { %v6100_v31 = vcombine.low %v3675_v20, %v3679_v21 }
 0xad7   :  { %5233 = vmatpush1.bf16.msra.mxu0 %v6036_v12  ;;  %v6094_v12 = vcombine.low %v3668_v10, %v3672_v11  ;;  %v3713_v10 = vsub.s32 4, %v7089_v43  ;;  %v3721_v11 = vsub.s32 6, %v7089_v43 }
 0xad8   :  { %5315 = vmatpush1.bf16.msra.mxu1 %v6038_v26  ;;  %5234 = vmatprep.subr.bf16.mxu0 %v6045_v9  ;;  %v6101_v26 = vcombine.high %v3675_v20, %v3679_v21  ;;  %v6103_v9 = vcombine.high %v3676_v22, %v3680_v23 }
 0xad9   :  { %5316 = vmatprep.subr.bf16.mxu1 %v6047_v27  ;;  %v3683_v27 = vld [vmem:[%s9169_s16 + $0x7d0] sm:$0xff] }
 0xadb   :  { %5235 = vmatpush1.bf16.msra.mxu0 %v6044_v32  ;;  %v6102_v32 = vcombine.low %v3676_v22, %v3680_v23 }
 0xadc   :  { %5317 = vmatpush1.bf16.msra.mxu1 %v6046_v33  ;;  %5236 = vmatprep.subr.bf16.mxu0 %v6053_v34  ;;  %v6109_v33 = vcombine.high %v3683_v27, %v3687_v28  ;;  %v6111_v34 = vcombine.high %v3684_v30, %v3688_v42 }
 0xadd   :  { %5318 = vmatprep.subr.bf16.mxu1 %v6055_v35  ;;  %v6108_v35 = vcombine.low %v3683_v27, %v3687_v28 }
 0xadf   :  { %5237 = vmatpush1.bf16.msra.mxu0 %v6052_v38  ;;  %v3702_v38 = vrot.slane %v3693_v36, %v7886_v5 }
 0xae0   :  { %5319 = vmatpush1.bf16.msra.mxu1 %v6054_v39  ;;  %5238 = vmatprep.subr.bf16.mxu0 %v6061_v40  ;;  %v3710_v39 = vrot.slane %v3693_v36, %v7889_v6 }
 0xae1   :  { %5320 = vmatprep.subr.bf16.mxu1 %v6063_v41 }
 0xae3   :  { %5239 = vmatpush1.bf16.msra.mxu0 %v6060_v52 }
 0xae4   :  { %5321 = vmatpush1.bf16.msra.mxu1 %v6062_v13  ;;  %5240 = vmatprep.subr.bf16.mxu0 %v6069_v53 }
 0xae5   :  { %5322 = vmatprep.subr.bf16.mxu1 %v6071_v56 }
 0xae7   :  { %5241 = vmatpush1.bf16.msra.mxu0 %v6068_v29 }
 0xae8   :  { %5323 = vmatpush1.bf16.msra.mxu1 %v6070_v63  ;;  %5242 = vmatprep.subr.bf16.mxu0 %v6077_v0 }
 0xae9   :  { %5324 = vmatprep.subr.bf16.mxu1 %v6079_v48 }
 0xaeb   :  { %5243 = vmatpush1.bf16.msra.mxu0 %v6076_v59 }
 0xaec   :  { %5325 = vmatpush1.bf16.msra.mxu1 %v6078_v1  ;;  %5244 = vmatprep.subr.bf16.mxu0 %v6085_v2 }
 0xaed   :  { %5326 = vmatprep.subr.bf16.mxu1 %v6087_v4 }
 0xaef   :  { %5245 = vmatpush1.bf16.msra.mxu0 %v6084_v14  ;;  %v3717_v14 = vsub.s32 5, %v7089_v43 }
 0xaf0   :  { %5327 = vmatpush1.bf16.msra.mxu1 %v6086_v16  ;;  %5246 = vmatprep.subr.bf16.mxu0 %v6093_v18  ;;  %v3725_v16 = vsub.s32 7, %v7089_v43  ;;  %v3714_v18 = vrot.slane %v3693_v36, %v3713_v10 }
 0xaf1   :  { %5328 = vmatprep.subr.bf16.mxu1 %v6095_v19  ;;  %v3722_v19 = vrot.slane %v3693_v36, %v3721_v11  ;;  %v3718_v20 = vrot.slane %v3693_v36, %v3717_v14 }
 0xaf2   :  { %v3726_v21 = vrot.slane %v3693_v36, %v3725_v16 }
 0xaf3   :  { %5247 = vmatpush1.bf16.msra.mxu0 %v6092_v24 }
 0xaf4   :  { %5329 = vmatpush1.bf16.msra.mxu1 %v6094_v12  ;;  %5248 = vmatprep.subr.bf16.mxu0 %v6101_v26 }
 0xaf5   :  { %5330 = vmatprep.subr.bf16.mxu1 %v6103_v9 }
 0xaf7   :  { %5249 = vmatpush1.bf16.msra.mxu0 %v6100_v31 }
 0xaf8   :  { %5331 = vmatpush1.bf16.msra.mxu1 %v6102_v32  ;;  %5250 = vmatprep.subr.bf16.mxu0 %v6109_v33 }
 0xaf9   :  { %5332 = vmatprep.subr.bf16.mxu1 %v6111_v34 }
 0xafb   :  { %5251 = vmatpush1.bf16.msra.mxu0 %v6108_v35 }
 0xafc   :  { %5333 = vmatpush1.bf16.msra.mxu1 %v6110_v17 }
 0xafe   :  { %5253 = vmatmul.mubr.bf16.vlgmr.msra.gmra.mrb[16].mxu0 %v8759_v15 }
 0xaff   :  { %5335 = vmatmul.mubr.bf16.vlgmr.msra.gmra.mrb[28].mxu1 %v8759_v15 }
 0xb51   :  { %v5090_v40 = vpop.f32.mrb[12].mxu0  ;;  %v5172_v41 = vpop.f32.mrb[24].mxu1 }
 0xb52   :  { %v6167_v45 = vadd.f32 %v5090_v40, %v3698_v25  ;;  %v6169_v46 = vadd.f32 %v5172_v41, %v3706_v37  ;;  %v5092_v47 = vpop.f32.mrb[13].mxu0  ;;  %v5174_v44 = vpop.f32.mrb[25].mxu1 }
 0xb53   :  { %v6168_v52 = vadd.f32 %v5092_v47, %v3702_v38  ;;  %v6170_v15 = vadd.f32 %v5174_v44, %v3710_v39  ;;  %v5094_v13 = vpop.f32.mrb[14].mxu0  ;;  %v5176_v53 = vpop.f32.mrb[26].mxu1 }
 0xb54   :  { %v6112_v56 = vmul.f32 -1.442695, %v6167_v45  ;;  %v6114_v57 = vmul.f32 -1.442695, %v6169_v46  ;;  %v5095_v60 = vpop.f32.mrb[15].mxu0  ;;  %v5177_v3 = vpop.f32.mrb[27].mxu1 }
 0xb55   :  { %v6113_v61 = vmul.f32 -1.442695, %v6168_v52  ;;  %v6115_v54 = vmul.f32 -1.442695, %v6170_v15 }
 0xb56   :  { %6834 = vpow2.f32 %v6112_v56 }
 0xb57   :  { %6836 = vpow2.f32 %v6114_v57 }
 0xb58   :  { %6838 = vpow2.f32 %v6113_v61 }
 0xb59   :  { %6840 = vpow2.f32 %v6115_v54 }
 0xb60   :  { %v6835_v5 = vpop.eup %6834 }
 0xb61   :  { %v6837_v6 = vpop.eup %6836  ;;  %v5367_v62 = vadd.f32 1.0, %v6835_v5 }
 0xb62   :  { %v6839_v29 = vpop.eup %6838  ;;  %v5369_v63 = vadd.f32 1.0, %v6837_v6 }
 0xb63   :  { %v6841_v0 = vpop.eup %6840  ;;  %6842 = vrcp.f32 %v5367_v62  ;;  %v5368_v48 = vadd.f32 1.0, %v6839_v29 }
 0xb64   :  { %6844 = vrcp.f32 %v5369_v63  ;;  %v5370_v50 = vadd.f32 1.0, %v6841_v0 }
 0xb65   :  { %6846 = vrcp.f32 %v5368_v48 }
 0xb66   :  { %6848 = vrcp.f32 %v5370_v50 }
 0xb6d   :  { %v6843_v51 = vpop.eup %6842 }
 0xb6e   :  { %v6845_v55 = vpop.eup %6844 }
 0xb6f   :  { %v6847_v58 = vpop.eup %6846 }
 0xb70   :  { %v6849_v59 = vpop.eup %6848  ;;  %v5399_v1 = vcombine.low %v6843_v51, %v6847_v58 }
 0xb71   :  { %v5400_v2 = vcombine.low %v6845_v55, %v6849_v59 }
 0xb72   :  { %v5407_v4 = vrot.slane %v5399_v1, %v7107_v49 }
 0xb73   :  { %v5414_v7 = vrot.slane %v5400_v2, %v7107_v49 }
 0xb75   :  { %v5415_v8 = vcombine.low %v5407_v4, %v5414_v7 }
 0xb77   :  { %5435 = vst [vmem:[%s9173_s18] sm:$0xff] %v5415_v8 }
 0xbd1   :  { %v5254_v22 = vpop.f32.mrb[16].mxu0 }
 0xbd2   :  { %v6171_v23 = vadd.f32 %v5254_v22, %v3714_v18  ;;  %v5336_v24 = vpop.f32.mrb[28].mxu1  ;;  %v5256_v12 = vpop.f32.mrb[17].mxu0 }
 0xbd3   :  { %v6173_v26 = vadd.f32 %v5336_v24, %v3722_v19  ;;  %v6172_v9 = vadd.f32 %v5256_v12, %v3718_v20  ;;  %v5338_v27 = vpop.f32.mrb[29].mxu1  ;;  %v5258_v28 = vpop.f32.mrb[18].mxu0 }
 0xbd4   :  { %v6116_v30 = vmul.f32 -1.442695, %v6171_v23  ;;  %v6174_v42 = vadd.f32 %v5338_v27, %v3726_v21  ;;  %v5340_v31 = vpop.f32.mrb[30].mxu1  ;;  %v5259_v32 = vpop.f32.mrb[19].mxu0 }
 0xbd5   :  { %v6118_v33 = vmul.f32 -1.442695, %v6173_v26  ;;  %v6117_v34 = vmul.f32 -1.442695, %v6172_v9  ;;  %v5341_v35 = vpop.f32.mrb[31].mxu1 }
 0xbd6   :  { %6850 = vpow2.f32 %v6116_v30  ;;  %v6119_v43 = vmul.f32 -1.442695, %v6174_v42 }
 0xbd7   :  { %6852 = vpow2.f32 %v6118_v33 }
 0xbd8   :  { %6854 = vpow2.f32 %v6117_v34 }
 0xbd9   :  { %6856 = vpow2.f32 %v6119_v43 }
 0xbe0   :  { %v6851_v17 = vpop.eup %6850 }
 0xbe1   :  { %v6853_v36 = vpop.eup %6852  ;;  %v5371_v25 = vadd.f32 1.0, %v6851_v17 }
 0xbe2   :  { %v6855_v37 = vpop.eup %6854  ;;  %v5373_v38 = vadd.f32 1.0, %v6853_v36 }
 0xbe3   :  { %v6857_v39 = vpop.eup %6856  ;;  %6858 = vrcp.f32 %v5371_v25  ;;  %v5372_v40 = vadd.f32 1.0, %v6855_v37 }
 0xbe4   :  { %6860 = vrcp.f32 %v5373_v38  ;;  %v5374_v41 = vadd.f32 1.0, %v6857_v39 }
 0xbe5   :  { %6862 = vrcp.f32 %v5372_v40 }
 0xbe6   :  { %6864 = vrcp.f32 %v5374_v41 }
 0xbed   :  { %v6859_v45 = vpop.eup %6858 }
 0xbee   :  { %v6861_v46 = vpop.eup %6860 }
 0xbef   :  { %v6863_v47 = vpop.eup %6862 }
 0xbf0   :  { %v6865_v44 = vpop.eup %6864  ;;  %v5416_v52 = vcombine.low %v6859_v45, %v6863_v47 }
 0xbf1   :  { %v5417_v15 = vcombine.low %v6861_v46, %v6865_v44 }
 0xbf2   :  { %v5424_v13 = vrot.slane %v5416_v52, %v7107_v49 }
 0xbf3   :  { %v5431_v53 = vrot.slane %v5417_v15, %v7107_v49 }
 0xbf5   :  { %v5432_v56 = vcombine.low %v5424_v13, %v5431_v53 }
 0xbf7   :  { %5436 = vst [vmem:[%s9173_s18 + $0x8] sm:$0xff] %v5432_v56 }

</bundles_post_ra>
